<compile_context>
chip_gen: v7x
topology: tpu7x:2x2x1
jax: 0.10.0
libtpu: 0.0.40
codegen_flags: <defaults>
</compile_context>

<pallas_src>
import jax
import jax.numpy as jnp
from jax.experimental import pallas as pl
from jax.experimental.pallas import tpu as pltpu

raw_text = ('We are about to study the idea of a computational process.\n'
            'Computational processes are abstract beings that inhabit computers.\n'
            'As they evolve, processes manipulate other abstract things called data.\n'
            'The evolution of a process is directed by a pattern of rules\n'
            'called a program. People create programs to direct processes. In effect,\n'
            'we conjure the spirits of the computer with our spells.').split()

vocab = set(raw_text)
VOCAB_SIZE = len(vocab)                            # 49

CONTEXT_SIZE = 4                                   # context word indices per window
EMBEDDING_SIZE = 32                                # embedding dim
IN_FEATURES = CONTEXT_SIZE * EMBEDDING_SIZE        # 4 * 32 = 128 (linear in_features)

LANE = 128
V_PAD = LANE * ((VOCAB_SIZE + LANE - 1) // LANE)   # lane-dense padded vocab dim (128)

# Rows (context windows) per grid step. Multiple of 8 (f32 sublane). For large
# training batches bump to 128 (v5e) / 256 (v6e/v7x) to row-fill the MXU.
TILE_B = 16


def cbow_kernel(idx_ref, emb_ref, w_ref, b_ref, out_ref, x_ref):
    """One grid step = TILE_B context windows.

    idx_ref : SMEM int32[B*C]       scalar-prefetched word indices (flattened)
    emb_ref : VMEM f32[V, E]        embedding table (resident across the grid)
    w_ref   : VMEM f32[C*E, V_PAD]  pre-transposed, lane-padded linear weight (resident)
    b_ref   : VMEM f32[1, V_PAD]    lane-padded bias (resident)
    out_ref : VMEM f32[TILE_B, V]   per-step output block
    x_ref   : VMEM f32[TILE_B, C*E] scratch: gathered + concatenated embeddings
    """
    i = pl.program_id(0)
    base = i * (TILE_B * CONTEXT_SIZE)

    # Gather the C context-embedding rows for each of the TILE_B windows into a
    # lane-dense activation matrix. Index reads + clamp run on the (otherwise
    # idle) scalar unit; each row gather is a dynamic-index VMEM load.
    for b in range(TILE_B):                           # static unroll
        for c in range(CONTEXT_SIZE):                 # static unroll
            raw = idx_ref[base + b * CONTEXT_SIZE + c]
            pl.debug_check(jnp.logical_and(raw >= 0, raw < VOCAB_SIZE),
                           "CBOW: word index out of range")
            idx = jnp.minimum(jnp.maximum(raw, 0), VOCAB_SIZE - 1)  # no OOB VMEM reads
            x_ref[b:b + 1, c * EMBEDDING_SIZE:(c + 1) * EMBEDDING_SIZE] = (
                emb_ref[idx, :][None, :])

    # Single K=128 MXU push: (TILE_B, C*E) @ (C*E, V_PAD), f32 accumulation.
    acc = jnp.dot(x_ref[...], w_ref[...],
                  preferred_element_type=jnp.float32) + b_ref[...]

    # One masked store of the V valid lanes; padded columns never reach HBM.
    out_ref[...] = acc[:, :VOCAB_SIZE]


def _cbow_call(batch):
    """pallas_call for a padded batch of `batch` (multiple of TILE_B) windows."""
    return pl.pallas_call(
        cbow_kernel,
        out_shape=jax.ShapeDtypeStruct((batch, VOCAB_SIZE), jnp.float32),
        grid_spec=pltpu.PrefetchScalarGridSpec(
            num_scalar_prefetch=1,                     # flattened indices -> SMEM
            grid=(batch // TILE_B,),
            in_specs=[
                # Constant index maps -> arrays stay VMEM-resident, no re-DMA per step.
                pl.BlockSpec((VOCAB_SIZE, EMBEDDING_SIZE), lambda i, idx: (0, 0)),
                pl.BlockSpec((IN_FEATURES, V_PAD), lambda i, idx: (0, 0)),
                pl.BlockSpec((1, V_PAD), lambda i, idx: (0, 0)),
            ],
            out_specs=pl.BlockSpec((TILE_B, VOCAB_SIZE), lambda i, idx: (i, 0)),
            scratch_shapes=[pltpu.VMEM((TILE_B, IN_FEATURES), jnp.float32)],
        ),
        compiler_params=pltpu.CompilerParams(
            dimension_semantics=("parallel",)),        # v7x: split batch over 2 TCs
    )


def prepare_params(emb_table, weight, bias):
    """One-time canonicalization of PyTorch-layout params for the kernel.

    weight: f32[V, C*E] (nn.Linear layout) -> f32[C*E, V_PAD] (transposed, lane-padded)
    bias:   f32[V]                          -> f32[1, V_PAD]
    Done once so no transpose/reshape sits on the per-call hot path. Padded
    columns are zeroed for hygiene, but correctness no longer depends on it —
    the kernel only stores the first VOCAB_SIZE lanes.
    """
    w_t = jnp.zeros((IN_FEATURES, V_PAD), jnp.float32).at[:, :VOCAB_SIZE].set(weight.T)
    b2 = jnp.zeros((1, V_PAD), jnp.float32).at[:, :VOCAB_SIZE].set(bias)
    return emb_table.astype(jnp.float32), w_t, b2


@jax.jit
def cbow_forward_batched(indices, emb_table, w_t, b2):
    """Performance API: indices int[B, C] -> f32[B, V] (B padded to TILE_B internally)."""
    B = indices.shape[0]
    Bp = TILE_B * pl.cdiv(B, TILE_B)
    idx = indices.astype(jnp.int32)
    if Bp != B:
        idx = jnp.concatenate([idx, jnp.zeros((Bp - B, CONTEXT_SIZE), jnp.int32)], axis=0)
    out = _cbow_call(Bp)(idx.reshape(-1), emb_table, w_t, b2)
    return out if Bp == B else out[:B]


@jax.jit
def cbow_forward(indices, emb_table, w_t, b2):
    """Module-semantics forward: indices int[C] -> f32[1, V] (as in CBOW.forward)."""
    idx_b = jnp.broadcast_to(indices.astype(jnp.int32)[None, :],
                             (TILE_B, CONTEXT_SIZE))
    out = _cbow_call(TILE_B)(idx_b.reshape(-1), emb_table, w_t, b2)
    return out[:1]


if __name__ == "__main__":
    key = jax.random.PRNGKey(0)
    k_emb, k_w, k_b, k_idx, k_idx1 = jax.random.split(key, 5)

    # Deterministic parameter init (mimics PyTorch defaults):
    #   nn.Embedding -> N(0, 1); nn.Linear -> U(-1/sqrt(in), 1/sqrt(in)).
    emb_table = jax.random.normal(k_emb, (VOCAB_SIZE, EMBEDDING_SIZE), jnp.float32)
    bound = 1.0 / (IN_FEATURES ** 0.5)
    weight = jax.random.uniform(k_w, (VOCAB_SIZE, IN_FEATURES), jnp.float32,
                                minval=-bound, maxval=bound)
    bias = jax.random.uniform(k_b, (VOCAB_SIZE,), jnp.float32,
                              minval=-bound, maxval=bound)

    emb_p, w_t, b2 = prepare_params(emb_table, weight, bias)

    # --- Batched path: B context windows per pallas_call (grid=(B//TILE_B,)). ---
    B = 64
    idx_b = jax.random.randint(k_idx, (B, CONTEXT_SIZE), 0, VOCAB_SIZE, jnp.int32)
    out_b = jax.block_until_ready(cbow_forward_batched(idx_b, emb_p, w_t, b2))
    ref_b = emb_table[idx_b].reshape(B, -1) @ weight.T + bias[None, :]
    assert out_b.shape == (B, VOCAB_SIZE)
    assert jnp.allclose(out_b, ref_b, atol=1e-4, rtol=1e-4)

    # --- Module-semantics path: single window -> (1, V), as in CBOW.forward. ---
    idx1 = jax.random.randint(k_idx1, (CONTEXT_SIZE,), 0, VOCAB_SIZE, jnp.int32)
    out1 = jax.block_until_ready(cbow_forward(idx1, emb_p, w_t, b2))
    ref1 = emb_table[idx1].reshape(1, -1) @ weight.T + bias[None, :]
    assert out1.shape == (1, VOCAB_SIZE)
    assert jnp.allclose(out1, ref1, atol=1e-4, rtol=1e-4)

    print("KERNEL_OK")
</pallas_src>

<mosaic_0001>
module attributes {stable_mosaic.version = 11 : i64} {
  func.func @cbow_kernel(%arg0: i32, %arg1: memref<256xi32, #tpu.memory_space<smem>>, %arg2: memref<49x32xf32, #tpu.memory_space<vmem>>, %arg3: memref<128x128xf32, #tpu.memory_space<vmem>>, %arg4: memref<1x128xf32, #tpu.memory_space<vmem>>, %arg5: memref<16x49xf32, #tpu.memory_space<vmem>>, %arg6: memref<16x128xf32, #tpu.memory_space<vmem>>) attributes {dimension_semantics = [#tpu.dimension_semantics<parallel>], iteration_bounds = array<i64: 4>, scalar_prefetch = 1 : i64, scratch_operands = 1 : i64, tpu.core_type = #tpu.core_type<tc>, window_params = [{pipeline_mode = #tpu.pipeline_mode<synchronous>, transform_indices = @transform_0, window_bounds = array<i64: 49, 32>}, {pipeline_mode = #tpu.pipeline_mode<synchronous>, transform_indices = @transform_1, window_bounds = array<i64: 128, 128>}, {pipeline_mode = #tpu.pipeline_mode<synchronous>, transform_indices = @transform_2, window_bounds = array<i64: 1, 128>}, {transform_indices = @transform_3, window_bounds = array<i64: 16, 49>}]} {
    %c64_i32 = arith.constant 64 : i32
    %0 = arith.muli %arg0, %c64_i32 : i32
    %c0_i32 = arith.constant 0 : i32
    %1 = arith.addi %0, %c0_i32 : i32
    %c0_i32_0 = arith.constant 0 : i32
    %2 = arith.addi %1, %c0_i32_0 : i32
    %3 = arith.index_cast %2 : i32 to index
    %4 = memref.load %arg1[%3] : memref<256xi32, #tpu.memory_space<smem>>
    %c0_i32_1 = arith.constant 0 : i32
    %5 = arith.cmpi sge, %4, %c0_i32_1 : i32
    %c49_i32 = arith.constant 49 : i32
    %6 = arith.cmpi slt, %4, %c49_i32 : i32
    %7 = arith.andi %5, %6 : i1
    %true = arith.constant true
    %8 = arith.xori %7, %true : i1
    %false = arith.constant false
    %9 = arith.ori %false, %8 : i1
    %false_2 = arith.constant false
    %c1_i32 = arith.constant 1 : i32
    %c-1_i32 = arith.constant -1 : i32
    %10 = arith.select %false_2, %c-1_i32, %c1_i32 : i32
    %c0_i32_3 = arith.constant 0 : i32
    %11 = arith.maxsi %4, %c0_i32_3 : i32
    %c48_i32 = arith.constant 48 : i32
    %12 = arith.minsi %11, %c48_i32 : i32
    %13 = arith.index_cast %12 : i32 to index
    %c0 = arith.constant 0 : index
    %14 = vector.load %arg2[%13, %c0] : memref<49x32xf32, #tpu.memory_space<vmem>>, vector<1x32xf32>
    %15 = vector.shape_cast %14 : vector<1x32xf32> to vector<32xf32>
    %16 = vector.shape_cast %15 : vector<32xf32> to vector<1x32xf32>
    %c0_4 = arith.constant 0 : index
    %c0_5 = arith.constant 0 : index
    %17 = vector.load %arg6[%c0_4, %c0_5] : memref<16x128xf32, #tpu.memory_space<vmem>>, vector<1x32xf32>
    tpu.vector_store %arg6[%c0_4, %c0_5], %16 {strides = array<i32>} : memref<16x128xf32, #tpu.memory_space<vmem>>, vector<1x32xf32>,
    %c0_i32_6 = arith.constant 0 : i32
    %18 = arith.addi %0, %c0_i32_6 : i32
    %c1_i32_7 = arith.constant 1 : i32
    %19 = arith.addi %18, %c1_i32_7 : i32
    %20 = arith.index_cast %19 : i32 to index
    %21 = memref.load %arg1[%20] : memref<256xi32, #tpu.memory_space<smem>>
    %c0_i32_8 = arith.constant 0 : i32
    %22 = arith.cmpi sge, %21, %c0_i32_8 : i32
    %c49_i32_9 = arith.constant 49 : i32
    %23 = arith.cmpi slt, %21, %c49_i32_9 : i32
    %24 = arith.andi %22, %23 : i1
    %true_10 = arith.constant true
    %25 = arith.xori %24, %true_10 : i1
    %false_11 = arith.constant false
    %26 = arith.ori %false_11, %25 : i1
    %false_12 = arith.constant false
    %c2_i32 = arith.constant 2 : i32
    %c-1_i32_13 = arith.constant -1 : i32
    %27 = arith.select %false_12, %c-1_i32_13, %c2_i32 : i32
    %c0_i32_14 = arith.constant 0 : i32
    %28 = arith.maxsi %21, %c0_i32_14 : i32
    %c48_i32_15 = arith.constant 48 : i32
    %29 = arith.minsi %28, %c48_i32_15 : i32
    %30 = arith.index_cast %29 : i32 to index
    %c0_16 = arith.constant 0 : index
    %31 = vector.load %arg2[%30, %c0_16] : memref<49x32xf32, #tpu.memory_space<vmem>>, vector<1x32xf32>
    %32 = vector.shape_cast %31 : vector<1x32xf32> to vector<32xf32>
    %33 = vector.shape_cast %32 : vector<32xf32> to vector<1x32xf32>
    %c0_17 = arith.constant 0 : index
    %c32 = arith.constant 32 : index
    %34 = vector.load %arg6[%c0_17, %c32] : memref<16x128xf32, #tpu.memory_space<vmem>>, vector<1x32xf32>
    tpu.vector_store %arg6[%c0_17, %c32], %33 {strides = array<i32>} : memref<16x128xf32, #tpu.memory_space<vmem>>, vector<1x32xf32>,
    %c0_i32_18 = arith.constant 0 : i32
    %35 = arith.addi %0, %c0_i32_18 : i32
    %c2_i32_19 = arith.constant 2 : i32
    %36 = arith.addi %35, %c2_i32_19 : i32
    %37 = arith.index_cast %36 : i32 to index
    %38 = memref.load %arg1[%37] : memref<256xi32, #tpu.memory_space<smem>>
    %c0_i32_20 = arith.constant 0 : i32
    %39 = arith.cmpi sge, %38, %c0_i32_20 : i32
    %c49_i32_21 = arith.constant 49 : i32
    %40 = arith.cmpi slt, %38, %c49_i32_21 : i32
    %41 = arith.andi %39, %40 : i1
    %true_22 = arith.constant true
    %42 = arith.xori %41, %true_22 : i1
    %false_23 = arith.constant false
    %43 = arith.ori %false_23, %42 : i1
    %false_24 = arith.constant false
    %c3_i32 = arith.constant 3 : i32
    %c-1_i32_25 = arith.constant -1 : i32
    %44 = arith.select %false_24, %c-1_i32_25, %c3_i32 : i32
    %c0_i32_26 = arith.constant 0 : i32
    %45 = arith.maxsi %38, %c0_i32_26 : i32
    %c48_i32_27 = arith.constant 48 : i32
    %46 = arith.minsi %45, %c48_i32_27 : i32
    %47 = arith.index_cast %46 : i32 to index
    %c0_28 = arith.constant 0 : index
    %48 = vector.load %arg2[%47, %c0_28] : memref<49x32xf32, #tpu.memory_space<vmem>>, vector<1x32xf32>
    %49 = vector.shape_cast %48 : vector<1x32xf32> to vector<32xf32>
    %50 = vector.shape_cast %49 : vector<32xf32> to vector<1x32xf32>
    %c0_29 = arith.constant 0 : index
    %c64 = arith.constant 64 : index
    %51 = vector.load %arg6[%c0_29, %c64] : memref<16x128xf32, #tpu.memory_space<vmem>>, vector<1x32xf32>
    tpu.vector_store %arg6[%c0_29, %c64], %50 {strides = array<i32>} : memref<16x128xf32, #tpu.memory_space<vmem>>, vector<1x32xf32>,
    %c0_i32_30 = arith.constant 0 : i32
    %52 = arith.addi %0, %c0_i32_30 : i32
    %c3_i32_31 = arith.constant 3 : i32
    %53 = arith.addi %52, %c3_i32_31 : i32
    %54 = arith.index_cast %53 : i32 to index
    %55 = memref.load %arg1[%54] : memref<256xi32, #tpu.memory_space<smem>>
    %c0_i32_32 = arith.constant 0 : i32
    %56 = arith.cmpi sge, %55, %c0_i32_32 : i32
    %c49_i32_33 = arith.constant 49 : i32
    %57 = arith.cmpi slt, %55, %c49_i32_33 : i32
    %58 = arith.andi %56, %57 : i1
    %true_34 = arith.constant true
    %59 = arith.xori %58, %true_34 : i1
    %false_35 = arith.constant false
    %60 = arith.ori %false_35, %59 : i1
    %false_36 = arith.constant false
    %c4_i32 = arith.constant 4 : i32
    %c-1_i32_37 = arith.constant -1 : i32
    %61 = arith.select %false_36, %c-1_i32_37, %c4_i32 : i32
    %c0_i32_38 = arith.constant 0 : i32
    %62 = arith.maxsi %55, %c0_i32_38 : i32
    %c48_i32_39 = arith.constant 48 : i32
    %63 = arith.minsi %62, %c48_i32_39 : i32
    %64 = arith.index_cast %63 : i32 to index
    %c0_40 = arith.constant 0 : index
    %65 = vector.load %arg2[%64, %c0_40] : memref<49x32xf32, #tpu.memory_space<vmem>>, vector<1x32xf32>
    %66 = vector.shape_cast %65 : vector<1x32xf32> to vector<32xf32>
    %67 = vector.shape_cast %66 : vector<32xf32> to vector<1x32xf32>
    %c0_41 = arith.constant 0 : index
    %c96 = arith.constant 96 : index
    %68 = vector.load %arg6[%c0_41, %c96] : memref<16x128xf32, #tpu.memory_space<vmem>>, vector<1x32xf32>
    tpu.vector_store %arg6[%c0_41, %c96], %67 {strides = array<i32>} : memref<16x128xf32, #tpu.memory_space<vmem>>, vector<1x32xf32>,
    %c4_i32_42 = arith.constant 4 : i32
    %69 = arith.addi %0, %c4_i32_42 : i32
    %c0_i32_43 = arith.constant 0 : i32
    %70 = arith.addi %69, %c0_i32_43 : i32
    %71 = arith.index_cast %70 : i32 to index
    %72 = memref.load %arg1[%71] : memref<256xi32, #tpu.memory_space<smem>>
    %c0_i32_44 = arith.constant 0 : i32
    %73 = arith.cmpi sge, %72, %c0_i32_44 : i32
    %c49_i32_45 = arith.constant 49 : i32
    %74 = arith.cmpi slt, %72, %c49_i32_45 : i32
    %75 = arith.andi %73, %74 : i1
    %true_46 = arith.constant true
    %76 = arith.xori %75, %true_46 : i1
    %false_47 = arith.constant false
    %77 = arith.ori %false_47, %76 : i1
    %false_48 = arith.constant false
    %c5_i32 = arith.constant 5 : i32
    %c-1_i32_49 = arith.constant -1 : i32
    %78 = arith.select %false_48, %c-1_i32_49, %c5_i32 : i32
    %c0_i32_50 = arith.constant 0 : i32
    %79 = arith.maxsi %72, %c0_i32_50 : i32
    %c48_i32_51 = arith.constant 48 : i32
    %80 = arith.minsi %79, %c48_i32_51 : i32
    %81 = arith.index_cast %80 : i32 to index
    %c0_52 = arith.constant 0 : index
    %82 = vector.load %arg2[%81, %c0_52] : memref<49x32xf32, #tpu.memory_space<vmem>>, vector<1x32xf32>
    %83 = vector.shape_cast %82 : vector<1x32xf32> to vector<32xf32>
    %84 = vector.shape_cast %83 : vector<32xf32> to vector<1x32xf32>
    %c1 = arith.constant 1 : index
    %c0_53 = arith.constant 0 : index
    %85 = vector.load %arg6[%c1, %c0_53] : memref<16x128xf32, #tpu.memory_space<vmem>>, vector<1x32xf32>
    tpu.vector_store %arg6[%c1, %c0_53], %84 {strides = array<i32>} : memref<16x128xf32, #tpu.memory_space<vmem>>, vector<1x32xf32>,
    %c4_i32_54 = arith.constant 4 : i32
    %86 = arith.addi %0, %c4_i32_54 : i32
    %c1_i32_55 = arith.constant 1 : i32
    %87 = arith.addi %86, %c1_i32_55 : i32
    %88 = arith.index_cast %87 : i32 to index
    %89 = memref.load %arg1[%88] : memref<256xi32, #tpu.memory_space<smem>>
    %c0_i32_56 = arith.constant 0 : i32
    %90 = arith.cmpi sge, %89, %c0_i32_56 : i32
    %c49_i32_57 = arith.constant 49 : i32
    %91 = arith.cmpi slt, %89, %c49_i32_57 : i32
    %92 = arith.andi %90, %91 : i1
    %true_58 = arith.constant true
    %93 = arith.xori %92, %true_58 : i1
    %false_59 = arith.constant false
    %94 = arith.ori %false_59, %93 : i1
    %false_60 = arith.constant false
    %c6_i32 = arith.constant 6 : i32
    %c-1_i32_61 = arith.constant -1 : i32
    %95 = arith.select %false_60, %c-1_i32_61, %c6_i32 : i32
    %c0_i32_62 = arith.constant 0 : i32
    %96 = arith.maxsi %89, %c0_i32_62 : i32
    %c48_i32_63 = arith.constant 48 : i32
    %97 = arith.minsi %96, %c48_i32_63 : i32
    %98 = arith.index_cast %97 : i32 to index
    %c0_64 = arith.constant 0 : index
    %99 = vector.load %arg2[%98, %c0_64] : memref<49x32xf32, #tpu.memory_space<vmem>>, vector<1x32xf32>
    %100 = vector.shape_cast %99 : vector<1x32xf32> to vector<32xf32>
    %101 = vector.shape_cast %100 : vector<32xf32> to vector<1x32xf32>
    %c1_65 = arith.constant 1 : index
    %c32_66 = arith.constant 32 : index
    %102 = vector.load %arg6[%c1_65, %c32_66] : memref<16x128xf32, #tpu.memory_space<vmem>>, vector<1x32xf32>
    tpu.vector_store %arg6[%c1_65, %c32_66], %101 {strides = array<i32>} : memref<16x128xf32, #tpu.memory_space<vmem>>, vector<1x32xf32>,
    %c4_i32_67 = arith.constant 4 : i32
    %103 = arith.addi %0, %c4_i32_67 : i32
    %c2_i32_68 = arith.constant 2 : i32
    %104 = arith.addi %103, %c2_i32_68 : i32
    %105 = arith.index_cast %104 : i32 to index
    %106 = memref.load %arg1[%105] : memref<256xi32, #tpu.memory_space<smem>>
    %c0_i32_69 = arith.constant 0 : i32
    %107 = arith.cmpi sge, %106, %c0_i32_69 : i32
    %c49_i32_70 = arith.constant 49 : i32
    %108 = arith.cmpi slt, %106, %c49_i32_70 : i32
    %109 = arith.andi %107, %108 : i1
    %true_71 = arith.constant true
    %110 = arith.xori %109, %true_71 : i1
    %false_72 = arith.constant false
    %111 = arith.ori %false_72, %110 : i1
    %false_73 = arith.constant false
    %c7_i32 = arith.constant 7 : i32
    %c-1_i32_74 = arith.constant -1 : i32
    %112 = arith.select %false_73, %c-1_i32_74, %c7_i32 : i32
    %c0_i32_75 = arith.constant 0 : i32
    %113 = arith.maxsi %106, %c0_i32_75 : i32
    %c48_i32_76 = arith.constant 48 : i32
    %114 = arith.minsi %113, %c48_i32_76 : i32
    %115 = arith.index_cast %114 : i32 to index
    %c0_77 = arith.constant 0 : index
    %116 = vector.load %arg2[%115, %c0_77] : memref<49x32xf32, #tpu.memory_space<vmem>>, vector<1x32xf32>
    %117 = vector.shape_cast %116 : vector<1x32xf32> to vector<32xf32>
    %118 = vector.shape_cast %117 : vector<32xf32> to vector<1x32xf32>
    %c1_78 = arith.constant 1 : index
    %c64_79 = arith.constant 64 : index
    %119 = vector.load %arg6[%c1_78, %c64_79] : memref<16x128xf32, #tpu.memory_space<vmem>>, vector<1x32xf32>
    tpu.vector_store %arg6[%c1_78, %c64_79], %118 {strides = array<i32>} : memref<16x128xf32, #tpu.memory_space<vmem>>, vector<1x32xf32>,
    %c4_i32_80 = arith.constant 4 : i32
    %120 = arith.addi %0, %c4_i32_80 : i32
    %c3_i32_81 = arith.constant 3 : i32
    %121 = arith.addi %120, %c3_i32_81 : i32
    %122 = arith.index_cast %121 : i32 to index
    %123 = memref.load %arg1[%122] : memref<256xi32, #tpu.memory_space<smem>>
    %c0_i32_82 = arith.constant 0 : i32
    %124 = arith.cmpi sge, %123, %c0_i32_82 : i32
    %c49_i32_83 = arith.constant 49 : i32
    %125 = arith.cmpi slt, %123, %c49_i32_83 : i32
    %126 = arith.andi %124, %125 : i1
    %true_84 = arith.constant true
    %127 = arith.xori %126, %true_84 : i1
    %false_85 = arith.constant false
    %128 = arith.ori %false_85, %127 : i1
    %false_86 = arith.constant false
    %c8_i32 = arith.constant 8 : i32
    %c-1_i32_87 = arith.constant -1 : i32
    %129 = arith.select %false_86, %c-1_i32_87, %c8_i32 : i32
    %c0_i32_88 = arith.constant 0 : i32
    %130 = arith.maxsi %123, %c0_i32_88 : i32
    %c48_i32_89 = arith.constant 48 : i32
    %131 = arith.minsi %130, %c48_i32_89 : i32
    %132 = arith.index_cast %131 : i32 to index
    %c0_90 = arith.constant 0 : index
    %133 = vector.load %arg2[%132, %c0_90] : memref<49x32xf32, #tpu.memory_space<vmem>>, vector<1x32xf32>
    %134 = vector.shape_cast %133 : vector<1x32xf32> to vector<32xf32>
    %135 = vector.shape_cast %134 : vector<32xf32> to vector<1x32xf32>
    %c1_91 = arith.constant 1 : index
    %c96_92 = arith.constant 96 : index
    %136 = vector.load %arg6[%c1_91, %c96_92] : memref<16x128xf32, #tpu.memory_space<vmem>>, vector<1x32xf32>
    tpu.vector_store %arg6[%c1_91, %c96_92], %135 {strides = array<i32>} : memref<16x128xf32, #tpu.memory_space<vmem>>, vector<1x32xf32>,
    %c8_i32_93 = arith.constant 8 : i32
    %137 = arith.addi %0, %c8_i32_93 : i32
    %c0_i32_94 = arith.constant 0 : i32
    %138 = arith.addi %137, %c0_i32_94 : i32
    %139 = arith.index_cast %138 : i32 to index
    %140 = memref.load %arg1[%139] : memref<256xi32, #tpu.memory_space<smem>>
    %c0_i32_95 = arith.constant 0 : i32
    %141 = arith.cmpi sge, %140, %c0_i32_95 : i32
    %c49_i32_96 = arith.constant 49 : i32
    %142 = arith.cmpi slt, %140, %c49_i32_96 : i32
    %143 = arith.andi %141, %142 : i1
    %true_97 = arith.constant true
    %144 = arith.xori %143, %true_97 : i1
    %false_98 = arith.constant false
    %145 = arith.ori %false_98, %144 : i1
    %false_99 = arith.constant false
    %c9_i32 = arith.constant 9 : i32
    %c-1_i32_100 = arith.constant -1 : i32
    %146 = arith.select %false_99, %c-1_i32_100, %c9_i32 : i32
    %c0_i32_101 = arith.constant 0 : i32
    %147 = arith.maxsi %140, %c0_i32_101 : i32
    %c48_i32_102 = arith.constant 48 : i32
    %148 = arith.minsi %147, %c48_i32_102 : i32
    %149 = arith.index_cast %148 : i32 to index
    %c0_103 = arith.constant 0 : index
    %150 = vector.load %arg2[%149, %c0_103] : memref<49x32xf32, #tpu.memory_space<vmem>>, vector<1x32xf32>
    %151 = vector.shape_cast %150 : vector<1x32xf32> to vector<32xf32>
    %152 = vector.shape_cast %151 : vector<32xf32> to vector<1x32xf32>
    %c2 = arith.constant 2 : index
    %c0_104 = arith.constant 0 : index
    %153 = vector.load %arg6[%c2, %c0_104] : memref<16x128xf32, #tpu.memory_space<vmem>>, vector<1x32xf32>
    tpu.vector_store %arg6[%c2, %c0_104], %152 {strides = array<i32>} : memref<16x128xf32, #tpu.memory_space<vmem>>, vector<1x32xf32>,
    %c8_i32_105 = arith.constant 8 : i32
    %154 = arith.addi %0, %c8_i32_105 : i32
    %c1_i32_106 = arith.constant 1 : i32
    %155 = arith.addi %154, %c1_i32_106 : i32
    %156 = arith.index_cast %155 : i32 to index
    %157 = memref.load %arg1[%156] : memref<256xi32, #tpu.memory_space<smem>>
    %c0_i32_107 = arith.constant 0 : i32
    %158 = arith.cmpi sge, %157, %c0_i32_107 : i32
    %c49_i32_108 = arith.constant 49 : i32
    %159 = arith.cmpi slt, %157, %c49_i32_108 : i32
    %160 = arith.andi %158, %159 : i1
    %true_109 = arith.constant true
    %161 = arith.xori %160, %true_109 : i1
    %false_110 = arith.constant false
    %162 = arith.ori %false_110, %161 : i1
    %false_111 = arith.constant false
    %c10_i32 = arith.constant 10 : i32
    %c-1_i32_112 = arith.constant -1 : i32
    %163 = arith.select %false_111, %c-1_i32_112, %c10_i32 : i32
    %c0_i32_113 = arith.constant 0 : i32
    %164 = arith.maxsi %157, %c0_i32_113 : i32
    %c48_i32_114 = arith.constant 48 : i32
    %165 = arith.minsi %164, %c48_i32_114 : i32
    %166 = arith.index_cast %165 : i32 to index
    %c0_115 = arith.constant 0 : index
    %167 = vector.load %arg2[%166, %c0_115] : memref<49x32xf32, #tpu.memory_space<vmem>>, vector<1x32xf32>
    %168 = vector.shape_cast %167 : vector<1x32xf32> to vector<32xf32>
    %169 = vector.shape_cast %168 : vector<32xf32> to vector<1x32xf32>
    %c2_116 = arith.constant 2 : index
    %c32_117 = arith.constant 32 : index
    %170 = vector.load %arg6[%c2_116, %c32_117] : memref<16x128xf32, #tpu.memory_space<vmem>>, vector<1x32xf32>
    tpu.vector_store %arg6[%c2_116, %c32_117], %169 {strides = array<i32>} : memref<16x128xf32, #tpu.memory_space<vmem>>, vector<1x32xf32>,
    %c8_i32_118 = arith.constant 8 : i32
    %171 = arith.addi %0, %c8_i32_118 : i32
    %c2_i32_119 = arith.constant 2 : i32
    %172 = arith.addi %171, %c2_i32_119 : i32
    %173 = arith.index_cast %172 : i32 to index
    %174 = memref.load %arg1[%173] : memref<256xi32, #tpu.memory_space<smem>>
    %c0_i32_120 = arith.constant 0 : i32
    %175 = arith.cmpi sge, %174, %c0_i32_120 : i32
    %c49_i32_121 = arith.constant 49 : i32
    %176 = arith.cmpi slt, %174, %c49_i32_121 : i32
    %177 = arith.andi %175, %176 : i1
    %true_122 = arith.constant true
    %178 = arith.xori %177, %true_122 : i1
    %false_123 = arith.constant false
    %179 = arith.ori %false_123, %178 : i1
    %false_124 = arith.constant false
    %c11_i32 = arith.constant 11 : i32
    %c-1_i32_125 = arith.constant -1 : i32
    %180 = arith.select %false_124, %c-1_i32_125, %c11_i32 : i32
    %c0_i32_126 = arith.constant 0 : i32
    %181 = arith.maxsi %174, %c0_i32_126 : i32
    %c48_i32_127 = arith.constant 48 : i32
    %182 = arith.minsi %181, %c48_i32_127 : i32
    %183 = arith.index_cast %182 : i32 to index
    %c0_128 = arith.constant 0 : index
    %184 = vector.load %arg2[%183, %c0_128] : memref<49x32xf32, #tpu.memory_space<vmem>>, vector<1x32xf32>
    %185 = vector.shape_cast %184 : vector<1x32xf32> to vector<32xf32>
    %186 = vector.shape_cast %185 : vector<32xf32> to vector<1x32xf32>
    %c2_129 = arith.constant 2 : index
    %c64_130 = arith.constant 64 : index
    %187 = vector.load %arg6[%c2_129, %c64_130] : memref<16x128xf32, #tpu.memory_space<vmem>>, vector<1x32xf32>
    tpu.vector_store %arg6[%c2_129, %c64_130], %186 {strides = array<i32>} : memref<16x128xf32, #tpu.memory_space<vmem>>, vector<1x32xf32>,
    %c8_i32_131 = arith.constant 8 : i32
    %188 = arith.addi %0, %c8_i32_131 : i32
    %c3_i32_132 = arith.constant 3 : i32
    %189 = arith.addi %188, %c3_i32_132 : i32
    %190 = arith.index_cast %189 : i32 to index
    %191 = memref.load %arg1[%190] : memref<256xi32, #tpu.memory_space<smem>>
    %c0_i32_133 = arith.constant 0 : i32
    %192 = arith.cmpi sge, %191, %c0_i32_133 : i32
    %c49_i32_134 = arith.constant 49 : i32
    %193 = arith.cmpi slt, %191, %c49_i32_134 : i32
    %194 = arith.andi %192, %193 : i1
    %true_135 = arith.constant true
    %195 = arith.xori %194, %true_135 : i1
    %false_136 = arith.constant false
    %196 = arith.ori %false_136, %195 : i1
    %false_137 = arith.constant false
    %c12_i32 = arith.constant 12 : i32
    %c-1_i32_138 = arith.constant -1 : i32
    %197 = arith.select %false_137, %c-1_i32_138, %c12_i32 : i32
    %c0_i32_139 = arith.constant 0 : i32
    %198 = arith.maxsi %191, %c0_i32_139 : i32
    %c48_i32_140 = arith.constant 48 : i32
    %199 = arith.minsi %198, %c48_i32_140 : i32
    %200 = arith.index_cast %199 : i32 to index
    %c0_141 = arith.constant 0 : index
    %201 = vector.load %arg2[%200, %c0_141] : memref<49x32xf32, #tpu.memory_space<vmem>>, vector<1x32xf32>
    %202 = vector.shape_cast %201 : vector<1x32xf32> to vector<32xf32>
    %203 = vector.shape_cast %202 : vector<32xf32> to vector<1x32xf32>
    %c2_142 = arith.constant 2 : index
    %c96_143 = arith.constant 96 : index
    %204 = vector.load %arg6[%c2_142, %c96_143] : memref<16x128xf32, #tpu.memory_space<vmem>>, vector<1x32xf32>
    tpu.vector_store %arg6[%c2_142, %c96_143], %203 {strides = array<i32>} : memref<16x128xf32, #tpu.memory_space<vmem>>, vector<1x32xf32>,
    %c12_i32_144 = arith.constant 12 : i32
    %205 = arith.addi %0, %c12_i32_144 : i32
    %c0_i32_145 = arith.constant 0 : i32
    %206 = arith.addi %205, %c0_i32_145 : i32
    %207 = arith.index_cast %206 : i32 to index
    %208 = memref.load %arg1[%207] : memref<256xi32, #tpu.memory_space<smem>>
    %c0_i32_146 = arith.constant 0 : i32
    %209 = arith.cmpi sge, %208, %c0_i32_146 : i32
    %c49_i32_147 = arith.constant 49 : i32
    %210 = arith.cmpi slt, %208, %c49_i32_147 : i32
    %211 = arith.andi %209, %210 : i1
    %true_148 = arith.constant true
    %212 = arith.xori %211, %true_148 : i1
    %false_149 = arith.constant false
    %213 = arith.ori %false_149, %212 : i1
    %false_150 = arith.constant false
    %c13_i32 = arith.constant 13 : i32
    %c-1_i32_151 = arith.constant -1 : i32
    %214 = arith.select %false_150, %c-1_i32_151, %c13_i32 : i32
    %c0_i32_152 = arith.constant 0 : i32
    %215 = arith.maxsi %208, %c0_i32_152 : i32
    %c48_i32_153 = arith.constant 48 : i32
    %216 = arith.minsi %215, %c48_i32_153 : i32
    %217 = arith.index_cast %216 : i32 to index
    %c0_154 = arith.constant 0 : index
    %218 = vector.load %arg2[%217, %c0_154] : memref<49x32xf32, #tpu.memory_space<vmem>>, vector<1x32xf32>
    %219 = vector.shape_cast %218 : vector<1x32xf32> to vector<32xf32>
    %220 = vector.shape_cast %219 : vector<32xf32> to vector<1x32xf32>
    %c3 = arith.constant 3 : index
    %c0_155 = arith.constant 0 : index
    %221 = vector.load %arg6[%c3, %c0_155] : memref<16x128xf32, #tpu.memory_space<vmem>>, vector<1x32xf32>
    tpu.vector_store %arg6[%c3, %c0_155], %220 {strides = array<i32>} : memref<16x128xf32, #tpu.memory_space<vmem>>, vector<1x32xf32>,
    %c12_i32_156 = arith.constant 12 : i32
    %222 = arith.addi %0, %c12_i32_156 : i32
    %c1_i32_157 = arith.constant 1 : i32
    %223 = arith.addi %222, %c1_i32_157 : i32
    %224 = arith.index_cast %223 : i32 to index
    %225 = memref.load %arg1[%224] : memref<256xi32, #tpu.memory_space<smem>>
    %c0_i32_158 = arith.constant 0 : i32
    %226 = arith.cmpi sge, %225, %c0_i32_158 : i32
    %c49_i32_159 = arith.constant 49 : i32
    %227 = arith.cmpi slt, %225, %c49_i32_159 : i32
    %228 = arith.andi %226, %227 : i1
    %true_160 = arith.constant true
    %229 = arith.xori %228, %true_160 : i1
    %false_161 = arith.constant false
    %230 = arith.ori %false_161, %229 : i1
    %false_162 = arith.constant false
    %c14_i32 = arith.constant 14 : i32
    %c-1_i32_163 = arith.constant -1 : i32
    %231 = arith.select %false_162, %c-1_i32_163, %c14_i32 : i32
    %c0_i32_164 = arith.constant 0 : i32
    %232 = arith.maxsi %225, %c0_i32_164 : i32
    %c48_i32_165 = arith.constant 48 : i32
    %233 = arith.minsi %232, %c48_i32_165 : i32
    %234 = arith.index_cast %233 : i32 to index
    %c0_166 = arith.constant 0 : index
    %235 = vector.load %arg2[%234, %c0_166] : memref<49x32xf32, #tpu.memory_space<vmem>>, vector<1x32xf32>
    %236 = vector.shape_cast %235 : vector<1x32xf32> to vector<32xf32>
    %237 = vector.shape_cast %236 : vector<32xf32> to vector<1x32xf32>
    %c3_167 = arith.constant 3 : index
    %c32_168 = arith.constant 32 : index
    %238 = vector.load %arg6[%c3_167, %c32_168] : memref<16x128xf32, #tpu.memory_space<vmem>>, vector<1x32xf32>
    tpu.vector_store %arg6[%c3_167, %c32_168], %237 {strides = array<i32>} : memref<16x128xf32, #tpu.memory_space<vmem>>, vector<1x32xf32>,
    %c12_i32_169 = arith.constant 12 : i32
    %239 = arith.addi %0, %c12_i32_169 : i32
    %c2_i32_170 = arith.constant 2 : i32
    %240 = arith.addi %239, %c2_i32_170 : i32
    %241 = arith.index_cast %240 : i32 to index
    %242 = memref.load %arg1[%241] : memref<256xi32, #tpu.memory_space<smem>>
    %c0_i32_171 = arith.constant 0 : i32
    %243 = arith.cmpi sge, %242, %c0_i32_171 : i32
    %c49_i32_172 = arith.constant 49 : i32
    %244 = arith.cmpi slt, %242, %c49_i32_172 : i32
    %245 = arith.andi %243, %244 : i1
    %true_173 = arith.constant true
    %246 = arith.xori %245, %true_173 : i1
    %false_174 = arith.constant false
    %247 = arith.ori %false_174, %246 : i1
    %false_175 = arith.constant false
    %c15_i32 = arith.constant 15 : i32
    %c-1_i32_176 = arith.constant -1 : i32
    %248 = arith.select %false_175, %c-1_i32_176, %c15_i32 : i32
    %c0_i32_177 = arith.constant 0 : i32
    %249 = arith.maxsi %242, %c0_i32_177 : i32
    %c48_i32_178 = arith.constant 48 : i32
    %250 = arith.minsi %249, %c48_i32_178 : i32
    %251 = arith.index_cast %250 : i32 to index
    %c0_179 = arith.constant 0 : index
    %252 = vector.load %arg2[%251, %c0_179] : memref<49x32xf32, #tpu.memory_space<vmem>>, vector<1x32xf32>
    %253 = vector.shape_cast %252 : vector<1x32xf32> to vector<32xf32>
    %254 = vector.shape_cast %253 : vector<32xf32> to vector<1x32xf32>
    %c3_180 = arith.constant 3 : index
    %c64_181 = arith.constant 64 : index
    %255 = vector.load %arg6[%c3_180, %c64_181] : memref<16x128xf32, #tpu.memory_space<vmem>>, vector<1x32xf32>
    tpu.vector_store %arg6[%c3_180, %c64_181], %254 {strides = array<i32>} : memref<16x128xf32, #tpu.memory_space<vmem>>, vector<1x32xf32>,
    %c12_i32_182 = arith.constant 12 : i32
    %256 = arith.addi %0, %c12_i32_182 : i32
    %c3_i32_183 = arith.constant 3 : i32
    %257 = arith.addi %256, %c3_i32_183 : i32
    %258 = arith.index_cast %257 : i32 to index
    %259 = memref.load %arg1[%258] : memref<256xi32, #tpu.memory_space<smem>>
    %c0_i32_184 = arith.constant 0 : i32
    %260 = arith.cmpi sge, %259, %c0_i32_184 : i32
    %c49_i32_185 = arith.constant 49 : i32
    %261 = arith.cmpi slt, %259, %c49_i32_185 : i32
    %262 = arith.andi %260, %261 : i1
    %true_186 = arith.constant true
    %263 = arith.xori %262, %true_186 : i1
    %false_187 = arith.constant false
    %264 = arith.ori %false_187, %263 : i1
    %false_188 = arith.constant false
    %c16_i32 = arith.constant 16 : i32
    %c-1_i32_189 = arith.constant -1 : i32
    %265 = arith.select %false_188, %c-1_i32_189, %c16_i32 : i32
    %c0_i32_190 = arith.constant 0 : i32
    %266 = arith.maxsi %259, %c0_i32_190 : i32
    %c48_i32_191 = arith.constant 48 : i32
    %267 = arith.minsi %266, %c48_i32_191 : i32
    %268 = arith.index_cast %267 : i32 to index
    %c0_192 = arith.constant 0 : index
    %269 = vector.load %arg2[%268, %c0_192] : memref<49x32xf32, #tpu.memory_space<vmem>>, vector<1x32xf32>
    %270 = vector.shape_cast %269 : vector<1x32xf32> to vector<32xf32>
    %271 = vector.shape_cast %270 : vector<32xf32> to vector<1x32xf32>
    %c3_193 = arith.constant 3 : index
    %c96_194 = arith.constant 96 : index
    %272 = vector.load %arg6[%c3_193, %c96_194] : memref<16x128xf32, #tpu.memory_space<vmem>>, vector<1x32xf32>
    tpu.vector_store %arg6[%c3_193, %c96_194], %271 {strides = array<i32>} : memref<16x128xf32, #tpu.memory_space<vmem>>, vector<1x32xf32>,
    %c16_i32_195 = arith.constant 16 : i32
    %273 = arith.addi %0, %c16_i32_195 : i32
    %c0_i32_196 = arith.constant 0 : i32
    %274 = arith.addi %273, %c0_i32_196 : i32
    %275 = arith.index_cast %274 : i32 to index
    %276 = memref.load %arg1[%275] : memref<256xi32, #tpu.memory_space<smem>>
    %c0_i32_197 = arith.constant 0 : i32
    %277 = arith.cmpi sge, %276, %c0_i32_197 : i32
    %c49_i32_198 = arith.constant 49 : i32
    %278 = arith.cmpi slt, %276, %c49_i32_198 : i32
    %279 = arith.andi %277, %278 : i1
    %true_199 = arith.constant true
    %280 = arith.xori %279, %true_199 : i1
    %false_200 = arith.constant false
    %281 = arith.ori %false_200, %280 : i1
    %false_201 = arith.constant false
    %c17_i32 = arith.constant 17 : i32
    %c-1_i32_202 = arith.constant -1 : i32
    %282 = arith.select %false_201, %c-1_i32_202, %c17_i32 : i32
    %c0_i32_203 = arith.constant 0 : i32
    %283 = arith.maxsi %276, %c0_i32_203 : i32
    %c48_i32_204 = arith.constant 48 : i32
    %284 = arith.minsi %283, %c48_i32_204 : i32
    %285 = arith.index_cast %284 : i32 to index
    %c0_205 = arith.constant 0 : index
    %286 = vector.load %arg2[%285, %c0_205] : memref<49x32xf32, #tpu.memory_space<vmem>>, vector<1x32xf32>
    %287 = vector.shape_cast %286 : vector<1x32xf32> to vector<32xf32>
    %288 = vector.shape_cast %287 : vector<32xf32> to vector<1x32xf32>
    %c4 = arith.constant 4 : index
    %c0_206 = arith.constant 0 : index
    %289 = vector.load %arg6[%c4, %c0_206] : memref<16x128xf32, #tpu.memory_space<vmem>>, vector<1x32xf32>
    tpu.vector_store %arg6[%c4, %c0_206], %288 {strides = array<i32>} : memref<16x128xf32, #tpu.memory_space<vmem>>, vector<1x32xf32>,
    %c16_i32_207 = arith.constant 16 : i32
    %290 = arith.addi %0, %c16_i32_207 : i32
    %c1_i32_208 = arith.constant 1 : i32
    %291 = arith.addi %290, %c1_i32_208 : i32
    %292 = arith.index_cast %291 : i32 to index
    %293 = memref.load %arg1[%292] : memref<256xi32, #tpu.memory_space<smem>>
    %c0_i32_209 = arith.constant 0 : i32
    %294 = arith.cmpi sge, %293, %c0_i32_209 : i32
    %c49_i32_210 = arith.constant 49 : i32
    %295 = arith.cmpi slt, %293, %c49_i32_210 : i32
    %296 = arith.andi %294, %295 : i1
    %true_211 = arith.constant true
    %297 = arith.xori %296, %true_211 : i1
    %false_212 = arith.constant false
    %298 = arith.ori %false_212, %297 : i1
    %false_213 = arith.constant false
    %c18_i32 = arith.constant 18 : i32
    %c-1_i32_214 = arith.constant -1 : i32
    %299 = arith.select %false_213, %c-1_i32_214, %c18_i32 : i32
    %c0_i32_215 = arith.constant 0 : i32
    %300 = arith.maxsi %293, %c0_i32_215 : i32
    %c48_i32_216 = arith.constant 48 : i32
    %301 = arith.minsi %300, %c48_i32_216 : i32
    %302 = arith.index_cast %301 : i32 to index
    %c0_217 = arith.constant 0 : index
    %303 = vector.load %arg2[%302, %c0_217] : memref<49x32xf32, #tpu.memory_space<vmem>>, vector<1x32xf32>
    %304 = vector.shape_cast %303 : vector<1x32xf32> to vector<32xf32>
    %305 = vector.shape_cast %304 : vector<32xf32> to vector<1x32xf32>
    %c4_218 = arith.constant 4 : index
    %c32_219 = arith.constant 32 : index
    %306 = vector.load %arg6[%c4_218, %c32_219] : memref<16x128xf32, #tpu.memory_space<vmem>>, vector<1x32xf32>
    tpu.vector_store %arg6[%c4_218, %c32_219], %305 {strides = array<i32>} : memref<16x128xf32, #tpu.memory_space<vmem>>, vector<1x32xf32>,
    %c16_i32_220 = arith.constant 16 : i32
    %307 = arith.addi %0, %c16_i32_220 : i32
    %c2_i32_221 = arith.constant 2 : i32
    %308 = arith.addi %307, %c2_i32_221 : i32
    %309 = arith.index_cast %308 : i32 to index
    %310 = memref.load %arg1[%309] : memref<256xi32, #tpu.memory_space<smem>>
    %c0_i32_222 = arith.constant 0 : i32
    %311 = arith.cmpi sge, %310, %c0_i32_222 : i32
    %c49_i32_223 = arith.constant 49 : i32
    %312 = arith.cmpi slt, %310, %c49_i32_223 : i32
    %313 = arith.andi %311, %312 : i1
    %true_224 = arith.constant true
    %314 = arith.xori %313, %true_224 : i1
    %false_225 = arith.constant false
    %315 = arith.ori %false_225, %314 : i1
    %false_226 = arith.constant false
    %c19_i32 = arith.constant 19 : i32
    %c-1_i32_227 = arith.constant -1 : i32
    %316 = arith.select %false_226, %c-1_i32_227, %c19_i32 : i32
    %c0_i32_228 = arith.constant 0 : i32
    %317 = arith.maxsi %310, %c0_i32_228 : i32
    %c48_i32_229 = arith.constant 48 : i32
    %318 = arith.minsi %317, %c48_i32_229 : i32
    %319 = arith.index_cast %318 : i32 to index
    %c0_230 = arith.constant 0 : index
    %320 = vector.load %arg2[%319, %c0_230] : memref<49x32xf32, #tpu.memory_space<vmem>>, vector<1x32xf32>
    %321 = vector.shape_cast %320 : vector<1x32xf32> to vector<32xf32>
    %322 = vector.shape_cast %321 : vector<32xf32> to vector<1x32xf32>
    %c4_231 = arith.constant 4 : index
    %c64_232 = arith.constant 64 : index
    %323 = vector.load %arg6[%c4_231, %c64_232] : memref<16x128xf32, #tpu.memory_space<vmem>>, vector<1x32xf32>
    tpu.vector_store %arg6[%c4_231, %c64_232], %322 {strides = array<i32>} : memref<16x128xf32, #tpu.memory_space<vmem>>, vector<1x32xf32>,
    %c16_i32_233 = arith.constant 16 : i32
    %324 = arith.addi %0, %c16_i32_233 : i32
    %c3_i32_234 = arith.constant 3 : i32
    %325 = arith.addi %324, %c3_i32_234 : i32
    %326 = arith.index_cast %325 : i32 to index
    %327 = memref.load %arg1[%326] : memref<256xi32, #tpu.memory_space<smem>>
    %c0_i32_235 = arith.constant 0 : i32
    %328 = arith.cmpi sge, %327, %c0_i32_235 : i32
    %c49_i32_236 = arith.constant 49 : i32
    %329 = arith.cmpi slt, %327, %c49_i32_236 : i32
    %330 = arith.andi %328, %329 : i1
    %true_237 = arith.constant true
    %331 = arith.xori %330, %true_237 : i1
    %false_238 = arith.constant false
    %332 = arith.ori %false_238, %331 : i1
    %false_239 = arith.constant false
    %c20_i32 = arith.constant 20 : i32
    %c-1_i32_240 = arith.constant -1 : i32
    %333 = arith.select %false_239, %c-1_i32_240, %c20_i32 : i32
    %c0_i32_241 = arith.constant 0 : i32
    %334 = arith.maxsi %327, %c0_i32_241 : i32
    %c48_i32_242 = arith.constant 48 : i32
    %335 = arith.minsi %334, %c48_i32_242 : i32
    %336 = arith.index_cast %335 : i32 to index
    %c0_243 = arith.constant 0 : index
    %337 = vector.load %arg2[%336, %c0_243] : memref<49x32xf32, #tpu.memory_space<vmem>>, vector<1x32xf32>
    %338 = vector.shape_cast %337 : vector<1x32xf32> to vector<32xf32>
    %339 = vector.shape_cast %338 : vector<32xf32> to vector<1x32xf32>
    %c4_244 = arith.constant 4 : index
    %c96_245 = arith.constant 96 : index
    %340 = vector.load %arg6[%c4_244, %c96_245] : memref<16x128xf32, #tpu.memory_space<vmem>>, vector<1x32xf32>
    tpu.vector_store %arg6[%c4_244, %c96_245], %339 {strides = array<i32>} : memref<16x128xf32, #tpu.memory_space<vmem>>, vector<1x32xf32>,
    %c20_i32_246 = arith.constant 20 : i32
    %341 = arith.addi %0, %c20_i32_246 : i32
    %c0_i32_247 = arith.constant 0 : i32
    %342 = arith.addi %341, %c0_i32_247 : i32
    %343 = arith.index_cast %342 : i32 to index
    %344 = memref.load %arg1[%343] : memref<256xi32, #tpu.memory_space<smem>>
    %c0_i32_248 = arith.constant 0 : i32
    %345 = arith.cmpi sge, %344, %c0_i32_248 : i32
    %c49_i32_249 = arith.constant 49 : i32
    %346 = arith.cmpi slt, %344, %c49_i32_249 : i32
    %347 = arith.andi %345, %346 : i1
    %true_250 = arith.constant true
    %348 = arith.xori %347, %true_250 : i1
    %false_251 = arith.constant false
    %349 = arith.ori %false_251, %348 : i1
    %false_252 = arith.constant false
    %c21_i32 = arith.constant 21 : i32
    %c-1_i32_253 = arith.constant -1 : i32
    %350 = arith.select %false_252, %c-1_i32_253, %c21_i32 : i32
    %c0_i32_254 = arith.constant 0 : i32
    %351 = arith.maxsi %344, %c0_i32_254 : i32
    %c48_i32_255 = arith.constant 48 : i32
    %352 = arith.minsi %351, %c48_i32_255 : i32
    %353 = arith.index_cast %352 : i32 to index
    %c0_256 = arith.constant 0 : index
    %354 = vector.load %arg2[%353, %c0_256] : memref<49x32xf32, #tpu.memory_space<vmem>>, vector<1x32xf32>
    %355 = vector.shape_cast %354 : vector<1x32xf32> to vector<32xf32>
    %356 = vector.shape_cast %355 : vector<32xf32> to vector<1x32xf32>
    %c5 = arith.constant 5 : index
    %c0_257 = arith.constant 0 : index
    %357 = vector.load %arg6[%c5, %c0_257] : memref<16x128xf32, #tpu.memory_space<vmem>>, vector<1x32xf32>
    tpu.vector_store %arg6[%c5, %c0_257], %356 {strides = array<i32>} : memref<16x128xf32, #tpu.memory_space<vmem>>, vector<1x32xf32>,
    %c20_i32_258 = arith.constant 20 : i32
    %358 = arith.addi %0, %c20_i32_258 : i32
    %c1_i32_259 = arith.constant 1 : i32
    %359 = arith.addi %358, %c1_i32_259 : i32
    %360 = arith.index_cast %359 : i32 to index
    %361 = memref.load %arg1[%360] : memref<256xi32, #tpu.memory_space<smem>>
    %c0_i32_260 = arith.constant 0 : i32
    %362 = arith.cmpi sge, %361, %c0_i32_260 : i32
    %c49_i32_261 = arith.constant 49 : i32
    %363 = arith.cmpi slt, %361, %c49_i32_261 : i32
    %364 = arith.andi %362, %363 : i1
    %true_262 = arith.constant true
    %365 = arith.xori %364, %true_262 : i1
    %false_263 = arith.constant false
    %366 = arith.ori %false_263, %365 : i1
    %false_264 = arith.constant false
    %c22_i32 = arith.constant 22 : i32
    %c-1_i32_265 = arith.constant -1 : i32
    %367 = arith.select %false_264, %c-1_i32_265, %c22_i32 : i32
    %c0_i32_266 = arith.constant 0 : i32
    %368 = arith.maxsi %361, %c0_i32_266 : i32
    %c48_i32_267 = arith.constant 48 : i32
    %369 = arith.minsi %368, %c48_i32_267 : i32
    %370 = arith.index_cast %369 : i32 to index
    %c0_268 = arith.constant 0 : index
    %371 = vector.load %arg2[%370, %c0_268] : memref<49x32xf32, #tpu.memory_space<vmem>>, vector<1x32xf32>
    %372 = vector.shape_cast %371 : vector<1x32xf32> to vector<32xf32>
    %373 = vector.shape_cast %372 : vector<32xf32> to vector<1x32xf32>
    %c5_269 = arith.constant 5 : index
    %c32_270 = arith.constant 32 : index
    %374 = vector.load %arg6[%c5_269, %c32_270] : memref<16x128xf32, #tpu.memory_space<vmem>>, vector<1x32xf32>
    tpu.vector_store %arg6[%c5_269, %c32_270], %373 {strides = array<i32>} : memref<16x128xf32, #tpu.memory_space<vmem>>, vector<1x32xf32>,
    %c20_i32_271 = arith.constant 20 : i32
    %375 = arith.addi %0, %c20_i32_271 : i32
    %c2_i32_272 = arith.constant 2 : i32
    %376 = arith.addi %375, %c2_i32_272 : i32
    %377 = arith.index_cast %376 : i32 to index
    %378 = memref.load %arg1[%377] : memref<256xi32, #tpu.memory_space<smem>>
    %c0_i32_273 = arith.constant 0 : i32
    %379 = arith.cmpi sge, %378, %c0_i32_273 : i32
    %c49_i32_274 = arith.constant 49 : i32
    %380 = arith.cmpi slt, %378, %c49_i32_274 : i32
    %381 = arith.andi %379, %380 : i1
    %true_275 = arith.constant true
    %382 = arith.xori %381, %true_275 : i1
    %false_276 = arith.constant false
    %383 = arith.ori %false_276, %382 : i1
    %false_277 = arith.constant false
    %c23_i32 = arith.constant 23 : i32
    %c-1_i32_278 = arith.constant -1 : i32
    %384 = arith.select %false_277, %c-1_i32_278, %c23_i32 : i32
    %c0_i32_279 = arith.constant 0 : i32
    %385 = arith.maxsi %378, %c0_i32_279 : i32
    %c48_i32_280 = arith.constant 48 : i32
    %386 = arith.minsi %385, %c48_i32_280 : i32
    %387 = arith.index_cast %386 : i32 to index
    %c0_281 = arith.constant 0 : index
    %388 = vector.load %arg2[%387, %c0_281] : memref<49x32xf32, #tpu.memory_space<vmem>>, vector<1x32xf32>
    %389 = vector.shape_cast %388 : vector<1x32xf32> to vector<32xf32>
    %390 = vector.shape_cast %389 : vector<32xf32> to vector<1x32xf32>
    %c5_282 = arith.constant 5 : index
    %c64_283 = arith.constant 64 : index
    %391 = vector.load %arg6[%c5_282, %c64_283] : memref<16x128xf32, #tpu.memory_space<vmem>>, vector<1x32xf32>
    tpu.vector_store %arg6[%c5_282, %c64_283], %390 {strides = array<i32>} : memref<16x128xf32, #tpu.memory_space<vmem>>, vector<1x32xf32>,
    %c20_i32_284 = arith.constant 20 : i32
    %392 = arith.addi %0, %c20_i32_284 : i32
    %c3_i32_285 = arith.constant 3 : i32
    %393 = arith.addi %392, %c3_i32_285 : i32
    %394 = arith.index_cast %393 : i32 to index
    %395 = memref.load %arg1[%394] : memref<256xi32, #tpu.memory_space<smem>>
    %c0_i32_286 = arith.constant 0 : i32
    %396 = arith.cmpi sge, %395, %c0_i32_286 : i32
    %c49_i32_287 = arith.constant 49 : i32
    %397 = arith.cmpi slt, %395, %c49_i32_287 : i32
    %398 = arith.andi %396, %397 : i1
    %true_288 = arith.constant true
    %399 = arith.xori %398, %true_288 : i1
    %false_289 = arith.constant false
    %400 = arith.ori %false_289, %399 : i1
    %false_290 = arith.constant false
    %c24_i32 = arith.constant 24 : i32
    %c-1_i32_291 = arith.constant -1 : i32
    %401 = arith.select %false_290, %c-1_i32_291, %c24_i32 : i32
    %c0_i32_292 = arith.constant 0 : i32
    %402 = arith.maxsi %395, %c0_i32_292 : i32
    %c48_i32_293 = arith.constant 48 : i32
    %403 = arith.minsi %402, %c48_i32_293 : i32
    %404 = arith.index_cast %403 : i32 to index
    %c0_294 = arith.constant 0 : index
    %405 = vector.load %arg2[%404, %c0_294] : memref<49x32xf32, #tpu.memory_space<vmem>>, vector<1x32xf32>
    %406 = vector.shape_cast %405 : vector<1x32xf32> to vector<32xf32>
    %407 = vector.shape_cast %406 : vector<32xf32> to vector<1x32xf32>
    %c5_295 = arith.constant 5 : index
    %c96_296 = arith.constant 96 : index
    %408 = vector.load %arg6[%c5_295, %c96_296] : memref<16x128xf32, #tpu.memory_space<vmem>>, vector<1x32xf32>
    tpu.vector_store %arg6[%c5_295, %c96_296], %407 {strides = array<i32>} : memref<16x128xf32, #tpu.memory_space<vmem>>, vector<1x32xf32>,
    %c24_i32_297 = arith.constant 24 : i32
    %409 = arith.addi %0, %c24_i32_297 : i32
    %c0_i32_298 = arith.constant 0 : i32
    %410 = arith.addi %409, %c0_i32_298 : i32
    %411 = arith.index_cast %410 : i32 to index
    %412 = memref.load %arg1[%411] : memref<256xi32, #tpu.memory_space<smem>>
    %c0_i32_299 = arith.constant 0 : i32
    %413 = arith.cmpi sge, %412, %c0_i32_299 : i32
    %c49_i32_300 = arith.constant 49 : i32
    %414 = arith.cmpi slt, %412, %c49_i32_300 : i32
    %415 = arith.andi %413, %414 : i1
    %true_301 = arith.constant true
    %416 = arith.xori %415, %true_301 : i1
    %false_302 = arith.constant false
    %417 = arith.ori %false_302, %416 : i1
    %false_303 = arith.constant false
    %c25_i32 = arith.constant 25 : i32
    %c-1_i32_304 = arith.constant -1 : i32
    %418 = arith.select %false_303, %c-1_i32_304, %c25_i32 : i32
    %c0_i32_305 = arith.constant 0 : i32
    %419 = arith.maxsi %412, %c0_i32_305 : i32
    %c48_i32_306 = arith.constant 48 : i32
    %420 = arith.minsi %419, %c48_i32_306 : i32
    %421 = arith.index_cast %420 : i32 to index
    %c0_307 = arith.constant 0 : index
    %422 = vector.load %arg2[%421, %c0_307] : memref<49x32xf32, #tpu.memory_space<vmem>>, vector<1x32xf32>
    %423 = vector.shape_cast %422 : vector<1x32xf32> to vector<32xf32>
    %424 = vector.shape_cast %423 : vector<32xf32> to vector<1x32xf32>
    %c6 = arith.constant 6 : index
    %c0_308 = arith.constant 0 : index
    %425 = vector.load %arg6[%c6, %c0_308] : memref<16x128xf32, #tpu.memory_space<vmem>>, vector<1x32xf32>
    tpu.vector_store %arg6[%c6, %c0_308], %424 {strides = array<i32>} : memref<16x128xf32, #tpu.memory_space<vmem>>, vector<1x32xf32>,
    %c24_i32_309 = arith.constant 24 : i32
    %426 = arith.addi %0, %c24_i32_309 : i32
    %c1_i32_310 = arith.constant 1 : i32
    %427 = arith.addi %426, %c1_i32_310 : i32
    %428 = arith.index_cast %427 : i32 to index
    %429 = memref.load %arg1[%428] : memref<256xi32, #tpu.memory_space<smem>>
    %c0_i32_311 = arith.constant 0 : i32
    %430 = arith.cmpi sge, %429, %c0_i32_311 : i32
    %c49_i32_312 = arith.constant 49 : i32
    %431 = arith.cmpi slt, %429, %c49_i32_312 : i32
    %432 = arith.andi %430, %431 : i1
    %true_313 = arith.constant true
    %433 = arith.xori %432, %true_313 : i1
    %false_314 = arith.constant false
    %434 = arith.ori %false_314, %433 : i1
    %false_315 = arith.constant false
    %c26_i32 = arith.constant 26 : i32
    %c-1_i32_316 = arith.constant -1 : i32
    %435 = arith.select %false_315, %c-1_i32_316, %c26_i32 : i32
    %c0_i32_317 = arith.constant 0 : i32
    %436 = arith.maxsi %429, %c0_i32_317 : i32
    %c48_i32_318 = arith.constant 48 : i32
    %437 = arith.minsi %436, %c48_i32_318 : i32
    %438 = arith.index_cast %437 : i32 to index
    %c0_319 = arith.constant 0 : index
    %439 = vector.load %arg2[%438, %c0_319] : memref<49x32xf32, #tpu.memory_space<vmem>>, vector<1x32xf32>
    %440 = vector.shape_cast %439 : vector<1x32xf32> to vector<32xf32>
    %441 = vector.shape_cast %440 : vector<32xf32> to vector<1x32xf32>
    %c6_320 = arith.constant 6 : index
    %c32_321 = arith.constant 32 : index
    %442 = vector.load %arg6[%c6_320, %c32_321] : memref<16x128xf32, #tpu.memory_space<vmem>>, vector<1x32xf32>
    tpu.vector_store %arg6[%c6_320, %c32_321], %441 {strides = array<i32>} : memref<16x128xf32, #tpu.memory_space<vmem>>, vector<1x32xf32>,
    %c24_i32_322 = arith.constant 24 : i32
    %443 = arith.addi %0, %c24_i32_322 : i32
    %c2_i32_323 = arith.constant 2 : i32
    %444 = arith.addi %443, %c2_i32_323 : i32
    %445 = arith.index_cast %444 : i32 to index
    %446 = memref.load %arg1[%445] : memref<256xi32, #tpu.memory_space<smem>>
    %c0_i32_324 = arith.constant 0 : i32
    %447 = arith.cmpi sge, %446, %c0_i32_324 : i32
    %c49_i32_325 = arith.constant 49 : i32
    %448 = arith.cmpi slt, %446, %c49_i32_325 : i32
    %449 = arith.andi %447, %448 : i1
    %true_326 = arith.constant true
    %450 = arith.xori %449, %true_326 : i1
    %false_327 = arith.constant false
    %451 = arith.ori %false_327, %450 : i1
    %false_328 = arith.constant false
    %c27_i32 = arith.constant 27 : i32
    %c-1_i32_329 = arith.constant -1 : i32
    %452 = arith.select %false_328, %c-1_i32_329, %c27_i32 : i32
    %c0_i32_330 = arith.constant 0 : i32
    %453 = arith.maxsi %446, %c0_i32_330 : i32
    %c48_i32_331 = arith.constant 48 : i32
    %454 = arith.minsi %453, %c48_i32_331 : i32
    %455 = arith.index_cast %454 : i32 to index
    %c0_332 = arith.constant 0 : index
    %456 = vector.load %arg2[%455, %c0_332] : memref<49x32xf32, #tpu.memory_space<vmem>>, vector<1x32xf32>
    %457 = vector.shape_cast %456 : vector<1x32xf32> to vector<32xf32>
    %458 = vector.shape_cast %457 : vector<32xf32> to vector<1x32xf32>
    %c6_333 = arith.constant 6 : index
    %c64_334 = arith.constant 64 : index
    %459 = vector.load %arg6[%c6_333, %c64_334] : memref<16x128xf32, #tpu.memory_space<vmem>>, vector<1x32xf32>
    tpu.vector_store %arg6[%c6_333, %c64_334], %458 {strides = array<i32>} : memref<16x128xf32, #tpu.memory_space<vmem>>, vector<1x32xf32>,
    %c24_i32_335 = arith.constant 24 : i32
    %460 = arith.addi %0, %c24_i32_335 : i32
    %c3_i32_336 = arith.constant 3 : i32
    %461 = arith.addi %460, %c3_i32_336 : i32
    %462 = arith.index_cast %461 : i32 to index
    %463 = memref.load %arg1[%462] : memref<256xi32, #tpu.memory_space<smem>>
    %c0_i32_337 = arith.constant 0 : i32
    %464 = arith.cmpi sge, %463, %c0_i32_337 : i32
    %c49_i32_338 = arith.constant 49 : i32
    %465 = arith.cmpi slt, %463, %c49_i32_338 : i32
    %466 = arith.andi %464, %465 : i1
    %true_339 = arith.constant true
    %467 = arith.xori %466, %true_339 : i1
    %false_340 = arith.constant false
    %468 = arith.ori %false_340, %467 : i1
    %false_341 = arith.constant false
    %c28_i32 = arith.constant 28 : i32
    %c-1_i32_342 = arith.constant -1 : i32
    %469 = arith.select %false_341, %c-1_i32_342, %c28_i32 : i32
    %c0_i32_343 = arith.constant 0 : i32
    %470 = arith.maxsi %463, %c0_i32_343 : i32
    %c48_i32_344 = arith.constant 48 : i32
    %471 = arith.minsi %470, %c48_i32_344 : i32
    %472 = arith.index_cast %471 : i32 to index
    %c0_345 = arith.constant 0 : index
    %473 = vector.load %arg2[%472, %c0_345] : memref<49x32xf32, #tpu.memory_space<vmem>>, vector<1x32xf32>
    %474 = vector.shape_cast %473 : vector<1x32xf32> to vector<32xf32>
    %475 = vector.shape_cast %474 : vector<32xf32> to vector<1x32xf32>
    %c6_346 = arith.constant 6 : index
    %c96_347 = arith.constant 96 : index
    %476 = vector.load %arg6[%c6_346, %c96_347] : memref<16x128xf32, #tpu.memory_space<vmem>>, vector<1x32xf32>
    tpu.vector_store %arg6[%c6_346, %c96_347], %475 {strides = array<i32>} : memref<16x128xf32, #tpu.memory_space<vmem>>, vector<1x32xf32>,
    %c28_i32_348 = arith.constant 28 : i32
    %477 = arith.addi %0, %c28_i32_348 : i32
    %c0_i32_349 = arith.constant 0 : i32
    %478 = arith.addi %477, %c0_i32_349 : i32
    %479 = arith.index_cast %478 : i32 to index
    %480 = memref.load %arg1[%479] : memref<256xi32, #tpu.memory_space<smem>>
    %c0_i32_350 = arith.constant 0 : i32
    %481 = arith.cmpi sge, %480, %c0_i32_350 : i32
    %c49_i32_351 = arith.constant 49 : i32
    %482 = arith.cmpi slt, %480, %c49_i32_351 : i32
    %483 = arith.andi %481, %482 : i1
    %true_352 = arith.constant true
    %484 = arith.xori %483, %true_352 : i1
    %false_353 = arith.constant false
    %485 = arith.ori %false_353, %484 : i1
    %false_354 = arith.constant false
    %c29_i32 = arith.constant 29 : i32
    %c-1_i32_355 = arith.constant -1 : i32
    %486 = arith.select %false_354, %c-1_i32_355, %c29_i32 : i32
    %c0_i32_356 = arith.constant 0 : i32
    %487 = arith.maxsi %480, %c0_i32_356 : i32
    %c48_i32_357 = arith.constant 48 : i32
    %488 = arith.minsi %487, %c48_i32_357 : i32
    %489 = arith.index_cast %488 : i32 to index
    %c0_358 = arith.constant 0 : index
    %490 = vector.load %arg2[%489, %c0_358] : memref<49x32xf32, #tpu.memory_space<vmem>>, vector<1x32xf32>
    %491 = vector.shape_cast %490 : vector<1x32xf32> to vector<32xf32>
    %492 = vector.shape_cast %491 : vector<32xf32> to vector<1x32xf32>
    %c7 = arith.constant 7 : index
    %c0_359 = arith.constant 0 : index
    %493 = vector.load %arg6[%c7, %c0_359] : memref<16x128xf32, #tpu.memory_space<vmem>>, vector<1x32xf32>
    tpu.vector_store %arg6[%c7, %c0_359], %492 {strides = array<i32>} : memref<16x128xf32, #tpu.memory_space<vmem>>, vector<1x32xf32>,
    %c28_i32_360 = arith.constant 28 : i32
    %494 = arith.addi %0, %c28_i32_360 : i32
    %c1_i32_361 = arith.constant 1 : i32
    %495 = arith.addi %494, %c1_i32_361 : i32
    %496 = arith.index_cast %495 : i32 to index
    %497 = memref.load %arg1[%496] : memref<256xi32, #tpu.memory_space<smem>>
    %c0_i32_362 = arith.constant 0 : i32
    %498 = arith.cmpi sge, %497, %c0_i32_362 : i32
    %c49_i32_363 = arith.constant 49 : i32
    %499 = arith.cmpi slt, %497, %c49_i32_363 : i32
    %500 = arith.andi %498, %499 : i1
    %true_364 = arith.constant true
    %501 = arith.xori %500, %true_364 : i1
    %false_365 = arith.constant false
    %502 = arith.ori %false_365, %501 : i1
    %false_366 = arith.constant false
    %c30_i32 = arith.constant 30 : i32
    %c-1_i32_367 = arith.constant -1 : i32
    %503 = arith.select %false_366, %c-1_i32_367, %c30_i32 : i32
    %c0_i32_368 = arith.constant 0 : i32
    %504 = arith.maxsi %497, %c0_i32_368 : i32
    %c48_i32_369 = arith.constant 48 : i32
    %505 = arith.minsi %504, %c48_i32_369 : i32
    %506 = arith.index_cast %505 : i32 to index
    %c0_370 = arith.constant 0 : index
    %507 = vector.load %arg2[%506, %c0_370] : memref<49x32xf32, #tpu.memory_space<vmem>>, vector<1x32xf32>
    %508 = vector.shape_cast %507 : vector<1x32xf32> to vector<32xf32>
    %509 = vector.shape_cast %508 : vector<32xf32> to vector<1x32xf32>
    %c7_371 = arith.constant 7 : index
    %c32_372 = arith.constant 32 : index
    %510 = vector.load %arg6[%c7_371, %c32_372] : memref<16x128xf32, #tpu.memory_space<vmem>>, vector<1x32xf32>
    tpu.vector_store %arg6[%c7_371, %c32_372], %509 {strides = array<i32>} : memref<16x128xf32, #tpu.memory_space<vmem>>, vector<1x32xf32>,
    %c28_i32_373 = arith.constant 28 : i32
    %511 = arith.addi %0, %c28_i32_373 : i32
    %c2_i32_374 = arith.constant 2 : i32
    %512 = arith.addi %511, %c2_i32_374 : i32
    %513 = arith.index_cast %512 : i32 to index
    %514 = memref.load %arg1[%513] : memref<256xi32, #tpu.memory_space<smem>>
    %c0_i32_375 = arith.constant 0 : i32
    %515 = arith.cmpi sge, %514, %c0_i32_375 : i32
    %c49_i32_376 = arith.constant 49 : i32
    %516 = arith.cmpi slt, %514, %c49_i32_376 : i32
    %517 = arith.andi %515, %516 : i1
    %true_377 = arith.constant true
    %518 = arith.xori %517, %true_377 : i1
    %false_378 = arith.constant false
    %519 = arith.ori %false_378, %518 : i1
    %false_379 = arith.constant false
    %c31_i32 = arith.constant 31 : i32
    %c-1_i32_380 = arith.constant -1 : i32
    %520 = arith.select %false_379, %c-1_i32_380, %c31_i32 : i32
    %c0_i32_381 = arith.constant 0 : i32
    %521 = arith.maxsi %514, %c0_i32_381 : i32
    %c48_i32_382 = arith.constant 48 : i32
    %522 = arith.minsi %521, %c48_i32_382 : i32
    %523 = arith.index_cast %522 : i32 to index
    %c0_383 = arith.constant 0 : index
    %524 = vector.load %arg2[%523, %c0_383] : memref<49x32xf32, #tpu.memory_space<vmem>>, vector<1x32xf32>
    %525 = vector.shape_cast %524 : vector<1x32xf32> to vector<32xf32>
    %526 = vector.shape_cast %525 : vector<32xf32> to vector<1x32xf32>
    %c7_384 = arith.constant 7 : index
    %c64_385 = arith.constant 64 : index
    %527 = vector.load %arg6[%c7_384, %c64_385] : memref<16x128xf32, #tpu.memory_space<vmem>>, vector<1x32xf32>
    tpu.vector_store %arg6[%c7_384, %c64_385], %526 {strides = array<i32>} : memref<16x128xf32, #tpu.memory_space<vmem>>, vector<1x32xf32>,
    %c28_i32_386 = arith.constant 28 : i32
    %528 = arith.addi %0, %c28_i32_386 : i32
    %c3_i32_387 = arith.constant 3 : i32
    %529 = arith.addi %528, %c3_i32_387 : i32
    %530 = arith.index_cast %529 : i32 to index
    %531 = memref.load %arg1[%530] : memref<256xi32, #tpu.memory_space<smem>>
    %c0_i32_388 = arith.constant 0 : i32
    %532 = arith.cmpi sge, %531, %c0_i32_388 : i32
    %c49_i32_389 = arith.constant 49 : i32
    %533 = arith.cmpi slt, %531, %c49_i32_389 : i32
    %534 = arith.andi %532, %533 : i1
    %true_390 = arith.constant true
    %535 = arith.xori %534, %true_390 : i1
    %false_391 = arith.constant false
    %536 = arith.ori %false_391, %535 : i1
    %false_392 = arith.constant false
    %c32_i32 = arith.constant 32 : i32
    %c-1_i32_393 = arith.constant -1 : i32
    %537 = arith.select %false_392, %c-1_i32_393, %c32_i32 : i32
    %c0_i32_394 = arith.constant 0 : i32
    %538 = arith.maxsi %531, %c0_i32_394 : i32
    %c48_i32_395 = arith.constant 48 : i32
    %539 = arith.minsi %538, %c48_i32_395 : i32
    %540 = arith.index_cast %539 : i32 to index
    %c0_396 = arith.constant 0 : index
    %541 = vector.load %arg2[%540, %c0_396] : memref<49x32xf32, #tpu.memory_space<vmem>>, vector<1x32xf32>
    %542 = vector.shape_cast %541 : vector<1x32xf32> to vector<32xf32>
    %543 = vector.shape_cast %542 : vector<32xf32> to vector<1x32xf32>
    %c7_397 = arith.constant 7 : index
    %c96_398 = arith.constant 96 : index
    %544 = vector.load %arg6[%c7_397, %c96_398] : memref<16x128xf32, #tpu.memory_space<vmem>>, vector<1x32xf32>
    tpu.vector_store %arg6[%c7_397, %c96_398], %543 {strides = array<i32>} : memref<16x128xf32, #tpu.memory_space<vmem>>, vector<1x32xf32>,
    %c32_i32_399 = arith.constant 32 : i32
    %545 = arith.addi %0, %c32_i32_399 : i32
    %c0_i32_400 = arith.constant 0 : i32
    %546 = arith.addi %545, %c0_i32_400 : i32
    %547 = arith.index_cast %546 : i32 to index
    %548 = memref.load %arg1[%547] : memref<256xi32, #tpu.memory_space<smem>>
    %c0_i32_401 = arith.constant 0 : i32
    %549 = arith.cmpi sge, %548, %c0_i32_401 : i32
    %c49_i32_402 = arith.constant 49 : i32
    %550 = arith.cmpi slt, %548, %c49_i32_402 : i32
    %551 = arith.andi %549, %550 : i1
    %true_403 = arith.constant true
    %552 = arith.xori %551, %true_403 : i1
    %false_404 = arith.constant false
    %553 = arith.ori %false_404, %552 : i1
    %false_405 = arith.constant false
    %c33_i32 = arith.constant 33 : i32
    %c-1_i32_406 = arith.constant -1 : i32
    %554 = arith.select %false_405, %c-1_i32_406, %c33_i32 : i32
    %c0_i32_407 = arith.constant 0 : i32
    %555 = arith.maxsi %548, %c0_i32_407 : i32
    %c48_i32_408 = arith.constant 48 : i32
    %556 = arith.minsi %555, %c48_i32_408 : i32
    %557 = arith.index_cast %556 : i32 to index
    %c0_409 = arith.constant 0 : index
    %558 = vector.load %arg2[%557, %c0_409] : memref<49x32xf32, #tpu.memory_space<vmem>>, vector<1x32xf32>
    %559 = vector.shape_cast %558 : vector<1x32xf32> to vector<32xf32>
    %560 = vector.shape_cast %559 : vector<32xf32> to vector<1x32xf32>
    %c8 = arith.constant 8 : index
    %c0_410 = arith.constant 0 : index
    %561 = vector.load %arg6[%c8, %c0_410] : memref<16x128xf32, #tpu.memory_space<vmem>>, vector<1x32xf32>
    tpu.vector_store %arg6[%c8, %c0_410], %560 {strides = array<i32>} : memref<16x128xf32, #tpu.memory_space<vmem>>, vector<1x32xf32>,
    %c32_i32_411 = arith.constant 32 : i32
    %562 = arith.addi %0, %c32_i32_411 : i32
    %c1_i32_412 = arith.constant 1 : i32
    %563 = arith.addi %562, %c1_i32_412 : i32
    %564 = arith.index_cast %563 : i32 to index
    %565 = memref.load %arg1[%564] : memref<256xi32, #tpu.memory_space<smem>>
    %c0_i32_413 = arith.constant 0 : i32
    %566 = arith.cmpi sge, %565, %c0_i32_413 : i32
    %c49_i32_414 = arith.constant 49 : i32
    %567 = arith.cmpi slt, %565, %c49_i32_414 : i32
    %568 = arith.andi %566, %567 : i1
    %true_415 = arith.constant true
    %569 = arith.xori %568, %true_415 : i1
    %false_416 = arith.constant false
    %570 = arith.ori %false_416, %569 : i1
    %false_417 = arith.constant false
    %c34_i32 = arith.constant 34 : i32
    %c-1_i32_418 = arith.constant -1 : i32
    %571 = arith.select %false_417, %c-1_i32_418, %c34_i32 : i32
    %c0_i32_419 = arith.constant 0 : i32
    %572 = arith.maxsi %565, %c0_i32_419 : i32
    %c48_i32_420 = arith.constant 48 : i32
    %573 = arith.minsi %572, %c48_i32_420 : i32
    %574 = arith.index_cast %573 : i32 to index
    %c0_421 = arith.constant 0 : index
    %575 = vector.load %arg2[%574, %c0_421] : memref<49x32xf32, #tpu.memory_space<vmem>>, vector<1x32xf32>
    %576 = vector.shape_cast %575 : vector<1x32xf32> to vector<32xf32>
    %577 = vector.shape_cast %576 : vector<32xf32> to vector<1x32xf32>
    %c8_422 = arith.constant 8 : index
    %c32_423 = arith.constant 32 : index
    %578 = vector.load %arg6[%c8_422, %c32_423] : memref<16x128xf32, #tpu.memory_space<vmem>>, vector<1x32xf32>
    tpu.vector_store %arg6[%c8_422, %c32_423], %577 {strides = array<i32>} : memref<16x128xf32, #tpu.memory_space<vmem>>, vector<1x32xf32>,
    %c32_i32_424 = arith.constant 32 : i32
    %579 = arith.addi %0, %c32_i32_424 : i32
    %c2_i32_425 = arith.constant 2 : i32
    %580 = arith.addi %579, %c2_i32_425 : i32
    %581 = arith.index_cast %580 : i32 to index
    %582 = memref.load %arg1[%581] : memref<256xi32, #tpu.memory_space<smem>>
    %c0_i32_426 = arith.constant 0 : i32
    %583 = arith.cmpi sge, %582, %c0_i32_426 : i32
    %c49_i32_427 = arith.constant 49 : i32
    %584 = arith.cmpi slt, %582, %c49_i32_427 : i32
    %585 = arith.andi %583, %584 : i1
    %true_428 = arith.constant true
    %586 = arith.xori %585, %true_428 : i1
    %false_429 = arith.constant false
    %587 = arith.ori %false_429, %586 : i1
    %false_430 = arith.constant false
    %c35_i32 = arith.constant 35 : i32
    %c-1_i32_431 = arith.constant -1 : i32
    %588 = arith.select %false_430, %c-1_i32_431, %c35_i32 : i32
    %c0_i32_432 = arith.constant 0 : i32
    %589 = arith.maxsi %582, %c0_i32_432 : i32
    %c48_i32_433 = arith.constant 48 : i32
    %590 = arith.minsi %589, %c48_i32_433 : i32
    %591 = arith.index_cast %590 : i32 to index
    %c0_434 = arith.constant 0 : index
    %592 = vector.load %arg2[%591, %c0_434] : memref<49x32xf32, #tpu.memory_space<vmem>>, vector<1x32xf32>
    %593 = vector.shape_cast %592 : vector<1x32xf32> to vector<32xf32>
    %594 = vector.shape_cast %593 : vector<32xf32> to vector<1x32xf32>
    %c8_435 = arith.constant 8 : index
    %c64_436 = arith.constant 64 : index
    %595 = vector.load %arg6[%c8_435, %c64_436] : memref<16x128xf32, #tpu.memory_space<vmem>>, vector<1x32xf32>
    tpu.vector_store %arg6[%c8_435, %c64_436], %594 {strides = array<i32>} : memref<16x128xf32, #tpu.memory_space<vmem>>, vector<1x32xf32>,
    %c32_i32_437 = arith.constant 32 : i32
    %596 = arith.addi %0, %c32_i32_437 : i32
    %c3_i32_438 = arith.constant 3 : i32
    %597 = arith.addi %596, %c3_i32_438 : i32
    %598 = arith.index_cast %597 : i32 to index
    %599 = memref.load %arg1[%598] : memref<256xi32, #tpu.memory_space<smem>>
    %c0_i32_439 = arith.constant 0 : i32
    %600 = arith.cmpi sge, %599, %c0_i32_439 : i32
    %c49_i32_440 = arith.constant 49 : i32
    %601 = arith.cmpi slt, %599, %c49_i32_440 : i32
    %602 = arith.andi %600, %601 : i1
    %true_441 = arith.constant true
    %603 = arith.xori %602, %true_441 : i1
    %false_442 = arith.constant false
    %604 = arith.ori %false_442, %603 : i1
    %false_443 = arith.constant false
    %c36_i32 = arith.constant 36 : i32
    %c-1_i32_444 = arith.constant -1 : i32
    %605 = arith.select %false_443, %c-1_i32_444, %c36_i32 : i32
    %c0_i32_445 = arith.constant 0 : i32
    %606 = arith.maxsi %599, %c0_i32_445 : i32
    %c48_i32_446 = arith.constant 48 : i32
    %607 = arith.minsi %606, %c48_i32_446 : i32
    %608 = arith.index_cast %607 : i32 to index
    %c0_447 = arith.constant 0 : index
    %609 = vector.load %arg2[%608, %c0_447] : memref<49x32xf32, #tpu.memory_space<vmem>>, vector<1x32xf32>
    %610 = vector.shape_cast %609 : vector<1x32xf32> to vector<32xf32>
    %611 = vector.shape_cast %610 : vector<32xf32> to vector<1x32xf32>
    %c8_448 = arith.constant 8 : index
    %c96_449 = arith.constant 96 : index
    %612 = vector.load %arg6[%c8_448, %c96_449] : memref<16x128xf32, #tpu.memory_space<vmem>>, vector<1x32xf32>
    tpu.vector_store %arg6[%c8_448, %c96_449], %611 {strides = array<i32>} : memref<16x128xf32, #tpu.memory_space<vmem>>, vector<1x32xf32>,
    %c36_i32_450 = arith.constant 36 : i32
    %613 = arith.addi %0, %c36_i32_450 : i32
    %c0_i32_451 = arith.constant 0 : i32
    %614 = arith.addi %613, %c0_i32_451 : i32
    %615 = arith.index_cast %614 : i32 to index
    %616 = memref.load %arg1[%615] : memref<256xi32, #tpu.memory_space<smem>>
    %c0_i32_452 = arith.constant 0 : i32
    %617 = arith.cmpi sge, %616, %c0_i32_452 : i32
    %c49_i32_453 = arith.constant 49 : i32
    %618 = arith.cmpi slt, %616, %c49_i32_453 : i32
    %619 = arith.andi %617, %618 : i1
    %true_454 = arith.constant true
    %620 = arith.xori %619, %true_454 : i1
    %false_455 = arith.constant false
    %621 = arith.ori %false_455, %620 : i1
    %false_456 = arith.constant false
    %c37_i32 = arith.constant 37 : i32
    %c-1_i32_457 = arith.constant -1 : i32
    %622 = arith.select %false_456, %c-1_i32_457, %c37_i32 : i32
    %c0_i32_458 = arith.constant 0 : i32
    %623 = arith.maxsi %616, %c0_i32_458 : i32
    %c48_i32_459 = arith.constant 48 : i32
    %624 = arith.minsi %623, %c48_i32_459 : i32
    %625 = arith.index_cast %624 : i32 to index
    %c0_460 = arith.constant 0 : index
    %626 = vector.load %arg2[%625, %c0_460] : memref<49x32xf32, #tpu.memory_space<vmem>>, vector<1x32xf32>
    %627 = vector.shape_cast %626 : vector<1x32xf32> to vector<32xf32>
    %628 = vector.shape_cast %627 : vector<32xf32> to vector<1x32xf32>
    %c9 = arith.constant 9 : index
    %c0_461 = arith.constant 0 : index
    %629 = vector.load %arg6[%c9, %c0_461] : memref<16x128xf32, #tpu.memory_space<vmem>>, vector<1x32xf32>
    tpu.vector_store %arg6[%c9, %c0_461], %628 {strides = array<i32>} : memref<16x128xf32, #tpu.memory_space<vmem>>, vector<1x32xf32>,
    %c36_i32_462 = arith.constant 36 : i32
    %630 = arith.addi %0, %c36_i32_462 : i32
    %c1_i32_463 = arith.constant 1 : i32
    %631 = arith.addi %630, %c1_i32_463 : i32
    %632 = arith.index_cast %631 : i32 to index
    %633 = memref.load %arg1[%632] : memref<256xi32, #tpu.memory_space<smem>>
    %c0_i32_464 = arith.constant 0 : i32
    %634 = arith.cmpi sge, %633, %c0_i32_464 : i32
    %c49_i32_465 = arith.constant 49 : i32
    %635 = arith.cmpi slt, %633, %c49_i32_465 : i32
    %636 = arith.andi %634, %635 : i1
    %true_466 = arith.constant true
    %637 = arith.xori %636, %true_466 : i1
    %false_467 = arith.constant false
    %638 = arith.ori %false_467, %637 : i1
    %false_468 = arith.constant false
    %c38_i32 = arith.constant 38 : i32
    %c-1_i32_469 = arith.constant -1 : i32
    %639 = arith.select %false_468, %c-1_i32_469, %c38_i32 : i32
    %c0_i32_470 = arith.constant 0 : i32
    %640 = arith.maxsi %633, %c0_i32_470 : i32
    %c48_i32_471 = arith.constant 48 : i32
    %641 = arith.minsi %640, %c48_i32_471 : i32
    %642 = arith.index_cast %641 : i32 to index
    %c0_472 = arith.constant 0 : index
    %643 = vector.load %arg2[%642, %c0_472] : memref<49x32xf32, #tpu.memory_space<vmem>>, vector<1x32xf32>
    %644 = vector.shape_cast %643 : vector<1x32xf32> to vector<32xf32>
    %645 = vector.shape_cast %644 : vector<32xf32> to vector<1x32xf32>
    %c9_473 = arith.constant 9 : index
    %c32_474 = arith.constant 32 : index
    %646 = vector.load %arg6[%c9_473, %c32_474] : memref<16x128xf32, #tpu.memory_space<vmem>>, vector<1x32xf32>
    tpu.vector_store %arg6[%c9_473, %c32_474], %645 {strides = array<i32>} : memref<16x128xf32, #tpu.memory_space<vmem>>, vector<1x32xf32>,
    %c36_i32_475 = arith.constant 36 : i32
    %647 = arith.addi %0, %c36_i32_475 : i32
    %c2_i32_476 = arith.constant 2 : i32
    %648 = arith.addi %647, %c2_i32_476 : i32
    %649 = arith.index_cast %648 : i32 to index
    %650 = memref.load %arg1[%649] : memref<256xi32, #tpu.memory_space<smem>>
    %c0_i32_477 = arith.constant 0 : i32
    %651 = arith.cmpi sge, %650, %c0_i32_477 : i32
    %c49_i32_478 = arith.constant 49 : i32
    %652 = arith.cmpi slt, %650, %c49_i32_478 : i32
    %653 = arith.andi %651, %652 : i1
    %true_479 = arith.constant true
    %654 = arith.xori %653, %true_479 : i1
    %false_480 = arith.constant false
    %655 = arith.ori %false_480, %654 : i1
    %false_481 = arith.constant false
    %c39_i32 = arith.constant 39 : i32
    %c-1_i32_482 = arith.constant -1 : i32
    %656 = arith.select %false_481, %c-1_i32_482, %c39_i32 : i32
    %c0_i32_483 = arith.constant 0 : i32
    %657 = arith.maxsi %650, %c0_i32_483 : i32
    %c48_i32_484 = arith.constant 48 : i32
    %658 = arith.minsi %657, %c48_i32_484 : i32
    %659 = arith.index_cast %658 : i32 to index
    %c0_485 = arith.constant 0 : index
    %660 = vector.load %arg2[%659, %c0_485] : memref<49x32xf32, #tpu.memory_space<vmem>>, vector<1x32xf32>
    %661 = vector.shape_cast %660 : vector<1x32xf32> to vector<32xf32>
    %662 = vector.shape_cast %661 : vector<32xf32> to vector<1x32xf32>
    %c9_486 = arith.constant 9 : index
    %c64_487 = arith.constant 64 : index
    %663 = vector.load %arg6[%c9_486, %c64_487] : memref<16x128xf32, #tpu.memory_space<vmem>>, vector<1x32xf32>
    tpu.vector_store %arg6[%c9_486, %c64_487], %662 {strides = array<i32>} : memref<16x128xf32, #tpu.memory_space<vmem>>, vector<1x32xf32>,
    %c36_i32_488 = arith.constant 36 : i32
    %664 = arith.addi %0, %c36_i32_488 : i32
    %c3_i32_489 = arith.constant 3 : i32
    %665 = arith.addi %664, %c3_i32_489 : i32
    %666 = arith.index_cast %665 : i32 to index
    %667 = memref.load %arg1[%666] : memref<256xi32, #tpu.memory_space<smem>>
    %c0_i32_490 = arith.constant 0 : i32
    %668 = arith.cmpi sge, %667, %c0_i32_490 : i32
    %c49_i32_491 = arith.constant 49 : i32
    %669 = arith.cmpi slt, %667, %c49_i32_491 : i32
    %670 = arith.andi %668, %669 : i1
    %true_492 = arith.constant true
    %671 = arith.xori %670, %true_492 : i1
    %false_493 = arith.constant false
    %672 = arith.ori %false_493, %671 : i1
    %false_494 = arith.constant false
    %c40_i32 = arith.constant 40 : i32
    %c-1_i32_495 = arith.constant -1 : i32
    %673 = arith.select %false_494, %c-1_i32_495, %c40_i32 : i32
    %c0_i32_496 = arith.constant 0 : i32
    %674 = arith.maxsi %667, %c0_i32_496 : i32
    %c48_i32_497 = arith.constant 48 : i32
    %675 = arith.minsi %674, %c48_i32_497 : i32
    %676 = arith.index_cast %675 : i32 to index
    %c0_498 = arith.constant 0 : index
    %677 = vector.load %arg2[%676, %c0_498] : memref<49x32xf32, #tpu.memory_space<vmem>>, vector<1x32xf32>
    %678 = vector.shape_cast %677 : vector<1x32xf32> to vector<32xf32>
    %679 = vector.shape_cast %678 : vector<32xf32> to vector<1x32xf32>
    %c9_499 = arith.constant 9 : index
    %c96_500 = arith.constant 96 : index
    %680 = vector.load %arg6[%c9_499, %c96_500] : memref<16x128xf32, #tpu.memory_space<vmem>>, vector<1x32xf32>
    tpu.vector_store %arg6[%c9_499, %c96_500], %679 {strides = array<i32>} : memref<16x128xf32, #tpu.memory_space<vmem>>, vector<1x32xf32>,
    %c40_i32_501 = arith.constant 40 : i32
    %681 = arith.addi %0, %c40_i32_501 : i32
    %c0_i32_502 = arith.constant 0 : i32
    %682 = arith.addi %681, %c0_i32_502 : i32
    %683 = arith.index_cast %682 : i32 to index
    %684 = memref.load %arg1[%683] : memref<256xi32, #tpu.memory_space<smem>>
    %c0_i32_503 = arith.constant 0 : i32
    %685 = arith.cmpi sge, %684, %c0_i32_503 : i32
    %c49_i32_504 = arith.constant 49 : i32
    %686 = arith.cmpi slt, %684, %c49_i32_504 : i32
    %687 = arith.andi %685, %686 : i1
    %true_505 = arith.constant true
    %688 = arith.xori %687, %true_505 : i1
    %false_506 = arith.constant false
    %689 = arith.ori %false_506, %688 : i1
    %false_507 = arith.constant false
    %c41_i32 = arith.constant 41 : i32
    %c-1_i32_508 = arith.constant -1 : i32
    %690 = arith.select %false_507, %c-1_i32_508, %c41_i32 : i32
    %c0_i32_509 = arith.constant 0 : i32
    %691 = arith.maxsi %684, %c0_i32_509 : i32
    %c48_i32_510 = arith.constant 48 : i32
    %692 = arith.minsi %691, %c48_i32_510 : i32
    %693 = arith.index_cast %692 : i32 to index
    %c0_511 = arith.constant 0 : index
    %694 = vector.load %arg2[%693, %c0_511] : memref<49x32xf32, #tpu.memory_space<vmem>>, vector<1x32xf32>
    %695 = vector.shape_cast %694 : vector<1x32xf32> to vector<32xf32>
    %696 = vector.shape_cast %695 : vector<32xf32> to vector<1x32xf32>
    %c10 = arith.constant 10 : index
    %c0_512 = arith.constant 0 : index
    %697 = vector.load %arg6[%c10, %c0_512] : memref<16x128xf32, #tpu.memory_space<vmem>>, vector<1x32xf32>
    tpu.vector_store %arg6[%c10, %c0_512], %696 {strides = array<i32>} : memref<16x128xf32, #tpu.memory_space<vmem>>, vector<1x32xf32>,
    %c40_i32_513 = arith.constant 40 : i32
    %698 = arith.addi %0, %c40_i32_513 : i32
    %c1_i32_514 = arith.constant 1 : i32
    %699 = arith.addi %698, %c1_i32_514 : i32
    %700 = arith.index_cast %699 : i32 to index
    %701 = memref.load %arg1[%700] : memref<256xi32, #tpu.memory_space<smem>>
    %c0_i32_515 = arith.constant 0 : i32
    %702 = arith.cmpi sge, %701, %c0_i32_515 : i32
    %c49_i32_516 = arith.constant 49 : i32
    %703 = arith.cmpi slt, %701, %c49_i32_516 : i32
    %704 = arith.andi %702, %703 : i1
    %true_517 = arith.constant true
    %705 = arith.xori %704, %true_517 : i1
    %false_518 = arith.constant false
    %706 = arith.ori %false_518, %705 : i1
    %false_519 = arith.constant false
    %c42_i32 = arith.constant 42 : i32
    %c-1_i32_520 = arith.constant -1 : i32
    %707 = arith.select %false_519, %c-1_i32_520, %c42_i32 : i32
    %c0_i32_521 = arith.constant 0 : i32
    %708 = arith.maxsi %701, %c0_i32_521 : i32
    %c48_i32_522 = arith.constant 48 : i32
    %709 = arith.minsi %708, %c48_i32_522 : i32
    %710 = arith.index_cast %709 : i32 to index
    %c0_523 = arith.constant 0 : index
    %711 = vector.load %arg2[%710, %c0_523] : memref<49x32xf32, #tpu.memory_space<vmem>>, vector<1x32xf32>
    %712 = vector.shape_cast %711 : vector<1x32xf32> to vector<32xf32>
    %713 = vector.shape_cast %712 : vector<32xf32> to vector<1x32xf32>
    %c10_524 = arith.constant 10 : index
    %c32_525 = arith.constant 32 : index
    %714 = vector.load %arg6[%c10_524, %c32_525] : memref<16x128xf32, #tpu.memory_space<vmem>>, vector<1x32xf32>
    tpu.vector_store %arg6[%c10_524, %c32_525], %713 {strides = array<i32>} : memref<16x128xf32, #tpu.memory_space<vmem>>, vector<1x32xf32>,
    %c40_i32_526 = arith.constant 40 : i32
    %715 = arith.addi %0, %c40_i32_526 : i32
    %c2_i32_527 = arith.constant 2 : i32
    %716 = arith.addi %715, %c2_i32_527 : i32
    %717 = arith.index_cast %716 : i32 to index
    %718 = memref.load %arg1[%717] : memref<256xi32, #tpu.memory_space<smem>>
    %c0_i32_528 = arith.constant 0 : i32
    %719 = arith.cmpi sge, %718, %c0_i32_528 : i32
    %c49_i32_529 = arith.constant 49 : i32
    %720 = arith.cmpi slt, %718, %c49_i32_529 : i32
    %721 = arith.andi %719, %720 : i1
    %true_530 = arith.constant true
    %722 = arith.xori %721, %true_530 : i1
    %false_531 = arith.constant false
    %723 = arith.ori %false_531, %722 : i1
    %false_532 = arith.constant false
    %c43_i32 = arith.constant 43 : i32
    %c-1_i32_533 = arith.constant -1 : i32
    %724 = arith.select %false_532, %c-1_i32_533, %c43_i32 : i32
    %c0_i32_534 = arith.constant 0 : i32
    %725 = arith.maxsi %718, %c0_i32_534 : i32
    %c48_i32_535 = arith.constant 48 : i32
    %726 = arith.minsi %725, %c48_i32_535 : i32
    %727 = arith.index_cast %726 : i32 to index
    %c0_536 = arith.constant 0 : index
    %728 = vector.load %arg2[%727, %c0_536] : memref<49x32xf32, #tpu.memory_space<vmem>>, vector<1x32xf32>
    %729 = vector.shape_cast %728 : vector<1x32xf32> to vector<32xf32>
    %730 = vector.shape_cast %729 : vector<32xf32> to vector<1x32xf32>
    %c10_537 = arith.constant 10 : index
    %c64_538 = arith.constant 64 : index
    %731 = vector.load %arg6[%c10_537, %c64_538] : memref<16x128xf32, #tpu.memory_space<vmem>>, vector<1x32xf32>
    tpu.vector_store %arg6[%c10_537, %c64_538], %730 {strides = array<i32>} : memref<16x128xf32, #tpu.memory_space<vmem>>, vector<1x32xf32>,
    %c40_i32_539 = arith.constant 40 : i32
    %732 = arith.addi %0, %c40_i32_539 : i32
    %c3_i32_540 = arith.constant 3 : i32
    %733 = arith.addi %732, %c3_i32_540 : i32
    %734 = arith.index_cast %733 : i32 to index
    %735 = memref.load %arg1[%734] : memref<256xi32, #tpu.memory_space<smem>>
    %c0_i32_541 = arith.constant 0 : i32
    %736 = arith.cmpi sge, %735, %c0_i32_541 : i32
    %c49_i32_542 = arith.constant 49 : i32
    %737 = arith.cmpi slt, %735, %c49_i32_542 : i32
    %738 = arith.andi %736, %737 : i1
    %true_543 = arith.constant true
    %739 = arith.xori %738, %true_543 : i1
    %false_544 = arith.constant false
    %740 = arith.ori %false_544, %739 : i1
    %false_545 = arith.constant false
    %c44_i32 = arith.constant 44 : i32
    %c-1_i32_546 = arith.constant -1 : i32
    %741 = arith.select %false_545, %c-1_i32_546, %c44_i32 : i32
    %c0_i32_547 = arith.constant 0 : i32
    %742 = arith.maxsi %735, %c0_i32_547 : i32
    %c48_i32_548 = arith.constant 48 : i32
    %743 = arith.minsi %742, %c48_i32_548 : i32
    %744 = arith.index_cast %743 : i32 to index
    %c0_549 = arith.constant 0 : index
    %745 = vector.load %arg2[%744, %c0_549] : memref<49x32xf32, #tpu.memory_space<vmem>>, vector<1x32xf32>
    %746 = vector.shape_cast %745 : vector<1x32xf32> to vector<32xf32>
    %747 = vector.shape_cast %746 : vector<32xf32> to vector<1x32xf32>
    %c10_550 = arith.constant 10 : index
    %c96_551 = arith.constant 96 : index
    %748 = vector.load %arg6[%c10_550, %c96_551] : memref<16x128xf32, #tpu.memory_space<vmem>>, vector<1x32xf32>
    tpu.vector_store %arg6[%c10_550, %c96_551], %747 {strides = array<i32>} : memref<16x128xf32, #tpu.memory_space<vmem>>, vector<1x32xf32>,
    %c44_i32_552 = arith.constant 44 : i32
    %749 = arith.addi %0, %c44_i32_552 : i32
    %c0_i32_553 = arith.constant 0 : i32
    %750 = arith.addi %749, %c0_i32_553 : i32
    %751 = arith.index_cast %750 : i32 to index
    %752 = memref.load %arg1[%751] : memref<256xi32, #tpu.memory_space<smem>>
    %c0_i32_554 = arith.constant 0 : i32
    %753 = arith.cmpi sge, %752, %c0_i32_554 : i32
    %c49_i32_555 = arith.constant 49 : i32
    %754 = arith.cmpi slt, %752, %c49_i32_555 : i32
    %755 = arith.andi %753, %754 : i1
    %true_556 = arith.constant true
    %756 = arith.xori %755, %true_556 : i1
    %false_557 = arith.constant false
    %757 = arith.ori %false_557, %756 : i1
    %false_558 = arith.constant false
    %c45_i32 = arith.constant 45 : i32
    %c-1_i32_559 = arith.constant -1 : i32
    %758 = arith.select %false_558, %c-1_i32_559, %c45_i32 : i32
    %c0_i32_560 = arith.constant 0 : i32
    %759 = arith.maxsi %752, %c0_i32_560 : i32
    %c48_i32_561 = arith.constant 48 : i32
    %760 = arith.minsi %759, %c48_i32_561 : i32
    %761 = arith.index_cast %760 : i32 to index
    %c0_562 = arith.constant 0 : index
    %762 = vector.load %arg2[%761, %c0_562] : memref<49x32xf32, #tpu.memory_space<vmem>>, vector<1x32xf32>
    %763 = vector.shape_cast %762 : vector<1x32xf32> to vector<32xf32>
    %764 = vector.shape_cast %763 : vector<32xf32> to vector<1x32xf32>
    %c11 = arith.constant 11 : index
    %c0_563 = arith.constant 0 : index
    %765 = vector.load %arg6[%c11, %c0_563] : memref<16x128xf32, #tpu.memory_space<vmem>>, vector<1x32xf32>
    tpu.vector_store %arg6[%c11, %c0_563], %764 {strides = array<i32>} : memref<16x128xf32, #tpu.memory_space<vmem>>, vector<1x32xf32>,
    %c44_i32_564 = arith.constant 44 : i32
    %766 = arith.addi %0, %c44_i32_564 : i32
    %c1_i32_565 = arith.constant 1 : i32
    %767 = arith.addi %766, %c1_i32_565 : i32
    %768 = arith.index_cast %767 : i32 to index
    %769 = memref.load %arg1[%768] : memref<256xi32, #tpu.memory_space<smem>>
    %c0_i32_566 = arith.constant 0 : i32
    %770 = arith.cmpi sge, %769, %c0_i32_566 : i32
    %c49_i32_567 = arith.constant 49 : i32
    %771 = arith.cmpi slt, %769, %c49_i32_567 : i32
    %772 = arith.andi %770, %771 : i1
    %true_568 = arith.constant true
    %773 = arith.xori %772, %true_568 : i1
    %false_569 = arith.constant false
    %774 = arith.ori %false_569, %773 : i1
    %false_570 = arith.constant false
    %c46_i32 = arith.constant 46 : i32
    %c-1_i32_571 = arith.constant -1 : i32
    %775 = arith.select %false_570, %c-1_i32_571, %c46_i32 : i32
    %c0_i32_572 = arith.constant 0 : i32
    %776 = arith.maxsi %769, %c0_i32_572 : i32
    %c48_i32_573 = arith.constant 48 : i32
    %777 = arith.minsi %776, %c48_i32_573 : i32
    %778 = arith.index_cast %777 : i32 to index
    %c0_574 = arith.constant 0 : index
    %779 = vector.load %arg2[%778, %c0_574] : memref<49x32xf32, #tpu.memory_space<vmem>>, vector<1x32xf32>
    %780 = vector.shape_cast %779 : vector<1x32xf32> to vector<32xf32>
    %781 = vector.shape_cast %780 : vector<32xf32> to vector<1x32xf32>
    %c11_575 = arith.constant 11 : index
    %c32_576 = arith.constant 32 : index
    %782 = vector.load %arg6[%c11_575, %c32_576] : memref<16x128xf32, #tpu.memory_space<vmem>>, vector<1x32xf32>
    tpu.vector_store %arg6[%c11_575, %c32_576], %781 {strides = array<i32>} : memref<16x128xf32, #tpu.memory_space<vmem>>, vector<1x32xf32>,
    %c44_i32_577 = arith.constant 44 : i32
    %783 = arith.addi %0, %c44_i32_577 : i32
    %c2_i32_578 = arith.constant 2 : i32
    %784 = arith.addi %783, %c2_i32_578 : i32
    %785 = arith.index_cast %784 : i32 to index
    %786 = memref.load %arg1[%785] : memref<256xi32, #tpu.memory_space<smem>>
    %c0_i32_579 = arith.constant 0 : i32
    %787 = arith.cmpi sge, %786, %c0_i32_579 : i32
    %c49_i32_580 = arith.constant 49 : i32
    %788 = arith.cmpi slt, %786, %c49_i32_580 : i32
    %789 = arith.andi %787, %788 : i1
    %true_581 = arith.constant true
    %790 = arith.xori %789, %true_581 : i1
    %false_582 = arith.constant false
    %791 = arith.ori %false_582, %790 : i1
    %false_583 = arith.constant false
    %c47_i32 = arith.constant 47 : i32
    %c-1_i32_584 = arith.constant -1 : i32
    %792 = arith.select %false_583, %c-1_i32_584, %c47_i32 : i32
    %c0_i32_585 = arith.constant 0 : i32
    %793 = arith.maxsi %786, %c0_i32_585 : i32
    %c48_i32_586 = arith.constant 48 : i32
    %794 = arith.minsi %793, %c48_i32_586 : i32
    %795 = arith.index_cast %794 : i32 to index
    %c0_587 = arith.constant 0 : index
    %796 = vector.load %arg2[%795, %c0_587] : memref<49x32xf32, #tpu.memory_space<vmem>>, vector<1x32xf32>
    %797 = vector.shape_cast %796 : vector<1x32xf32> to vector<32xf32>
    %798 = vector.shape_cast %797 : vector<32xf32> to vector<1x32xf32>
    %c11_588 = arith.constant 11 : index
    %c64_589 = arith.constant 64 : index
    %799 = vector.load %arg6[%c11_588, %c64_589] : memref<16x128xf32, #tpu.memory_space<vmem>>, vector<1x32xf32>
    tpu.vector_store %arg6[%c11_588, %c64_589], %798 {strides = array<i32>} : memref<16x128xf32, #tpu.memory_space<vmem>>, vector<1x32xf32>,
    %c44_i32_590 = arith.constant 44 : i32
    %800 = arith.addi %0, %c44_i32_590 : i32
    %c3_i32_591 = arith.constant 3 : i32
    %801 = arith.addi %800, %c3_i32_591 : i32
    %802 = arith.index_cast %801 : i32 to index
    %803 = memref.load %arg1[%802] : memref<256xi32, #tpu.memory_space<smem>>
    %c0_i32_592 = arith.constant 0 : i32
    %804 = arith.cmpi sge, %803, %c0_i32_592 : i32
    %c49_i32_593 = arith.constant 49 : i32
    %805 = arith.cmpi slt, %803, %c49_i32_593 : i32
    %806 = arith.andi %804, %805 : i1
    %true_594 = arith.constant true
    %807 = arith.xori %806, %true_594 : i1
    %false_595 = arith.constant false
    %808 = arith.ori %false_595, %807 : i1
    %false_596 = arith.constant false
    %c48_i32_597 = arith.constant 48 : i32
    %c-1_i32_598 = arith.constant -1 : i32
    %809 = arith.select %false_596, %c-1_i32_598, %c48_i32_597 : i32
    %c0_i32_599 = arith.constant 0 : i32
    %810 = arith.maxsi %803, %c0_i32_599 : i32
    %c48_i32_600 = arith.constant 48 : i32
    %811 = arith.minsi %810, %c48_i32_600 : i32
    %812 = arith.index_cast %811 : i32 to index
    %c0_601 = arith.constant 0 : index
    %813 = vector.load %arg2[%812, %c0_601] : memref<49x32xf32, #tpu.memory_space<vmem>>, vector<1x32xf32>
    %814 = vector.shape_cast %813 : vector<1x32xf32> to vector<32xf32>
    %815 = vector.shape_cast %814 : vector<32xf32> to vector<1x32xf32>
    %c11_602 = arith.constant 11 : index
    %c96_603 = arith.constant 96 : index
    %816 = vector.load %arg6[%c11_602, %c96_603] : memref<16x128xf32, #tpu.memory_space<vmem>>, vector<1x32xf32>
    tpu.vector_store %arg6[%c11_602, %c96_603], %815 {strides = array<i32>} : memref<16x128xf32, #tpu.memory_space<vmem>>, vector<1x32xf32>,
    %c48_i32_604 = arith.constant 48 : i32
    %817 = arith.addi %0, %c48_i32_604 : i32
    %c0_i32_605 = arith.constant 0 : i32
    %818 = arith.addi %817, %c0_i32_605 : i32
    %819 = arith.index_cast %818 : i32 to index
    %820 = memref.load %arg1[%819] : memref<256xi32, #tpu.memory_space<smem>>
    %c0_i32_606 = arith.constant 0 : i32
    %821 = arith.cmpi sge, %820, %c0_i32_606 : i32
    %c49_i32_607 = arith.constant 49 : i32
    %822 = arith.cmpi slt, %820, %c49_i32_607 : i32
    %823 = arith.andi %821, %822 : i1
    %true_608 = arith.constant true
    %824 = arith.xori %823, %true_608 : i1
    %false_609 = arith.constant false
    %825 = arith.ori %false_609, %824 : i1
    %false_610 = arith.constant false
    %c49_i32_611 = arith.constant 49 : i32
    %c-1_i32_612 = arith.constant -1 : i32
    %826 = arith.select %false_610, %c-1_i32_612, %c49_i32_611 : i32
    %c0_i32_613 = arith.constant 0 : i32
    %827 = arith.maxsi %820, %c0_i32_613 : i32
    %c48_i32_614 = arith.constant 48 : i32
    %828 = arith.minsi %827, %c48_i32_614 : i32
    %829 = arith.index_cast %828 : i32 to index
    %c0_615 = arith.constant 0 : index
    %830 = vector.load %arg2[%829, %c0_615] : memref<49x32xf32, #tpu.memory_space<vmem>>, vector<1x32xf32>
    %831 = vector.shape_cast %830 : vector<1x32xf32> to vector<32xf32>
    %832 = vector.shape_cast %831 : vector<32xf32> to vector<1x32xf32>
    %c12 = arith.constant 12 : index
    %c0_616 = arith.constant 0 : index
    %833 = vector.load %arg6[%c12, %c0_616] : memref<16x128xf32, #tpu.memory_space<vmem>>, vector<1x32xf32>
    tpu.vector_store %arg6[%c12, %c0_616], %832 {strides = array<i32>} : memref<16x128xf32, #tpu.memory_space<vmem>>, vector<1x32xf32>,
    %c48_i32_617 = arith.constant 48 : i32
    %834 = arith.addi %0, %c48_i32_617 : i32
    %c1_i32_618 = arith.constant 1 : i32
    %835 = arith.addi %834, %c1_i32_618 : i32
    %836 = arith.index_cast %835 : i32 to index
    %837 = memref.load %arg1[%836] : memref<256xi32, #tpu.memory_space<smem>>
    %c0_i32_619 = arith.constant 0 : i32
    %838 = arith.cmpi sge, %837, %c0_i32_619 : i32
    %c49_i32_620 = arith.constant 49 : i32
    %839 = arith.cmpi slt, %837, %c49_i32_620 : i32
    %840 = arith.andi %838, %839 : i1
    %true_621 = arith.constant true
    %841 = arith.xori %840, %true_621 : i1
    %false_622 = arith.constant false
    %842 = arith.ori %false_622, %841 : i1
    %false_623 = arith.constant false
    %c50_i32 = arith.constant 50 : i32
    %c-1_i32_624 = arith.constant -1 : i32
    %843 = arith.select %false_623, %c-1_i32_624, %c50_i32 : i32
    %c0_i32_625 = arith.constant 0 : i32
    %844 = arith.maxsi %837, %c0_i32_625 : i32
    %c48_i32_626 = arith.constant 48 : i32
    %845 = arith.minsi %844, %c48_i32_626 : i32
    %846 = arith.index_cast %845 : i32 to index
    %c0_627 = arith.constant 0 : index
    %847 = vector.load %arg2[%846, %c0_627] : memref<49x32xf32, #tpu.memory_space<vmem>>, vector<1x32xf32>
    %848 = vector.shape_cast %847 : vector<1x32xf32> to vector<32xf32>
    %849 = vector.shape_cast %848 : vector<32xf32> to vector<1x32xf32>
    %c12_628 = arith.constant 12 : index
    %c32_629 = arith.constant 32 : index
    %850 = vector.load %arg6[%c12_628, %c32_629] : memref<16x128xf32, #tpu.memory_space<vmem>>, vector<1x32xf32>
    tpu.vector_store %arg6[%c12_628, %c32_629], %849 {strides = array<i32>} : memref<16x128xf32, #tpu.memory_space<vmem>>, vector<1x32xf32>,
    %c48_i32_630 = arith.constant 48 : i32
    %851 = arith.addi %0, %c48_i32_630 : i32
    %c2_i32_631 = arith.constant 2 : i32
    %852 = arith.addi %851, %c2_i32_631 : i32
    %853 = arith.index_cast %852 : i32 to index
    %854 = memref.load %arg1[%853] : memref<256xi32, #tpu.memory_space<smem>>
    %c0_i32_632 = arith.constant 0 : i32
    %855 = arith.cmpi sge, %854, %c0_i32_632 : i32
    %c49_i32_633 = arith.constant 49 : i32
    %856 = arith.cmpi slt, %854, %c49_i32_633 : i32
    %857 = arith.andi %855, %856 : i1
    %true_634 = arith.constant true
    %858 = arith.xori %857, %true_634 : i1
    %false_635 = arith.constant false
    %859 = arith.ori %false_635, %858 : i1
    %false_636 = arith.constant false
    %c51_i32 = arith.constant 51 : i32
    %c-1_i32_637 = arith.constant -1 : i32
    %860 = arith.select %false_636, %c-1_i32_637, %c51_i32 : i32
    %c0_i32_638 = arith.constant 0 : i32
    %861 = arith.maxsi %854, %c0_i32_638 : i32
    %c48_i32_639 = arith.constant 48 : i32
    %862 = arith.minsi %861, %c48_i32_639 : i32
    %863 = arith.index_cast %862 : i32 to index
    %c0_640 = arith.constant 0 : index
    %864 = vector.load %arg2[%863, %c0_640] : memref<49x32xf32, #tpu.memory_space<vmem>>, vector<1x32xf32>
    %865 = vector.shape_cast %864 : vector<1x32xf32> to vector<32xf32>
    %866 = vector.shape_cast %865 : vector<32xf32> to vector<1x32xf32>
    %c12_641 = arith.constant 12 : index
    %c64_642 = arith.constant 64 : index
    %867 = vector.load %arg6[%c12_641, %c64_642] : memref<16x128xf32, #tpu.memory_space<vmem>>, vector<1x32xf32>
    tpu.vector_store %arg6[%c12_641, %c64_642], %866 {strides = array<i32>} : memref<16x128xf32, #tpu.memory_space<vmem>>, vector<1x32xf32>,
    %c48_i32_643 = arith.constant 48 : i32
    %868 = arith.addi %0, %c48_i32_643 : i32
    %c3_i32_644 = arith.constant 3 : i32
    %869 = arith.addi %868, %c3_i32_644 : i32
    %870 = arith.index_cast %869 : i32 to index
    %871 = memref.load %arg1[%870] : memref<256xi32, #tpu.memory_space<smem>>
    %c0_i32_645 = arith.constant 0 : i32
    %872 = arith.cmpi sge, %871, %c0_i32_645 : i32
    %c49_i32_646 = arith.constant 49 : i32
    %873 = arith.cmpi slt, %871, %c49_i32_646 : i32
    %874 = arith.andi %872, %873 : i1
    %true_647 = arith.constant true
    %875 = arith.xori %874, %true_647 : i1
    %false_648 = arith.constant false
    %876 = arith.ori %false_648, %875 : i1
    %false_649 = arith.constant false
    %c52_i32 = arith.constant 52 : i32
    %c-1_i32_650 = arith.constant -1 : i32
    %877 = arith.select %false_649, %c-1_i32_650, %c52_i32 : i32
    %c0_i32_651 = arith.constant 0 : i32
    %878 = arith.maxsi %871, %c0_i32_651 : i32
    %c48_i32_652 = arith.constant 48 : i32
    %879 = arith.minsi %878, %c48_i32_652 : i32
    %880 = arith.index_cast %879 : i32 to index
    %c0_653 = arith.constant 0 : index
    %881 = vector.load %arg2[%880, %c0_653] : memref<49x32xf32, #tpu.memory_space<vmem>>, vector<1x32xf32>
    %882 = vector.shape_cast %881 : vector<1x32xf32> to vector<32xf32>
    %883 = vector.shape_cast %882 : vector<32xf32> to vector<1x32xf32>
    %c12_654 = arith.constant 12 : index
    %c96_655 = arith.constant 96 : index
    %884 = vector.load %arg6[%c12_654, %c96_655] : memref<16x128xf32, #tpu.memory_space<vmem>>, vector<1x32xf32>
    tpu.vector_store %arg6[%c12_654, %c96_655], %883 {strides = array<i32>} : memref<16x128xf32, #tpu.memory_space<vmem>>, vector<1x32xf32>,
    %c52_i32_656 = arith.constant 52 : i32
    %885 = arith.addi %0, %c52_i32_656 : i32
    %c0_i32_657 = arith.constant 0 : i32
    %886 = arith.addi %885, %c0_i32_657 : i32
    %887 = arith.index_cast %886 : i32 to index
    %888 = memref.load %arg1[%887] : memref<256xi32, #tpu.memory_space<smem>>
    %c0_i32_658 = arith.constant 0 : i32
    %889 = arith.cmpi sge, %888, %c0_i32_658 : i32
    %c49_i32_659 = arith.constant 49 : i32
    %890 = arith.cmpi slt, %888, %c49_i32_659 : i32
    %891 = arith.andi %889, %890 : i1
    %true_660 = arith.constant true
    %892 = arith.xori %891, %true_660 : i1
    %false_661 = arith.constant false
    %893 = arith.ori %false_661, %892 : i1
    %false_662 = arith.constant false
    %c53_i32 = arith.constant 53 : i32
    %c-1_i32_663 = arith.constant -1 : i32
    %894 = arith.select %false_662, %c-1_i32_663, %c53_i32 : i32
    %c0_i32_664 = arith.constant 0 : i32
    %895 = arith.maxsi %888, %c0_i32_664 : i32
    %c48_i32_665 = arith.constant 48 : i32
    %896 = arith.minsi %895, %c48_i32_665 : i32
    %897 = arith.index_cast %896 : i32 to index
    %c0_666 = arith.constant 0 : index
    %898 = vector.load %arg2[%897, %c0_666] : memref<49x32xf32, #tpu.memory_space<vmem>>, vector<1x32xf32>
    %899 = vector.shape_cast %898 : vector<1x32xf32> to vector<32xf32>
    %900 = vector.shape_cast %899 : vector<32xf32> to vector<1x32xf32>
    %c13 = arith.constant 13 : index
    %c0_667 = arith.constant 0 : index
    %901 = vector.load %arg6[%c13, %c0_667] : memref<16x128xf32, #tpu.memory_space<vmem>>, vector<1x32xf32>
    tpu.vector_store %arg6[%c13, %c0_667], %900 {strides = array<i32>} : memref<16x128xf32, #tpu.memory_space<vmem>>, vector<1x32xf32>,
    %c52_i32_668 = arith.constant 52 : i32
    %902 = arith.addi %0, %c52_i32_668 : i32
    %c1_i32_669 = arith.constant 1 : i32
    %903 = arith.addi %902, %c1_i32_669 : i32
    %904 = arith.index_cast %903 : i32 to index
    %905 = memref.load %arg1[%904] : memref<256xi32, #tpu.memory_space<smem>>
    %c0_i32_670 = arith.constant 0 : i32
    %906 = arith.cmpi sge, %905, %c0_i32_670 : i32
    %c49_i32_671 = arith.constant 49 : i32
    %907 = arith.cmpi slt, %905, %c49_i32_671 : i32
    %908 = arith.andi %906, %907 : i1
    %true_672 = arith.constant true
    %909 = arith.xori %908, %true_672 : i1
    %false_673 = arith.constant false
    %910 = arith.ori %false_673, %909 : i1
    %false_674 = arith.constant false
    %c54_i32 = arith.constant 54 : i32
    %c-1_i32_675 = arith.constant -1 : i32
    %911 = arith.select %false_674, %c-1_i32_675, %c54_i32 : i32
    %c0_i32_676 = arith.constant 0 : i32
    %912 = arith.maxsi %905, %c0_i32_676 : i32
    %c48_i32_677 = arith.constant 48 : i32
    %913 = arith.minsi %912, %c48_i32_677 : i32
    %914 = arith.index_cast %913 : i32 to index
    %c0_678 = arith.constant 0 : index
    %915 = vector.load %arg2[%914, %c0_678] : memref<49x32xf32, #tpu.memory_space<vmem>>, vector<1x32xf32>
    %916 = vector.shape_cast %915 : vector<1x32xf32> to vector<32xf32>
    %917 = vector.shape_cast %916 : vector<32xf32> to vector<1x32xf32>
    %c13_679 = arith.constant 13 : index
    %c32_680 = arith.constant 32 : index
    %918 = vector.load %arg6[%c13_679, %c32_680] : memref<16x128xf32, #tpu.memory_space<vmem>>, vector<1x32xf32>
    tpu.vector_store %arg6[%c13_679, %c32_680], %917 {strides = array<i32>} : memref<16x128xf32, #tpu.memory_space<vmem>>, vector<1x32xf32>,
    %c52_i32_681 = arith.constant 52 : i32
    %919 = arith.addi %0, %c52_i32_681 : i32
    %c2_i32_682 = arith.constant 2 : i32
    %920 = arith.addi %919, %c2_i32_682 : i32
    %921 = arith.index_cast %920 : i32 to index
    %922 = memref.load %arg1[%921] : memref<256xi32, #tpu.memory_space<smem>>
    %c0_i32_683 = arith.constant 0 : i32
    %923 = arith.cmpi sge, %922, %c0_i32_683 : i32
    %c49_i32_684 = arith.constant 49 : i32
    %924 = arith.cmpi slt, %922, %c49_i32_684 : i32
    %925 = arith.andi %923, %924 : i1
    %true_685 = arith.constant true
    %926 = arith.xori %925, %true_685 : i1
    %false_686 = arith.constant false
    %927 = arith.ori %false_686, %926 : i1
    %false_687 = arith.constant false
    %c55_i32 = arith.constant 55 : i32
    %c-1_i32_688 = arith.constant -1 : i32
    %928 = arith.select %false_687, %c-1_i32_688, %c55_i32 : i32
    %c0_i32_689 = arith.constant 0 : i32
    %929 = arith.maxsi %922, %c0_i32_689 : i32
    %c48_i32_690 = arith.constant 48 : i32
    %930 = arith.minsi %929, %c48_i32_690 : i32
    %931 = arith.index_cast %930 : i32 to index
    %c0_691 = arith.constant 0 : index
    %932 = vector.load %arg2[%931, %c0_691] : memref<49x32xf32, #tpu.memory_space<vmem>>, vector<1x32xf32>
    %933 = vector.shape_cast %932 : vector<1x32xf32> to vector<32xf32>
    %934 = vector.shape_cast %933 : vector<32xf32> to vector<1x32xf32>
    %c13_692 = arith.constant 13 : index
    %c64_693 = arith.constant 64 : index
    %935 = vector.load %arg6[%c13_692, %c64_693] : memref<16x128xf32, #tpu.memory_space<vmem>>, vector<1x32xf32>
    tpu.vector_store %arg6[%c13_692, %c64_693], %934 {strides = array<i32>} : memref<16x128xf32, #tpu.memory_space<vmem>>, vector<1x32xf32>,
    %c52_i32_694 = arith.constant 52 : i32
    %936 = arith.addi %0, %c52_i32_694 : i32
    %c3_i32_695 = arith.constant 3 : i32
    %937 = arith.addi %936, %c3_i32_695 : i32
    %938 = arith.index_cast %937 : i32 to index
    %939 = memref.load %arg1[%938] : memref<256xi32, #tpu.memory_space<smem>>
    %c0_i32_696 = arith.constant 0 : i32
    %940 = arith.cmpi sge, %939, %c0_i32_696 : i32
    %c49_i32_697 = arith.constant 49 : i32
    %941 = arith.cmpi slt, %939, %c49_i32_697 : i32
    %942 = arith.andi %940, %941 : i1
    %true_698 = arith.constant true
    %943 = arith.xori %942, %true_698 : i1
    %false_699 = arith.constant false
    %944 = arith.ori %false_699, %943 : i1
    %false_700 = arith.constant false
    %c56_i32 = arith.constant 56 : i32
    %c-1_i32_701 = arith.constant -1 : i32
    %945 = arith.select %false_700, %c-1_i32_701, %c56_i32 : i32
    %c0_i32_702 = arith.constant 0 : i32
    %946 = arith.maxsi %939, %c0_i32_702 : i32
    %c48_i32_703 = arith.constant 48 : i32
    %947 = arith.minsi %946, %c48_i32_703 : i32
    %948 = arith.index_cast %947 : i32 to index
    %c0_704 = arith.constant 0 : index
    %949 = vector.load %arg2[%948, %c0_704] : memref<49x32xf32, #tpu.memory_space<vmem>>, vector<1x32xf32>
    %950 = vector.shape_cast %949 : vector<1x32xf32> to vector<32xf32>
    %951 = vector.shape_cast %950 : vector<32xf32> to vector<1x32xf32>
    %c13_705 = arith.constant 13 : index
    %c96_706 = arith.constant 96 : index
    %952 = vector.load %arg6[%c13_705, %c96_706] : memref<16x128xf32, #tpu.memory_space<vmem>>, vector<1x32xf32>
    tpu.vector_store %arg6[%c13_705, %c96_706], %951 {strides = array<i32>} : memref<16x128xf32, #tpu.memory_space<vmem>>, vector<1x32xf32>,
    %c56_i32_707 = arith.constant 56 : i32
    %953 = arith.addi %0, %c56_i32_707 : i32
    %c0_i32_708 = arith.constant 0 : i32
    %954 = arith.addi %953, %c0_i32_708 : i32
    %955 = arith.index_cast %954 : i32 to index
    %956 = memref.load %arg1[%955] : memref<256xi32, #tpu.memory_space<smem>>
    %c0_i32_709 = arith.constant 0 : i32
    %957 = arith.cmpi sge, %956, %c0_i32_709 : i32
    %c49_i32_710 = arith.constant 49 : i32
    %958 = arith.cmpi slt, %956, %c49_i32_710 : i32
    %959 = arith.andi %957, %958 : i1
    %true_711 = arith.constant true
    %960 = arith.xori %959, %true_711 : i1
    %false_712 = arith.constant false
    %961 = arith.ori %false_712, %960 : i1
    %false_713 = arith.constant false
    %c57_i32 = arith.constant 57 : i32
    %c-1_i32_714 = arith.constant -1 : i32
    %962 = arith.select %false_713, %c-1_i32_714, %c57_i32 : i32
    %c0_i32_715 = arith.constant 0 : i32
    %963 = arith.maxsi %956, %c0_i32_715 : i32
    %c48_i32_716 = arith.constant 48 : i32
    %964 = arith.minsi %963, %c48_i32_716 : i32
    %965 = arith.index_cast %964 : i32 to index
    %c0_717 = arith.constant 0 : index
    %966 = vector.load %arg2[%965, %c0_717] : memref<49x32xf32, #tpu.memory_space<vmem>>, vector<1x32xf32>
    %967 = vector.shape_cast %966 : vector<1x32xf32> to vector<32xf32>
    %968 = vector.shape_cast %967 : vector<32xf32> to vector<1x32xf32>
    %c14 = arith.constant 14 : index
    %c0_718 = arith.constant 0 : index
    %969 = vector.load %arg6[%c14, %c0_718] : memref<16x128xf32, #tpu.memory_space<vmem>>, vector<1x32xf32>
    tpu.vector_store %arg6[%c14, %c0_718], %968 {strides = array<i32>} : memref<16x128xf32, #tpu.memory_space<vmem>>, vector<1x32xf32>,
    %c56_i32_719 = arith.constant 56 : i32
    %970 = arith.addi %0, %c56_i32_719 : i32
    %c1_i32_720 = arith.constant 1 : i32
    %971 = arith.addi %970, %c1_i32_720 : i32
    %972 = arith.index_cast %971 : i32 to index
    %973 = memref.load %arg1[%972] : memref<256xi32, #tpu.memory_space<smem>>
    %c0_i32_721 = arith.constant 0 : i32
    %974 = arith.cmpi sge, %973, %c0_i32_721 : i32
    %c49_i32_722 = arith.constant 49 : i32
    %975 = arith.cmpi slt, %973, %c49_i32_722 : i32
    %976 = arith.andi %974, %975 : i1
    %true_723 = arith.constant true
    %977 = arith.xori %976, %true_723 : i1
    %false_724 = arith.constant false
    %978 = arith.ori %false_724, %977 : i1
    %false_725 = arith.constant false
    %c58_i32 = arith.constant 58 : i32
    %c-1_i32_726 = arith.constant -1 : i32
    %979 = arith.select %false_725, %c-1_i32_726, %c58_i32 : i32
    %c0_i32_727 = arith.constant 0 : i32
    %980 = arith.maxsi %973, %c0_i32_727 : i32
    %c48_i32_728 = arith.constant 48 : i32
    %981 = arith.minsi %980, %c48_i32_728 : i32
    %982 = arith.index_cast %981 : i32 to index
    %c0_729 = arith.constant 0 : index
    %983 = vector.load %arg2[%982, %c0_729] : memref<49x32xf32, #tpu.memory_space<vmem>>, vector<1x32xf32>
    %984 = vector.shape_cast %983 : vector<1x32xf32> to vector<32xf32>
    %985 = vector.shape_cast %984 : vector<32xf32> to vector<1x32xf32>
    %c14_730 = arith.constant 14 : index
    %c32_731 = arith.constant 32 : index
    %986 = vector.load %arg6[%c14_730, %c32_731] : memref<16x128xf32, #tpu.memory_space<vmem>>, vector<1x32xf32>
    tpu.vector_store %arg6[%c14_730, %c32_731], %985 {strides = array<i32>} : memref<16x128xf32, #tpu.memory_space<vmem>>, vector<1x32xf32>,
    %c56_i32_732 = arith.constant 56 : i32
    %987 = arith.addi %0, %c56_i32_732 : i32
    %c2_i32_733 = arith.constant 2 : i32
    %988 = arith.addi %987, %c2_i32_733 : i32
    %989 = arith.index_cast %988 : i32 to index
    %990 = memref.load %arg1[%989] : memref<256xi32, #tpu.memory_space<smem>>
    %c0_i32_734 = arith.constant 0 : i32
    %991 = arith.cmpi sge, %990, %c0_i32_734 : i32
    %c49_i32_735 = arith.constant 49 : i32
    %992 = arith.cmpi slt, %990, %c49_i32_735 : i32
    %993 = arith.andi %991, %992 : i1
    %true_736 = arith.constant true
    %994 = arith.xori %993, %true_736 : i1
    %false_737 = arith.constant false
    %995 = arith.ori %false_737, %994 : i1
    %false_738 = arith.constant false
    %c59_i32 = arith.constant 59 : i32
    %c-1_i32_739 = arith.constant -1 : i32
    %996 = arith.select %false_738, %c-1_i32_739, %c59_i32 : i32
    %c0_i32_740 = arith.constant 0 : i32
    %997 = arith.maxsi %990, %c0_i32_740 : i32
    %c48_i32_741 = arith.constant 48 : i32
    %998 = arith.minsi %997, %c48_i32_741 : i32
    %999 = arith.index_cast %998 : i32 to index
    %c0_742 = arith.constant 0 : index
    %1000 = vector.load %arg2[%999, %c0_742] : memref<49x32xf32, #tpu.memory_space<vmem>>, vector<1x32xf32>
    %1001 = vector.shape_cast %1000 : vector<1x32xf32> to vector<32xf32>
    %1002 = vector.shape_cast %1001 : vector<32xf32> to vector<1x32xf32>
    %c14_743 = arith.constant 14 : index
    %c64_744 = arith.constant 64 : index
    %1003 = vector.load %arg6[%c14_743, %c64_744] : memref<16x128xf32, #tpu.memory_space<vmem>>, vector<1x32xf32>
    tpu.vector_store %arg6[%c14_743, %c64_744], %1002 {strides = array<i32>} : memref<16x128xf32, #tpu.memory_space<vmem>>, vector<1x32xf32>,
    %c56_i32_745 = arith.constant 56 : i32
    %1004 = arith.addi %0, %c56_i32_745 : i32
    %c3_i32_746 = arith.constant 3 : i32
    %1005 = arith.addi %1004, %c3_i32_746 : i32
    %1006 = arith.index_cast %1005 : i32 to index
    %1007 = memref.load %arg1[%1006] : memref<256xi32, #tpu.memory_space<smem>>
    %c0_i32_747 = arith.constant 0 : i32
    %1008 = arith.cmpi sge, %1007, %c0_i32_747 : i32
    %c49_i32_748 = arith.constant 49 : i32
    %1009 = arith.cmpi slt, %1007, %c49_i32_748 : i32
    %1010 = arith.andi %1008, %1009 : i1
    %true_749 = arith.constant true
    %1011 = arith.xori %1010, %true_749 : i1
    %false_750 = arith.constant false
    %1012 = arith.ori %false_750, %1011 : i1
    %false_751 = arith.constant false
    %c60_i32 = arith.constant 60 : i32
    %c-1_i32_752 = arith.constant -1 : i32
    %1013 = arith.select %false_751, %c-1_i32_752, %c60_i32 : i32
    %c0_i32_753 = arith.constant 0 : i32
    %1014 = arith.maxsi %1007, %c0_i32_753 : i32
    %c48_i32_754 = arith.constant 48 : i32
    %1015 = arith.minsi %1014, %c48_i32_754 : i32
    %1016 = arith.index_cast %1015 : i32 to index
    %c0_755 = arith.constant 0 : index
    %1017 = vector.load %arg2[%1016, %c0_755] : memref<49x32xf32, #tpu.memory_space<vmem>>, vector<1x32xf32>
    %1018 = vector.shape_cast %1017 : vector<1x32xf32> to vector<32xf32>
    %1019 = vector.shape_cast %1018 : vector<32xf32> to vector<1x32xf32>
    %c14_756 = arith.constant 14 : index
    %c96_757 = arith.constant 96 : index
    %1020 = vector.load %arg6[%c14_756, %c96_757] : memref<16x128xf32, #tpu.memory_space<vmem>>, vector<1x32xf32>
    tpu.vector_store %arg6[%c14_756, %c96_757], %1019 {strides = array<i32>} : memref<16x128xf32, #tpu.memory_space<vmem>>, vector<1x32xf32>,
    %c60_i32_758 = arith.constant 60 : i32
    %1021 = arith.addi %0, %c60_i32_758 : i32
    %c0_i32_759 = arith.constant 0 : i32
    %1022 = arith.addi %1021, %c0_i32_759 : i32
    %1023 = arith.index_cast %1022 : i32 to index
    %1024 = memref.load %arg1[%1023] : memref<256xi32, #tpu.memory_space<smem>>
    %c0_i32_760 = arith.constant 0 : i32
    %1025 = arith.cmpi sge, %1024, %c0_i32_760 : i32
    %c49_i32_761 = arith.constant 49 : i32
    %1026 = arith.cmpi slt, %1024, %c49_i32_761 : i32
    %1027 = arith.andi %1025, %1026 : i1
    %true_762 = arith.constant true
    %1028 = arith.xori %1027, %true_762 : i1
    %false_763 = arith.constant false
    %1029 = arith.ori %false_763, %1028 : i1
    %false_764 = arith.constant false
    %c61_i32 = arith.constant 61 : i32
    %c-1_i32_765 = arith.constant -1 : i32
    %1030 = arith.select %false_764, %c-1_i32_765, %c61_i32 : i32
    %c0_i32_766 = arith.constant 0 : i32
    %1031 = arith.maxsi %1024, %c0_i32_766 : i32
    %c48_i32_767 = arith.constant 48 : i32
    %1032 = arith.minsi %1031, %c48_i32_767 : i32
    %1033 = arith.index_cast %1032 : i32 to index
    %c0_768 = arith.constant 0 : index
    %1034 = vector.load %arg2[%1033, %c0_768] : memref<49x32xf32, #tpu.memory_space<vmem>>, vector<1x32xf32>
    %1035 = vector.shape_cast %1034 : vector<1x32xf32> to vector<32xf32>
    %1036 = vector.shape_cast %1035 : vector<32xf32> to vector<1x32xf32>
    %c15 = arith.constant 15 : index
    %c0_769 = arith.constant 0 : index
    %1037 = vector.load %arg6[%c15, %c0_769] : memref<16x128xf32, #tpu.memory_space<vmem>>, vector<1x32xf32>
    tpu.vector_store %arg6[%c15, %c0_769], %1036 {strides = array<i32>} : memref<16x128xf32, #tpu.memory_space<vmem>>, vector<1x32xf32>,
    %c60_i32_770 = arith.constant 60 : i32
    %1038 = arith.addi %0, %c60_i32_770 : i32
    %c1_i32_771 = arith.constant 1 : i32
    %1039 = arith.addi %1038, %c1_i32_771 : i32
    %1040 = arith.index_cast %1039 : i32 to index
    %1041 = memref.load %arg1[%1040] : memref<256xi32, #tpu.memory_space<smem>>
    %c0_i32_772 = arith.constant 0 : i32
    %1042 = arith.cmpi sge, %1041, %c0_i32_772 : i32
    %c49_i32_773 = arith.constant 49 : i32
    %1043 = arith.cmpi slt, %1041, %c49_i32_773 : i32
    %1044 = arith.andi %1042, %1043 : i1
    %true_774 = arith.constant true
    %1045 = arith.xori %1044, %true_774 : i1
    %false_775 = arith.constant false
    %1046 = arith.ori %false_775, %1045 : i1
    %false_776 = arith.constant false
    %c62_i32 = arith.constant 62 : i32
    %c-1_i32_777 = arith.constant -1 : i32
    %1047 = arith.select %false_776, %c-1_i32_777, %c62_i32 : i32
    %c0_i32_778 = arith.constant 0 : i32
    %1048 = arith.maxsi %1041, %c0_i32_778 : i32
    %c48_i32_779 = arith.constant 48 : i32
    %1049 = arith.minsi %1048, %c48_i32_779 : i32
    %1050 = arith.index_cast %1049 : i32 to index
    %c0_780 = arith.constant 0 : index
    %1051 = vector.load %arg2[%1050, %c0_780] : memref<49x32xf32, #tpu.memory_space<vmem>>, vector<1x32xf32>
    %1052 = vector.shape_cast %1051 : vector<1x32xf32> to vector<32xf32>
    %1053 = vector.shape_cast %1052 : vector<32xf32> to vector<1x32xf32>
    %c15_781 = arith.constant 15 : index
    %c32_782 = arith.constant 32 : index
    %1054 = vector.load %arg6[%c15_781, %c32_782] : memref<16x128xf32, #tpu.memory_space<vmem>>, vector<1x32xf32>
    tpu.vector_store %arg6[%c15_781, %c32_782], %1053 {strides = array<i32>} : memref<16x128xf32, #tpu.memory_space<vmem>>, vector<1x32xf32>,
    %c60_i32_783 = arith.constant 60 : i32
    %1055 = arith.addi %0, %c60_i32_783 : i32
    %c2_i32_784 = arith.constant 2 : i32
    %1056 = arith.addi %1055, %c2_i32_784 : i32
    %1057 = arith.index_cast %1056 : i32 to index
    %1058 = memref.load %arg1[%1057] : memref<256xi32, #tpu.memory_space<smem>>
    %c0_i32_785 = arith.constant 0 : i32
    %1059 = arith.cmpi sge, %1058, %c0_i32_785 : i32
    %c49_i32_786 = arith.constant 49 : i32
    %1060 = arith.cmpi slt, %1058, %c49_i32_786 : i32
    %1061 = arith.andi %1059, %1060 : i1
    %true_787 = arith.constant true
    %1062 = arith.xori %1061, %true_787 : i1
    %false_788 = arith.constant false
    %1063 = arith.ori %false_788, %1062 : i1
    %false_789 = arith.constant false
    %c63_i32 = arith.constant 63 : i32
    %c-1_i32_790 = arith.constant -1 : i32
    %1064 = arith.select %false_789, %c-1_i32_790, %c63_i32 : i32
    %c0_i32_791 = arith.constant 0 : i32
    %1065 = arith.maxsi %1058, %c0_i32_791 : i32
    %c48_i32_792 = arith.constant 48 : i32
    %1066 = arith.minsi %1065, %c48_i32_792 : i32
    %1067 = arith.index_cast %1066 : i32 to index
    %c0_793 = arith.constant 0 : index
    %1068 = vector.load %arg2[%1067, %c0_793] : memref<49x32xf32, #tpu.memory_space<vmem>>, vector<1x32xf32>
    %1069 = vector.shape_cast %1068 : vector<1x32xf32> to vector<32xf32>
    %1070 = vector.shape_cast %1069 : vector<32xf32> to vector<1x32xf32>
    %c15_794 = arith.constant 15 : index
    %c64_795 = arith.constant 64 : index
    %1071 = vector.load %arg6[%c15_794, %c64_795] : memref<16x128xf32, #tpu.memory_space<vmem>>, vector<1x32xf32>
    tpu.vector_store %arg6[%c15_794, %c64_795], %1070 {strides = array<i32>} : memref<16x128xf32, #tpu.memory_space<vmem>>, vector<1x32xf32>,
    %c60_i32_796 = arith.constant 60 : i32
    %1072 = arith.addi %0, %c60_i32_796 : i32
    %c3_i32_797 = arith.constant 3 : i32
    %1073 = arith.addi %1072, %c3_i32_797 : i32
    %1074 = arith.index_cast %1073 : i32 to index
    %1075 = memref.load %arg1[%1074] : memref<256xi32, #tpu.memory_space<smem>>
    %c0_i32_798 = arith.constant 0 : i32
    %1076 = arith.cmpi sge, %1075, %c0_i32_798 : i32
    %c49_i32_799 = arith.constant 49 : i32
    %1077 = arith.cmpi slt, %1075, %c49_i32_799 : i32
    %1078 = arith.andi %1076, %1077 : i1
    %true_800 = arith.constant true
    %1079 = arith.xori %1078, %true_800 : i1
    %false_801 = arith.constant false
    %1080 = arith.ori %false_801, %1079 : i1
    %false_802 = arith.constant false
    %c64_i32_803 = arith.constant 64 : i32
    %c-1_i32_804 = arith.constant -1 : i32
    %1081 = arith.select %false_802, %c-1_i32_804, %c64_i32_803 : i32
    %c0_i32_805 = arith.constant 0 : i32
    %1082 = arith.maxsi %1075, %c0_i32_805 : i32
    %c48_i32_806 = arith.constant 48 : i32
    %1083 = arith.minsi %1082, %c48_i32_806 : i32
    %1084 = arith.index_cast %1083 : i32 to index
    %c0_807 = arith.constant 0 : index
    %1085 = vector.load %arg2[%1084, %c0_807] : memref<49x32xf32, #tpu.memory_space<vmem>>, vector<1x32xf32>
    %1086 = vector.shape_cast %1085 : vector<1x32xf32> to vector<32xf32>
    %1087 = vector.shape_cast %1086 : vector<32xf32> to vector<1x32xf32>
    %c15_808 = arith.constant 15 : index
    %c96_809 = arith.constant 96 : index
    %1088 = vector.load %arg6[%c15_808, %c96_809] : memref<16x128xf32, #tpu.memory_space<vmem>>, vector<1x32xf32>
    tpu.vector_store %arg6[%c15_808, %c96_809], %1087 {strides = array<i32>} : memref<16x128xf32, #tpu.memory_space<vmem>>, vector<1x32xf32>,
    %c0_810 = arith.constant 0 : index
    %c0_811 = arith.constant 0 : index
    %1089 = vector.load %arg6[%c0_810, %c0_811] : memref<16x128xf32, #tpu.memory_space<vmem>>, vector<16x128xf32>
    %c0_812 = arith.constant 0 : index
    %c0_813 = arith.constant 0 : index
    %1090 = vector.load %arg3[%c0_812, %c0_813] : memref<128x128xf32, #tpu.memory_space<vmem>>, vector<128x128xf32>
    %cst = arith.constant dense<0.000000e+00> : vector<16x128xf32>
    %1091 = tpu.matmul %1089, %1090, %cst {dimension_numbers = #tpu.dot_dimension_numbers<[1], [0], [0], [1], [0, 0, 1, 1], [], []>} : vector<16x128xf32>, vector<128x128xf32>, vector<16x128xf32> -> vector<16x128xf32>
    %c0_814 = arith.constant 0 : index
    %c0_815 = arith.constant 0 : index
    %1092 = vector.load %arg4[%c0_814, %c0_815] : memref<1x128xf32, #tpu.memory_space<vmem>>, vector<1x128xf32>
    %1093 = vector.broadcast %1092 : vector<1x128xf32> to vector<16x128xf32>
    %1094 = arith.addf %1091, %1093 : vector<16x128xf32>
    %1095 = vector.extract_strided_slice %1094 {offsets = [0, 0], sizes = [16, 49], strides = [1, 1]} : vector<16x128xf32> to vector<16x49xf32>
    %c0_816 = arith.constant 0 : index
    %c0_817 = arith.constant 0 : index
    %1096 = vector.load %arg5[%c0_816, %c0_817] : memref<16x49xf32, #tpu.memory_space<vmem>>, vector<16x49xf32>
    tpu.vector_store %arg5[%c0_816, %c0_817], %1095 {strides = array<i32>} : memref<16x49xf32, #tpu.memory_space<vmem>>, vector<16x49xf32>,
    return
  }
  func.func @transform_0(%arg0: i32, %arg1: memref<256xi32, #tpu.memory_space<smem>>) -> (i32, i32) {
    %c0_i32 = arith.constant 0 : i32
    %c0_i32_0 = arith.constant 0 : i32
    %c0_i32_1 = arith.constant 0 : i32
    return %c0_i32, %c0_i32_0 : i32, i32
  }
  func.func @transform_1(%arg0: i32, %arg1: memref<256xi32, #tpu.memory_space<smem>>) -> (i32, i32) {
    %c0_i32 = arith.constant 0 : i32
    %c0_i32_0 = arith.constant 0 : i32
    %c0_i32_1 = arith.constant 0 : i32
    return %c0_i32, %c0_i32_0 : i32, i32
  }
  func.func @transform_2(%arg0: i32, %arg1: memref<256xi32, #tpu.memory_space<smem>>) -> (i32, i32) {
    %c0_i32 = arith.constant 0 : i32
    %c0_i32_0 = arith.constant 0 : i32
    %c0_i32_1 = arith.constant 0 : i32
    return %c0_i32, %c0_i32_0 : i32, i32
  }
  func.func @transform_3(%arg0: i32, %arg1: memref<256xi32, #tpu.memory_space<smem>>) -> (i32, i32) {
    %c0_i32 = arith.constant 0 : i32
    %c0_i32_0 = arith.constant 0 : i32
    return %arg0, %c0_i32 : i32, i32
  }
}

</mosaic_0001>

<bundles_post_ra>
// kernel: cbow_forward_batched.1
= control target key start
LH: loop header
LB: loop body
LE: loop exit
PB: predicated region body
PF: predicated region fallthrough
CT: control target
= control target key end

     0   :  { %s2464_s0 = inlined_call_operand.vmem [shape: s32[256], index: 0, kind: input, shape index: {}]   ;;  %s2465_s1 = inlined_call_operand.vmem [shape: f32[49,32], index: 1, kind: input, shape index: {}]   ;;  %s2466_s2 = inlined_call_operand.vmem [shape: f32[128,128], index: 2, kind: input, shape index: {}]   ;;  %s2467_s3 = inlined_call_operand.vmem [shape: f32[1,128], index: 3, kind: input, shape index: {}]   ;;  %s2468_s4 = inlined_call_operand.vmem [shape: f32[64,49], index: 4, kind: output, shape index: {}]  }
   0x1   :  { %s9_s17 = sshll.u32 %s2464_s0, 4  ;;  %s10_s17 = int_to_ptr.vmem [resolvable:$true] %s9_s17 }
   0x2   :  { %s1697_s18 = scalar_lea.vmem %s10_s17, 32  ;;  %p1702_p1 = scmp.lt.s32.totalorder %s10_s17, %s10_s17 }
   0x3   :  { %p1698_p0 = scmp.ne.s32.totalorder %s10_s17, %s1697_s18  ;;  %p1703_p2 = scmp.lt.s32.totalorder %s1697_s18, %s1697_s18 }
   0x5   :  { %p1704_p3 = por %p1703_p2, %p1702_p1 }
   0x7   :  { %p1705_p4 = pnand %p1704_p3, %p1698_p0 }
   0x9   :  { %1708 = shalt.err (!%p1705_p4)  }
   0xa   :  { %s1719_s19 = smov [#allocation4]  }
   0xb   :  { %12 = dma.vmem_to_smem %s10_s17, 32, %s1719_s19, [#allocation3] }
   0xc   :  { %1713 = dma.done.wait [#allocation3], 32 }
   0xd   :  { %1714 = vsyncadd [#allocation3], 4294967264 }
   0xe   :  { %14 = sfence }
   0xf   :  { %s1751_s20 = smov 0  }
  0x10 LB: > { %s1142_s0 = sadd.s32 4294967295, %s1717_s20   ;;  %p1145_p5 = scmp.ge.s32.totalorder %s1717_s20, 1  ;;  %s1717_s20 = sphi %s1751_s20, %s20_s20  }
  0x11   : > { %p134_p6 = scmp.lt.s32.totalorder %s1717_s20, 5 }
  0x13   : > { %p135_p7 = pnand %p1145_p5, %p134_p6 }
  0x14   : > { %s1761_s21 = sshll.u32 (!%p135_p7), %s1142_s0, 6  ;;  %s1720_s16 = smov (!%p135_p7), 32   ;;  %v933_v38 = vld [vmem:[%s2466_s2] sm:$0xff] (!%p135_p7)  ;;  %v934_v39 = vld [vmem:[%s2466_s2 + $0x8] sm:$0xff] (!%p135_p7)  ;;  %v935_v40 = vld [vmem:[%s2466_s2 + $0x10] sm:$0xff] (!%p135_p7)  ;;  %vm167_vm0 = vcmask (!%p135_p7), 253952  }
  0x15   : > { %138 = sbr.rel (%p135_p7) target bundleno = 544 (0x220), region = 32  ;;  %s268_s22 = sadd.s32 (!%p135_p7), 9, %s1761_s21  ;;  %v1653_v41 = vpack.c.bf16 (!%p135_p7), %v934_v39, %v933_v38  ;;  %v936_v42 = vld [vmem:[%s2466_s2 + $0x18] sm:$0xff] (!%p135_p7)  ;;  %v937_v46 = vld [vmem:[%s2466_s2 + $0x20] sm:$0xff] (!%p135_p7)  ;;  %v938_v47 = vld [vmem:[%s2466_s2 + $0x28] sm:$0xff] (!%p135_p7)  ;;  %vm181_vm1 = vcmask (!%p135_p7), 516352  }
  0x16   : > { %s169_s23 = sadd.s32 (!%p135_p7), 1, %s1761_s21  ;;  %s269_s24 = sld [smem:[#allocation4 + %s268_s22]] (!%p135_p7)  ;;  %v1657_v43 = vpack.c.bf16 (!%p135_p7), %v936_v42, %v935_v40  ;;  %v1661_v48 = vpack.c.bf16 (!%p135_p7), %v938_v47, %v937_v46  ;;  %v939_v57 = vld [vmem:[%s2466_s2 + $0x30] sm:$0xff] (!%p135_p7)  ;;  %v940_v58 = vld [vmem:[%s2466_s2 + $0x38] sm:$0xff] (!%p135_p7)  ;;  %v941_v63 = vld [vmem:[%s2466_s2 + $0x40] sm:$0xff] (!%p135_p7)  ;;  %vm195_vm2 = vcmask (!%p135_p7), 778752  }
  0x17   : > { %s170_s25 = sld [smem:[#allocation4 + %s169_s23]] (!%p135_p7)  ;;  %s316_s26 = sadd.s32 (!%p135_p7), 13, %s1761_s21  ;;  %1654 = vmatprep.subr.bf16.mxu0 (!%p135_p7), %v1653_v41  ;;  %v1665_v59 = vpack.c.bf16 (!%p135_p7), %v940_v58, %v939_v57  ;;  %vm209_vm3 = vcmask (!%p135_p7), 1041152   ;;  %vm1031_vm4 = vcmask (!%p135_p7), 400384  }
  0x18   : > { %s220_s27 = sadd.s32 (!%p135_p7), 5, %s1761_s21  ;;  %s317_s28 = sld [smem:[#allocation4 + %s316_s26]] (!%p135_p7)  ;;  %1656 = vmatpush3.bf16.msra.mxu0 (!%p135_p7), %v1653_v41 }
  0x19   : > { %s1767_s29 = sld [smem:[#allocation4 + %s220_s27]] (!%p135_p7)  ;;  %s412_s30 = sadd.s32 (!%p135_p7), 21, %s1761_s21  ;;  %1658 = vmatprep.subr.bf16.mxu0 (!%p135_p7), %v1657_v43 }
  0x1a   : > { %s364_s5 = sadd.s32 (!%p135_p7), 17, %s1761_s21  ;;  %s1771_s6 = sld [smem:[#allocation4 + %s412_s30]] (!%p135_p7) }
  0x1b   : > { %s1773_s7 = sld [smem:[#allocation4 + %s364_s5]] (!%p135_p7)  ;;  %s508_s8 = sadd.s32 (!%p135_p7), 29, %s1761_s21 }
  0x1c   : > { %s460_s9 = sadd.s32 25, %s1761_s21  ;;  %p270_p8 = scmp.gt.s32.totalorder %s269_s24, 0  ;;  %1660 = vmatpush3.bf16.msra.mxu0 %v1657_v43 }
  0x1d   : > { %p1194_p9 = scmp.lt.s32.totalorder %s269_s24, 48  ;;  %p171_p10 = scmp.gt.s32.totalorder %s170_s25, 0  ;;  %1662 = vmatprep.subr.bf16.mxu0 %v1661_v48 }
  0x1e   : > { %p1154_p11 = scmp.lt.s32.totalorder %s170_s25, 48  ;;  %s2470_s24 = smov (!%p270_p8, %s269_s24), 0 }
  0x1f   : > { %s2472_s25 = smov (!%p171_p10, %s170_s25), 0  ;;  %s2474_s24 = smov (!%p1194_p9, %s2470_s24), 48 }
  0x20   : > { %s2476_s25 = smov (!%p1154_p11, %s2472_s25), 48  ;;  %s274_s12 = scalar_lea.vmem %s2465_s1, %s2474_s24  ;;  %1664 = vmatpush3.bf16.msra.mxu0 %v1661_v48 }
  0x21   : > { %p318_p12 = scmp.gt.s32.totalorder %s317_s28, 0  ;;  %v275_v0 = vld [vmem:[%s274_s12] sm:$0x1]  ;;  %s175_s15 = scalar_lea.vmem %s2465_s1, %s2476_s25  ;;  %1666 = vmatprep.subr.bf16.mxu0 %v1665_v59 }
  0x22   : > { %p1214_p13 = scmp.lt.s32.totalorder %s317_s28, 48  ;;  %277 = vrot.lane.b32.xlu1 %v275_v0, %s1720_s16  ;;  %v176_v1 = vld [vmem:[%s175_s15] sm:$0x1]  ;;  %p222_p0 = scmp.gt.s32.totalorder %s1767_s29, 0  ;;  %v942_v0 = vld [vmem:[%s2466_s2 + $0x48] sm:$0xff] }
  0x23   : > { %s2478_s28 = smov (!%p318_p12, %s317_s28), 0  ;;  %178 = vrot.lane.b32.xlu0 %v176_v1, %s1720_s16  ;;  %p1174_p1 = scmp.lt.s32.totalorder %s1767_s29, 48  ;;  %v1669_v1 = vpack.c.bf16 %v942_v0, %v941_v63 }
  0x24   : > { %s2480_s28 = smov (!%p1214_p13, %s2478_s28), 48  ;;  %s2482_s29 = smov (!%p222_p0, %s1767_s29), 0  ;;  %1668 = vmatpush3.bf16.msra.mxu0 %v1665_v59 }
  0x25   : > { %s322_s19 = scalar_lea.vmem %s2465_s1, %s2480_s28  ;;  %p414_p2 = scmp.gt.s32.totalorder %s1771_s6, 0  ;;  %1670 = vmatprep.subr.bf16.mxu0 %v1669_v1 }
  0x26   : > { %v323_v2 = vld [vmem:[%s322_s19] sm:$0x1]  ;;  %s2484_s29 = smov (!%p1174_p1, %s2482_s29), 48  ;;  %p1254_p3 = scmp.lt.s32.totalorder %s1771_s6, 48 }
  0x27   : > { %325 = vrot.lane.b32.xlu1 %v323_v2, %s1720_s16  ;;  %s415_s22 = scalar_select %p414_p2, %s1771_s6, 0 }
  0x28   : > { %s226_s25 = scalar_lea.vmem %s2465_s1, %s2484_s29  ;;  %p366_p4 = scmp.gt.s32.totalorder %s1773_s7, 0  ;;  %1672 = vmatpush3.bf16.msra.mxu0 %v1669_v1 }
  0x29   : > { %v227_v3 = vld [vmem:[%s226_s25] sm:$0x1]  ;;  %p1234_p5 = scmp.lt.s32.totalorder %s1773_s7, 48  ;;  %s2486_s22 = smov (!%p1254_p3, %s415_s22), 48 }
  0x2a   : > { %229 = vrot.lane.b32.xlu0 %v227_v3, %s1720_s16  ;;  %s2488_s7 = smov (!%p366_p4, %s1773_s7), 0  ;;  %s418_s28 = scalar_lea.vmem %s2465_s1, %s2486_s22 }
  0x2b   : > { %s509_s30 = sld [smem:[#allocation4 + %s508_s8]]  ;;  %v419_v4 = vld [vmem:[%s418_s28] sm:$0x1]  ;;  %s2490_s7 = smov (!%p1234_p5, %s2488_s7), 48 }
  0x2c   : > { %421 = vrot.lane.b32.xlu1 %v419_v4, %s1720_s16  ;;  %s461_s29 = sld [smem:[#allocation4 + %s460_s9]]  ;;  %s370_s10 = scalar_lea.vmem %s2465_s1, %s2490_s7 }
  0x2d   : > { %s233_s11 = sadd.s32 6, %s1761_s21  ;;  %v371_v5 = vld [vmem:[%s370_s10] sm:$0x1]  ;;  %s183_s13 = sadd.s32 2, %s1761_s21 }
  0x2e   : > { %s234_s12 = sld [smem:[#allocation4 + %s233_s11]]  ;;  %373 = vrot.lane.b32.xlu0 %v371_v5, %s1720_s16  ;;  %s329_s15 = sadd.s32 14, %s1761_s21 }
  0x2f   : > { %s184_s14 = sld [smem:[#allocation4 + %s183_s13]]  ;;  %s281_s17 = sadd.s32 10, %s1761_s21 }
  0x30   : > { %s1817_s8 = sld [smem:[#allocation4 + %s329_s15]]  ;;  %s1721_s28 = smov 64  }
  0x31   : > { %p510_p6 = scmp.gt.s32.totalorder %s509_s30, 0  ;;  %p1294_p7 = scmp.lt.s32.totalorder %s509_s30, 48 }
  0x32   : > { %p462_p8 = scmp.gt.s32.totalorder %s461_s29, 0  ;;  %p1274_p9 = scmp.lt.s32.totalorder %s461_s29, 48 }
  0x33   : > { %s2492_s30 = smov (!%p510_p6, %s509_s30), 0  ;;  %s282_s10 = sld [smem:[#allocation4 + %s281_s17]] }
  0x34   : > { %s2494_s30 = smov (!%p1294_p7, %s2492_s30), 48  ;;  %s2496_s29 = smov (!%p462_p8, %s461_s29), 0 }
  0x35   : > { %s514_s18 = scalar_lea.vmem %s2465_s1, %s2494_s30  ;;  %p235_p10 = scmp.gt.s32.totalorder %s234_s12, 0 }
  0x36   : > { %v515_v6 = vld [vmem:[%s514_s18] sm:$0x1]  ;;  %s2498_s29 = smov (!%p1274_p9, %s2496_s29), 48  ;;  %p1179_p11 = scmp.lt.s32.totalorder %s234_s12, 48 }
  0x37   : > { %517 = vrot.lane.b32.xlu1 %v515_v6, %s1720_s16  ;;  %s236_s19 = scalar_select %p235_p10, %s234_s12, 0  ;;  %v943_v6 = vld [vmem:[%s2466_s2 + $0x50] sm:$0xff] }
  0x38   : > { %s466_s24 = scalar_lea.vmem %s2465_s1, %s2498_s29  ;;  %p185_p12 = scmp.gt.s32.totalorder %s184_s14, 0 }
  0x39   : > { %v467_v7 = vld [vmem:[%s466_s24] sm:$0x1]  ;;  %p1159_p13 = scmp.lt.s32.totalorder %s184_s14, 48  ;;  %s2500_s19 = smov (!%p1179_p11, %s236_s19), 48 }
  0x3a   : > { %469 = vrot.lane.b32.xlu0 %v467_v7, %s1720_s16  ;;  %s2502_s14 = smov (!%p185_p12, %s184_s14), 0  ;;  %s239_s27 = scalar_lea.vmem %s2465_s1, %s2500_s19  ;;  %v944_v7 = vld [vmem:[%s2466_s2 + $0x58] sm:$0xff] }
  0x3b   : > { %p331_p0 = scmp.gt.s32.totalorder %s1817_s8, 0  ;;  %v240_v8 = vld [vmem:[%s239_s27] sm:$0x1]  ;;  %s2504_s14 = smov (!%p1159_p13, %s2502_s14), 48 }
  0x3c   : > { %242 = vrot.lane.b32.xlu1 %v240_v8, %s1721_s28  ;;  %s189_s6 = scalar_lea.vmem %s2465_s1, %s2504_s14  ;;  %p1219_p1 = scmp.lt.s32.totalorder %s1817_s8, 48 }
  0x3d   : > { %s332_s30 = scalar_select %p331_p0, %s1817_s8, 0  ;;  %v190_v9 = vld [vmem:[%s189_s6] sm:$0x1] }
  0x3e   : > { %s425_s11 = sadd.s32 22, %s1761_s21  ;;  %192 = vrot.lane.b32.xlu0 %v190_v9, %s1721_s28  ;;  %s377_s13 = sadd.s32 18, %s1761_s21  ;;  %v1673_v9 = vpack.c.bf16 %v944_v7, %v943_v6 }
  0x3f   : > { %s2506_s30 = smov (!%p1219_p1, %s332_s30), 48  ;;  %s426_s12 = sld [smem:[#allocation4 + %s425_s11]] }
  0x40   : > { %s335_s7 = scalar_lea.vmem %s2465_s1, %s2506_s30  ;;  %s378_s18 = sld [smem:[#allocation4 + %s377_s13]]  ;;  %1674 = vmatprep.subr.bf16.mxu0 %v1673_v9 }
  0x41   : > { %v336_v10 = vld [vmem:[%s335_s7] sm:$0x1]  ;;  %s521_s19 = sadd.s32 30, %s1761_s21  ;;  %s473_s14 = sadd.s32 26, %s1761_s21  ;;  %1676 = vmatpush3.bf16.msra.mxu0 %v1673_v9 }
  0x42   : > { %338 = vrot.lane.b32.xlu1 %v336_v10, %s1721_s28  ;;  %s522_s8 = sld [smem:[#allocation4 + %s521_s19]]  ;;  %p283_p2 = scmp.gt.s32.totalorder %s282_s10, 0 }
  0x43   : > { %s1849_s17 = sld [smem:[#allocation4 + %s473_s14]]  ;;  %p1199_p3 = scmp.lt.s32.totalorder %s282_s10, 48 }
  0x44   : > { %s604_s22 = sadd.s32 37, %s1761_s21  ;;  %s556_s23 = sadd.s32 33, %s1761_s21 }
  0x45   : > { %s2508_s10 = smov (!%p283_p2, %s282_s10), 0  ;;  %p427_p4 = scmp.gt.s32.totalorder %s426_s12, 0 }
  0x46   : > { %p1259_p5 = scmp.lt.s32.totalorder %s426_s12, 48  ;;  %s2510_s10 = smov (!%p1199_p3, %s2508_s10), 48 }
  0x47   : > { %s2512_s12 = smov (!%p427_p4, %s426_s12), 0  ;;  %s287_s26 = scalar_lea.vmem %s2465_s1, %s2510_s10 }
  0x48   : > { %p379_p6 = scmp.gt.s32.totalorder %s378_s18, 0  ;;  %v288_v11 = vld [vmem:[%s287_s26] sm:$0x1]  ;;  %s2514_s12 = smov (!%p1259_p5, %s2512_s12), 48 }
  0x49   : > { %290 = vrot.lane.b32.xlu0 %v288_v11, %s1721_s28  ;;  %s431_s5 = scalar_lea.vmem %s2465_s1, %s2514_s12  ;;  %p1239_p7 = scmp.lt.s32.totalorder %s378_s18, 48 }
  0x4a   : > { %s380_s27 = scalar_select %p379_p6, %s378_s18, 0  ;;  %v432_v12 = vld [vmem:[%s431_s5] sm:$0x1] }
  0x4b   : > { %p523_p8 = scmp.gt.s32.totalorder %s522_s8, 0  ;;  %p1299_p9 = scmp.lt.s32.totalorder %s522_s8, 48  ;;  %434 = vrot.lane.b32.xlu1 %v432_v12, %s1721_s28 }
  0x4c   : > { %s2516_s27 = smov (!%p1239_p7, %s380_s27), 48  ;;  %p475_p10 = scmp.gt.s32.totalorder %s1849_s17, 0 }
  0x4d   : > { %s2518_s8 = smov (!%p523_p8, %s522_s8), 0  ;;  %s383_s11 = scalar_lea.vmem %s2465_s1, %s2516_s27 }
  0x4e   : > { %v384_v13 = vld [vmem:[%s383_s11] sm:$0x1]  ;;  %s2520_s8 = smov (!%p1299_p9, %s2518_s8), 48  ;;  %p1279_p11 = scmp.lt.s32.totalorder %s1849_s17, 48 }
  0x4f   : > { %386 = vrot.lane.b32.xlu0 %v384_v13, %s1721_s28  ;;  %s476_s12 = scalar_select %p475_p10, %s1849_s17, 0 }
  0x50   : > { %s527_s9 = scalar_lea.vmem %s2465_s1, %s2520_s8  ;;  %s605_s7 = sld [smem:[#allocation4 + %s604_s22]] }
  0x51   : > { %v528_v14 = vld [vmem:[%s527_s9] sm:$0x1]  ;;  %s557_s18 = sld [smem:[#allocation4 + %s556_s23]]  ;;  %s2522_s12 = smov (!%p1279_p11, %s476_s12), 48 }
  0x52   : > { %530 = vrot.lane.b32.xlu1 %v528_v14, %s1721_s28  ;;  %s700_s19 = sadd.s32 45, %s1761_s21  ;;  %s652_s14 = sadd.s32 41, %s1761_s21 }
  0x53   : > { %s479_s26 = scalar_lea.vmem %s2465_s1, %s2522_s12  ;;  %s701_s27 = sld [smem:[#allocation4 + %s700_s19]] }
  0x54   : > { %v480_v15 = vld [vmem:[%s479_s26] sm:$0x1]  ;;  %s1881_s30 = sld [smem:[#allocation4 + %s652_s14]]  ;;  %s796_s8 = sadd.s32 53, %s1761_s21 }
  0x55   : > { %482 = vrot.lane.b32.xlu0 %v480_v15, %s1721_s28  ;;  %s1885_s17 = sld [smem:[#allocation4 + %s796_s8]]  ;;  %s748_s22 = sadd.s32 49, %s1761_s21 }
  0x56   : > { %p606_p12 = scmp.gt.s32.totalorder %s605_s7, 0  ;;  %p1334_p13 = scmp.lt.s32.totalorder %s605_s7, 48 }
  0x57   : > { %p558_p0 = scmp.gt.s32.totalorder %s557_s18, 0  ;;  %p1314_p1 = scmp.lt.s32.totalorder %s557_s18, 48 }
  0x58   : > { %s2524_s7 = smov (!%p606_p12, %s605_s7), 0  ;;  %s749_s14 = sld [smem:[#allocation4 + %s748_s22]] }
  0x59   : > { %s2526_s18 = smov (!%p558_p0, %s557_s18), 0  ;;  %s2528_s7 = smov (!%p1334_p13, %s2524_s7), 48 }
  0x5a   : > { %s2530_s18 = smov (!%p1314_p1, %s2526_s18), 48  ;;  %s610_s5 = scalar_lea.vmem %s2465_s1, %s2528_s7 }
  0x5b   : > { %p702_p2 = scmp.gt.s32.totalorder %s701_s27, 0  ;;  %v611_v16 = vld [vmem:[%s610_s5] sm:$0x1]  ;;  %s562_s11 = scalar_lea.vmem %s2465_s1, %s2530_s18 }
  0x5c   : > { %p1374_p3 = scmp.lt.s32.totalorder %s701_s27, 48  ;;  %613 = vrot.lane.b32.xlu1 %v611_v16, %s1720_s16  ;;  %v563_v17 = vld [vmem:[%s562_s11] sm:$0x1]  ;;  %p654_p4 = scmp.gt.s32.totalorder %s1881_s30, 0 }
  0x5d   : > { %s2532_s27 = smov (!%p702_p2, %s701_s27), 0  ;;  %565 = vrot.lane.b32.xlu0 %v563_v17, %s1720_s16  ;;  %p1354_p5 = scmp.lt.s32.totalorder %s1881_s30, 48  ;;  %v945_v16 = vld [vmem:[%s2466_s2 + $0x60] sm:$0xff]  ;;  %v946_v17 = vld [vmem:[%s2466_s2 + $0x68] sm:$0xff] }
  0x5e   : > { %s2534_s27 = smov (!%p1374_p3, %s2532_s27), 48  ;;  %s2536_s30 = smov (!%p654_p4, %s1881_s30), 0 }
  0x5f   : > { %s706_s15 = scalar_lea.vmem %s2465_s1, %s2534_s27  ;;  %p798_p6 = scmp.gt.s32.totalorder %s1885_s17, 0 }
  0x60   : > { %v707_v18 = vld [vmem:[%s706_s15] sm:$0x1]  ;;  %s2538_s30 = smov (!%p1354_p5, %s2536_s30), 48  ;;  %p1414_p7 = scmp.lt.s32.totalorder %s1885_s17, 48 }
  0x61   : > { %709 = vrot.lane.b32.xlu1 %v707_v18, %s1720_s16  ;;  %s799_s9 = scalar_select %p798_p6, %s1885_s17, 0 }
  0x62   : > { %s658_s19 = scalar_lea.vmem %s2465_s1, %s2538_s30  ;;  %s892_s24 = sadd.s32 61, %s1761_s21 }
  0x63   : > { %v659_v19 = vld [vmem:[%s658_s19] sm:$0x1]  ;;  %s2540_s9 = smov (!%p1414_p7, %s799_s9), 48  ;;  %s893_s25 = sld [smem:[#allocation4 + %s892_s24]] }
  0x64   : > { %661 = vrot.lane.b32.xlu0 %v659_v19, %s1720_s16  ;;  %s844_s26 = sadd.s32 57, %s1761_s21  ;;  %s802_s23 = scalar_lea.vmem %s2465_s1, %s2540_s9  ;;  %v1677_v19 = vpack.c.bf16 %v946_v17, %v945_v16 }
  0x65   : > { %s845_s29 = sld [smem:[#allocation4 + %s844_s26]]  ;;  %v803_v20 = vld [vmem:[%s802_s23] sm:$0x1]  ;;  %s246_s5 = sadd.s32 7, %s1761_s21 }
  0x66   : > { %805 = vrot.lane.b32.xlu1 %v803_v20, %s1720_s16  ;;  %s247_s30 = sld [smem:[#allocation4 + %s246_s5]]  ;;  %s197_s17 = sadd.s32 3, %s1761_s21  ;;  %v947_v20 = vld [vmem:[%s2466_s2 + $0x70] sm:$0xff]  ;;  %1678 = vmatprep.subr.bf16.mxu0 %v1677_v19 }
  0x67   : > { %p750_p8 = scmp.gt.s32.totalorder %s749_s14, 0  ;;  %p1394_p9 = scmp.lt.s32.totalorder %s749_s14, 48  ;;  %1680 = vmatpush3.bf16.msra.mxu0 %v1677_v19 }
  0x68   : > { %s1920_s22 = sld [smem:[#allocation4 + %s197_s17]]  ;;  %s342_s6 = sadd.s32 15, %s1761_s21 }
  0x69   : > { %s2542_s14 = smov (!%p750_p8, %s749_s14), 0  ;;  %p894_p10 = scmp.gt.s32.totalorder %s893_s25, 0 }
  0x6a   : > { %p1454_p11 = scmp.lt.s32.totalorder %s893_s25, 48  ;;  %s2544_s14 = smov (!%p1394_p9, %s2542_s14), 48 }
  0x6b   : > { %s2546_s25 = smov (!%p894_p10, %s893_s25), 0  ;;  %s754_s12 = scalar_lea.vmem %s2465_s1, %s2544_s14 }
  0x6c   : > { %p846_p12 = scmp.gt.s32.totalorder %s845_s29, 0  ;;  %v755_v21 = vld [vmem:[%s754_s12] sm:$0x1]  ;;  %s2548_s25 = smov (!%p1454_p11, %s2546_s25), 48 }
  0x6d   : > { %757 = vrot.lane.b32.xlu0 %v755_v21, %s1720_s16  ;;  %s898_s7 = scalar_lea.vmem %s2465_s1, %s2548_s25  ;;  %p1434_p13 = scmp.lt.s32.totalorder %s845_s29, 48  ;;  %v948_v21 = vld [vmem:[%s2466_s2 + $0x78] sm:$0xff] }
  0x6e   : > { %s847_s13 = scalar_select %p846_p12, %s845_s29, 0  ;;  %v899_v22 = vld [vmem:[%s898_s7] sm:$0x1] }
  0x6f   : > { %p248_p0 = scmp.gt.s32.totalorder %s247_s30, 0  ;;  %p1184_p1 = scmp.lt.s32.totalorder %s247_s30, 48  ;;  %901 = vrot.lane.b32.xlu1 %v899_v22, %s1720_s16  ;;  %v1681_v22 = vpack.c.bf16 %v948_v21, %v947_v20 }
  0x70   : > { %s2550_s13 = smov (!%p1434_p13, %s847_s13), 48  ;;  %p199_p2 = scmp.gt.s32.totalorder %s1920_s22, 0 }
  0x71   : > { %s2552_s30 = smov (!%p248_p0, %s247_s30), 0  ;;  %s850_s14 = scalar_lea.vmem %s2465_s1, %s2550_s13  ;;  %1682 = vmatprep.subr.bf16.mxu0 %v1681_v22 }
  0x72   : > { %v851_v23 = vld [vmem:[%s850_s14] sm:$0x1]  ;;  %s2554_s30 = smov (!%p1184_p1, %s2552_s30), 48  ;;  %p1164_p3 = scmp.lt.s32.totalorder %s1920_s22, 48  ;;  %1684 = vmatpush3.bf16.msra.mxu0 %v1681_v22 }
  0x73   : > { %853 = vrot.lane.b32.xlu0 %v851_v23, %s1720_s16  ;;  %s200_s24 = scalar_select %p199_p2, %s1920_s22, 0 }
  0x74   : > { %s252_s27 = scalar_lea.vmem %s2465_s1, %s2554_s30  ;;  %s343_s8 = sld [smem:[#allocation4 + %s342_s6]] }
  0x75   : > { %v253_v24 = vld [vmem:[%s252_s27] sm:$0x1]  ;;  %s294_s23 = sadd.s32 11, %s1761_s21  ;;  %s1722_s29 = smov 96  }
  0x76   : > { %255 = vrot.lane.b32.xlu1 %v253_v24, %s1722_s29  ;;  %s2556_s24 = smov (!%p1164_p3, %s200_s24), 48  ;;  %s295_s5 = sld [smem:[#allocation4 + %s294_s23]] }
  0x77   : > { %s438_s17 = sadd.s32 23, %s1761_s21  ;;  %s203_s11 = scalar_lea.vmem %s2465_s1, %s2556_s24 }
  0x78   : > { %s439_s12 = sld [smem:[#allocation4 + %s438_s17]]  ;;  %v204_v25 = vld [vmem:[%s203_s11] sm:$0x1]  ;;  %s390_s13 = sadd.s32 19, %s1761_s21 }
  0x79   : > { %s534_s30 = sadd.s32 31, %s1761_s21  ;;  %206 = vrot.lane.b32.xlu0 %v204_v25, %s1722_s29  ;;  %s391_s22 = sld [smem:[#allocation4 + %s390_s13]] }
  0x7a   : > { %s1950_s6 = sld [smem:[#allocation4 + %s534_s30]]  ;;  %p344_p4 = scmp.gt.s32.totalorder %s343_s8, 0 }
  0x7b   : > { %p1224_p5 = scmp.lt.s32.totalorder %s343_s8, 48  ;;  %s486_s15 = sadd.s32 27, %s1761_s21 }
  0x7c   : > { %s617_s9 = sadd.s32 38, %s1761_s21  ;;  %s2558_s8 = smov (!%p344_p4, %s343_s8), 0 }
  0x7d   : > { %p296_p6 = scmp.gt.s32.totalorder %s295_s5, 0  ;;  %p1204_p7 = scmp.lt.s32.totalorder %s295_s5, 48 }
  0x7e   : > { %s2560_s8 = smov (!%p1224_p5, %s2558_s8), 48  ;;  %p440_p8 = scmp.gt.s32.totalorder %s439_s12, 0 }
  0x7f   : > { %s2562_s5 = smov (!%p296_p6, %s295_s5), 0  ;;  %s348_s19 = scalar_lea.vmem %s2465_s1, %s2560_s8 }
  0x80   : > { %v349_v26 = vld [vmem:[%s348_s19] sm:$0x1]  ;;  %s2564_s5 = smov (!%p1204_p7, %s2562_s5), 48  ;;  %p1264_p9 = scmp.lt.s32.totalorder %s439_s12, 48 }
  0x81   : > { %351 = vrot.lane.b32.xlu1 %v349_v26, %s1722_s29  ;;  %s441_s14 = scalar_select %p440_p8, %s439_s12, 0 }
  0x82   : > { %s300_s26 = scalar_lea.vmem %s2465_s1, %s2564_s5  ;;  %p392_p10 = scmp.gt.s32.totalorder %s391_s22, 0 }
  0x83   : > { %v301_v27 = vld [vmem:[%s300_s26] sm:$0x1]  ;;  %p1244_p11 = scmp.lt.s32.totalorder %s391_s22, 48  ;;  %s2566_s14 = smov (!%p1264_p9, %s441_s14), 48 }
  0x84   : > { %303 = vrot.lane.b32.xlu0 %v301_v27, %s1722_s29  ;;  %s2568_s22 = smov (!%p392_p10, %s391_s22), 0  ;;  %s444_s23 = scalar_lea.vmem %s2465_s1, %s2566_s14 }
  0x85   : > { %p536_p12 = scmp.gt.s32.totalorder %s1950_s6, 0  ;;  %v445_v28 = vld [vmem:[%s444_s23] sm:$0x1]  ;;  %s2570_s22 = smov (!%p1244_p11, %s2568_s22), 48 }
  0x86   : > { %447 = vrot.lane.b32.xlu1 %v445_v28, %s1722_s29  ;;  %s396_s16 = scalar_lea.vmem %s2465_s1, %s2570_s22  ;;  %p1304_p13 = scmp.lt.s32.totalorder %s1950_s6, 48 }
  0x87   : > { %s537_s5 = scalar_select %p536_p12, %s1950_s6, 0  ;;  %v397_v29 = vld [vmem:[%s396_s16] sm:$0x1] }
  0x88   : > { %s487_s11 = sld [smem:[#allocation4 + %s486_s15]]  ;;  %399 = vrot.lane.b32.xlu0 %v397_v29, %s1722_s29  ;;  %s569_s13 = sadd.s32 34, %s1761_s21 }
  0x89   : > { %s618_s12 = sld [smem:[#allocation4 + %s617_s9]]  ;;  %s2572_s5 = smov (!%p1304_p13, %s537_s5), 48 }
  0x8a   : > { %s713_s30 = sadd.s32 46, %s1761_s21  ;;  %s540_s19 = scalar_lea.vmem %s2465_s1, %s2572_s5 }
  0x8b   : > { %s570_s14 = sld [smem:[#allocation4 + %s569_s13]]  ;;  %v541_v30 = vld [vmem:[%s540_s19] sm:$0x1]  ;;  %s665_s22 = sadd.s32 42, %s1761_s21 }
  0x8c   : > { %s1982_s24 = sld [smem:[#allocation4 + %s713_s30]]  ;;  %543 = vrot.lane.b32.xlu1 %v541_v30, %s1722_s29  ;;  %s809_s15 = sadd.s32 54, %s1761_s21 }
  0x8d   : > { %s1986_s6 = sld [smem:[#allocation4 + %s665_s22]]  ;;  %s761_s7 = sadd.s32 50, %s1761_s21 }
  0x8e   : > { %p488_p0 = scmp.gt.s32.totalorder %s487_s11, 0  ;;  %p1284_p1 = scmp.lt.s32.totalorder %s487_s11, 48 }
  0x8f   : > { %p619_p2 = scmp.gt.s32.totalorder %s618_s12, 0  ;;  %p1339_p3 = scmp.lt.s32.totalorder %s618_s12, 48 }
  0x90   : > { %s2574_s11 = smov (!%p488_p0, %s487_s11), 0  ;;  %s2012_s30 = sld [smem:[#allocation4 + %s809_s15]] }
  0x91   : > { %s2576_s12 = smov (!%p619_p2, %s618_s12), 0  ;;  %s2578_s11 = smov (!%p1284_p1, %s2574_s11), 48 }
  0x92   : > { %s2580_s12 = smov (!%p1339_p3, %s2576_s12), 48  ;;  %s492_s26 = scalar_lea.vmem %s2465_s1, %s2578_s11 }
  0x93   : > { %p571_p4 = scmp.gt.s32.totalorder %s570_s14, 0  ;;  %v493_v31 = vld [vmem:[%s492_s26] sm:$0x1]  ;;  %s623_s23 = scalar_lea.vmem %s2465_s1, %s2580_s12 }
  0x94   : > { %p1319_p5 = scmp.lt.s32.totalorder %s570_s14, 48  ;;  %495 = vrot.lane.b32.xlu0 %v493_v31, %s1722_s29  ;;  %v624_v32 = vld [vmem:[%s623_s23] sm:$0x1]  ;;  %p715_p6 = scmp.gt.s32.totalorder %s1982_s24, 0  ;;  %v2028_v37 = vpop.permute.xlu1 %277 }
  0x95   : > { %s2582_s14 = smov (!%p571_p4, %s570_s14), 0  ;;  %626 = vrot.lane.b32.xlu1 %v624_v32, %s1721_s28  ;;  %p1379_p7 = scmp.lt.s32.totalorder %s1982_s24, 48  ;;  %v2019_v35 = vpop.permute.xlu0 %178 }
  0x96   : > { %s2584_s14 = smov (!%p1319_p5, %s2582_s14), 48  ;;  %s2586_s24 = smov (!%p715_p6, %s1982_s24), 0 }
  0x97   : > { %s575_s10 = scalar_lea.vmem %s2465_s1, %s2584_s14  ;;  %p667_p8 = scmp.gt.s32.totalorder %s1986_s6, 0 }
  0x98   : > { %v576_v33 = vld [vmem:[%s575_s10] sm:$0x1]  ;;  %s2588_s24 = smov (!%p1379_p7, %s2586_s24), 48  ;;  %p1359_p9 = scmp.lt.s32.totalorder %s1986_s6, 48 }
  0x99   : > { %578 = vrot.lane.b32.xlu0 %v576_v33, %s1721_s28  ;;  %s668_s16 = scalar_select %p667_p8, %s1986_s6, 0  ;;  %v2056_v45 = vpop.permute.xlu1 %325 }
  0x9a   : > { %s719_s13 = scalar_lea.vmem %s2465_s1, %s2588_s24  ;;  %s2016_s18 = sld [smem:[#allocation4 + %s761_s7]] }
  0x9b   : > { %v720_v34 = vld [vmem:[%s719_s13] sm:$0x1]  ;;  %s2590_s16 = smov (!%p1359_p9, %s668_s16), 48  ;;  %s905_s19 = sadd.s32 62, %s1761_s21 }
  0x9c   : > { %722 = vrot.lane.b32.xlu1 %v720_v34, %s1721_s28  ;;  %s671_s24 = scalar_lea.vmem %s2465_s1, %s2590_s16  ;;  %s2024_s6 = sld [smem:[#allocation4 + %s905_s19]]  ;;  %v2052_v44 = vpop.permute.xlu0 %229 }
  0x9d   : > { %v672_v36 = vld [vmem:[%s671_s24] sm:$0x1]  ;;  %s857_s15 = sadd.s32 58, %s1761_s21  ;;  %s630_s9 = sadd.s32 39, %s1761_s21 }
  0x9e   : > { %674 = vrot.lane.b32.xlu0 %v672_v36, %s1721_s28  ;;  %s2031_s25 = sld [smem:[#allocation4 + %s857_s15]]  ;;  %p811_p10 = scmp.gt.s32.totalorder %s2012_s30, 0  ;;  %v2079_v52 = vpop.permute.xlu1 %421 }
  0x9f   : > { %s2033_s26 = sld [smem:[#allocation4 + %s630_s9]]  ;;  %p1419_p11 = scmp.lt.s32.totalorder %s2012_s30, 48 }
  0xa0   : > { %s582_s12 = sadd.s32 35, %s1761_s21  ;;  %s726_s13 = sadd.s32 47, %s1761_s21  ;;  %v2071_v50 = vpop.permute.xlu0 %373 }
  0xa1   : > { %s2592_s30 = smov (!%p811_p10, %s2012_s30), 0  ;;  %p763_p12 = scmp.gt.s32.totalorder %s2016_s18, 0 }
  0xa2   : > { %p1399_p13 = scmp.lt.s32.totalorder %s2016_s18, 48  ;;  %s2594_s30 = smov (!%p1419_p11, %s2592_s30), 48 }
  0xa3   : > { %s2596_s18 = smov (!%p763_p12, %s2016_s18), 0  ;;  %s815_s9 = scalar_lea.vmem %s2465_s1, %s2594_s30 }
  0xa4   : > { %p907_p0 = scmp.gt.s32.totalorder %s2024_s6, 0  ;;  %v816_v49 = vld [vmem:[%s815_s9] sm:$0x1]  ;;  %s2598_s18 = smov (!%p1399_p13, %s2596_s18), 48 }
  0xa5   : > { %818 = vrot.lane.b32.xlu1 %v816_v49, %s1721_s28  ;;  %s767_s5 = scalar_lea.vmem %s2465_s1, %s2598_s18  ;;  %p1459_p1 = scmp.lt.s32.totalorder %s2024_s6, 48 }
  0xa6   : > { %s908_s27 = scalar_select %p907_p0, %s2024_s6, 0  ;;  %v768_v51 = vld [vmem:[%s767_s5] sm:$0x1] }
  0xa7   : > { %p859_p2 = scmp.gt.s32.totalorder %s2031_s25, 0  ;;  %p1439_p3 = scmp.lt.s32.totalorder %s2031_s25, 48  ;;  %770 = vrot.lane.b32.xlu0 %v768_v51, %s1721_s28 }
  0xa8   : > { %s2600_s27 = smov (!%p1459_p1, %s908_s27), 48  ;;  %p632_p4 = scmp.gt.s32.totalorder %s2033_s26, 0 }
  0xa9   : > { %s2602_s25 = smov (!%p859_p2, %s2031_s25), 0  ;;  %s911_s10 = scalar_lea.vmem %s2465_s1, %s2600_s27  ;;  %v2095_v55 = vpop.permute.xlu1 %517 }
  0xaa   : > { %v912_v53 = vld [vmem:[%s911_s10] sm:$0x1]  ;;  %s2604_s25 = smov (!%p1439_p3, %s2602_s25), 48  ;;  %p1344_p5 = scmp.lt.s32.totalorder %s2033_s26, 48 }
  0xab   : > { %914 = vrot.lane.b32.xlu1 %v912_v53, %s1721_s28  ;;  %s633_s18 = scalar_select %p632_p4, %s2033_s26, 0 }
  0xac   : > { %v2087_v54 = vpop.permute.xlu0 %469  ;;  %s863_s11 = scalar_lea.vmem %s2465_s1, %s2604_s25  ;;  %s2099_s7 = sld [smem:[#allocation4 + %s582_s12]] }
  0xad   : > { %v864_v56 = vld [vmem:[%s863_s11] sm:$0x1]  ;;  %s2103_s19 = sld [smem:[#allocation4 + %s726_s13]]  ;;  %s2606_s18 = smov (!%p1344_p5, %s633_s18), 48 }
  0xae   : > { %866 = vrot.lane.b32.xlu0 %v864_v56, %s1721_s28  ;;  %s678_s24 = sadd.s32 43, %s1761_s21  ;;  %s822_s12 = sadd.s32 55, %s1761_s21  ;;  %v2128_v62 = vpop.permute.xlu1 %242 }
  0xaf   : > { %s636_s28 = scalar_lea.vmem %s2465_s1, %s2606_s18  ;;  %s2117_s9 = sld [smem:[#allocation4 + %s678_s24]] }
  0xb0   : > { %v2119_v60 = vpop.permute.xlu0 %192  ;;  %v637_v61 = vld [vmem:[%s636_s28] sm:$0x1]  ;;  %s2121_s27 = sld [smem:[#allocation4 + %s822_s12]]  ;;  %s774_s8 = sadd.s32 51, %s1761_s21 }
  0xb1   : > { %639 = vrot.lane.b32.xlu1 %v637_v61, %s1722_s29  ;;  %s2125_s23 = sld [smem:[#allocation4 + %s774_s8]]  ;;  %s918_s5 = sadd.s32 63, %s1761_s21 }
  0xb2   : > { %p584_p6 = scmp.gt.s32.totalorder %s2099_s7, 0  ;;  %p1324_p7 = scmp.lt.s32.totalorder %s2099_s7, 48 }
  0xb3   : > { %p728_p8 = scmp.gt.s32.totalorder %s2103_s19, 0  ;;  %p1384_p9 = scmp.lt.s32.totalorder %s2103_s19, 48 }
  0xb4   : > { %s2608_s7 = smov (!%p584_p6, %s2099_s7), 0  ;;  %v2144_v3 = vpop.permute.xlu1 %338  ;;  %s870_s10 = sadd.s32 59, %s1761_s21 }
  0xb5   : > { %s2610_s19 = smov (!%p728_p8, %s2103_s19), 0  ;;  %s2612_s7 = smov (!%p1324_p7, %s2608_s7), 48 }
  0xb6   : > { %s2614_s19 = smov (!%p1384_p9, %s2610_s19), 48  ;;  %s588_s11 = scalar_lea.vmem %s2465_s1, %s2612_s7 }
  0xb7   : > { %p680_p10 = scmp.gt.s32.totalorder %s2117_s9, 0  ;;  %v589_v4 = vld [vmem:[%s588_s11] sm:$0x1]  ;;  %s732_s25 = scalar_lea.vmem %s2465_s1, %s2614_s19 }
  0xb8   : > { %p1364_p11 = scmp.lt.s32.totalorder %s2117_s9, 48  ;;  %591 = vrot.lane.b32.xlu0 %v589_v4, %s1722_s29  ;;  %v733_v5 = vld [vmem:[%s732_s25] sm:$0x1]  ;;  %p824_p12 = scmp.gt.s32.totalorder %s2121_s27, 0 }
  0xb9   : > { %s2616_s9 = smov (!%p680_p10, %s2117_s9), 0  ;;  %735 = vrot.lane.b32.xlu1 %v733_v5, %s1722_s29  ;;  %p1424_p13 = scmp.lt.s32.totalorder %s2121_s27, 48 }
  0xba   : > { %s2618_s9 = smov (!%p1364_p11, %s2616_s9), 48  ;;  %s2620_s27 = smov (!%p824_p12, %s2121_s27), 0 }
  0xbb   : > { %v2142_v2 = vpop.permute.xlu0 %290  ;;  %s684_s15 = scalar_lea.vmem %s2465_s1, %s2618_s9  ;;  %p776_p0 = scmp.gt.s32.totalorder %s2125_s23, 0 }
  0xbc   : > { %v685_v11 = vld [vmem:[%s684_s15] sm:$0x1]  ;;  %s2622_s27 = smov (!%p1424_p13, %s2620_s27), 48  ;;  %p1404_p1 = scmp.lt.s32.totalorder %s2125_s23, 48 }
  0xbd   : > { %v2168_v10 = vpop.permute.xlu1 %434  ;;  %687 = vrot.lane.b32.xlu0 %v685_v11, %s1722_s29  ;;  %s777_s28 = scalar_select %p776_p0, %s2125_s23, 0 }
  0xbe   : > { %s828_s17 = scalar_lea.vmem %s2465_s1, %s2622_s27  ;;  %s2184_s9 = sld [smem:[#allocation4 + %s918_s5]] }
  0xbf   : > { %v829_v13 = vld [vmem:[%s828_s17] sm:$0x1]  ;;  %s2624_s28 = smov (!%p1404_p1, %s777_s28), 48  ;;  %s2190_s18 = sld [smem:[#allocation4 + %s870_s10]] }
  0xc0   : > { %831 = vrot.lane.b32.xlu1 %v829_v13, %s1722_s29  ;;  %s259_s6 = sadd.s32 8, %s1761_s21  ;;  %s780_s23 = scalar_lea.vmem %s2465_s1, %s2624_s28 }
  0xc1   : > { %v2165_v8 = vpop.permute.xlu0 %386  ;;  %s2196_s11 = sld [smem:[#allocation4 + %s259_s6]]  ;;  %v781_v15 = vld [vmem:[%s780_s23] sm:$0x1]  ;;  %s307_s14 = sadd.s32 12, %s1761_s21 }
  0xc2   : > { %s2199_s5 = sld [smem:[#allocation4 + %s1761_s21]]  ;;  %783 = vrot.lane.b32.xlu0 %v781_v15, %s1722_s29  ;;  %s211_s13 = sadd.s32 4, %s1761_s21 }
  0xc3   : > { %s2209_s12 = sld [smem:[#allocation4 + %s307_s14]]  ;;  %s403_s30 = sadd.s32 20, %s1761_s21 }
  0xc4   : > { %v2188_v14 = vpop.permute.xlu1 %530  ;;  %p920_p2 = scmp.gt.s32.totalorder %s2184_s9, 0  ;;  %p1464_p3 = scmp.lt.s32.totalorder %s2184_s9, 48 }
  0xc5   : > { %s2222_s8 = sld [smem:[#allocation4 + %s211_s13]]  ;;  %p872_p4 = scmp.gt.s32.totalorder %s2190_s18, 0 }
  0xc6   : > { %s2626_s9 = smov (!%p920_p2, %s2184_s9), 0  ;;  %p1444_p5 = scmp.lt.s32.totalorder %s2190_s18, 48 }
  0xc7   : > { %v2180_v12 = vpop.permute.xlu0 %482  ;;  %s2628_s9 = smov (!%p1464_p3, %s2626_s9), 48  ;;  %s2630_s18 = smov (!%p872_p4, %s2190_s18), 0 }
  0xc8   : > { %s924_s6 = scalar_lea.vmem %s2465_s1, %s2628_s9  ;;  %p261_p6 = scmp.gt.s32.totalorder %s2196_s11, 0 }
  0xc9   : > { %v925_v25 = vld [vmem:[%s924_s6] sm:$0x1]  ;;  %s2632_s18 = smov (!%p1444_p5, %s2630_s18), 48  ;;  %p1189_p7 = scmp.lt.s32.totalorder %s2196_s11, 48 }
  0xca   : > { %927 = vrot.lane.b32.xlu1 %v925_v25, %s1722_s29  ;;  %s262_s16 = scalar_select %p261_p6, %s2196_s11, 0 }
  0xcb   : > { %s876_s14 = scalar_lea.vmem %s2465_s1, %s2632_s18  ;;  %p161_p8 = scmp.gt.s32.totalorder %s2199_s5, 0 }
  0xcc   : > { %v877_v27 = vld [vmem:[%s876_s14] sm:$0x1]  ;;  %p1149_p9 = scmp.lt.s32.totalorder %s2199_s5, 48  ;;  %s2634_s16 = smov (!%p1189_p7, %s262_s16), 48 }
  0xcd   : > { %879 = vrot.lane.b32.xlu0 %v877_v27, %s1722_s29  ;;  %s2636_s5 = smov (!%p161_p8, %s2199_s5), 0  ;;  %s265_s18 = scalar_lea.vmem %s2465_s1, %s2634_s16 }
  0xce   : > { %v2225_v23 = vpop.permute.xlu1 %613  ;;  %p309_p10 = scmp.gt.s32.totalorder %s2209_s12, 0  ;;  %v266_v30 = vld [vmem:[%s265_s18] sm:$0x1]  ;;  %s2638_s5 = smov (!%p1149_p9, %s2636_s5), 48 }
  0xcf   : > { %v2212_v18 = vpop.permute.xlu0 %565  ;;  %267 = vst.msk [vmem:[#allocation2 + $0x2] sm:$0x1] %vm167_vm0, %v266_v30  ;;  %s165_s26 = scalar_lea.vmem %s2465_s1, %s2638_s5  ;;  %p1209_p11 = scmp.lt.s32.totalorder %s2209_s12, 48 }
  0xd0   : > { %s310_s29 = scalar_select %p309_p10, %s2209_s12, 0  ;;  %280 = vst.msk [vmem:[#allocation2 + $0x2] sm:$0x1] %vm181_vm1, %v2028_v37  ;;  %v166_v31 = vld [vmem:[%s165_s26] sm:$0x1] }
  0xd1   : > { %p213_p12 = scmp.gt.s32.totalorder %s2222_s8, 0  ;;  %p1169_p13 = scmp.lt.s32.totalorder %s2222_s8, 48  ;;  %293 = vst.msk [vmem:[#allocation2 + $0x2] sm:$0x1] %vm195_vm2, %v2142_v2 }
  0xd2   : > { %168 = vst.msk [vmem:[#allocation2] sm:$0x1] %vm167_vm0, %v166_v31  ;;  %s2640_s29 = smov (!%p1209_p11, %s310_s29), 48  ;;  %s2282_s13 = sld [smem:[#allocation4 + %s403_s30]] }
  0xd3   : > { %v2237_v26 = vpop.permute.xlu1 %709  ;;  %182 = vst.msk [vmem:[#allocation2] sm:$0x1] %vm181_vm1, %v2019_v35  ;;  %s2642_s8 = smov (!%p213_p12, %s2222_s8), 0  ;;  %s313_s12 = scalar_lea.vmem %s2465_s1, %s2640_s29 }
  0xd4   : > { %196 = vst.msk [vmem:[#allocation2] sm:$0x1] %vm195_vm2, %v2119_v60  ;;  %v314_v34 = vld [vmem:[%s313_s12] sm:$0x1]  ;;  %s2644_s8 = smov (!%p1169_p13, %s2642_s8), 48  ;;  %s355_s7 = sadd.s32 16, %s1761_s21 }
  0xd5   : > { %315 = vst.msk [vmem:[#allocation2 + $0x3] sm:$0x1] %vm167_vm0, %v314_v34  ;;  %s499_s19 = sadd.s32 28, %s1761_s21  ;;  %s217_s30 = scalar_lea.vmem %s2465_s1, %s2644_s8 }
  0xd6   : > { %v2231_v24 = vpop.permute.xlu0 %661  ;;  %328 = vst.msk [vmem:[#allocation2 + $0x3] sm:$0x1] %vm181_vm1, %v2056_v45  ;;  %s356_s17 = sld [smem:[#allocation4 + %s355_s7]]  ;;  %v218_v36 = vld [vmem:[%s217_s30] sm:$0x1]  ;;  %s451_s6 = sadd.s32 24, %s1761_s21 }
  0xd7   : > { %s2294_s10 = sld [smem:[#allocation4 + %s499_s19]]  ;;  %341 = vst.msk [vmem:[#allocation2 + $0x3] sm:$0x1] %vm195_vm2, %v2144_v3  ;;  %s595_s27 = sadd.s32 36, %s1761_s21 }
  0xd8   : > { %v2255_v29 = vpop.permute.xlu1 %805  ;;  %219 = vst.msk [vmem:[#allocation2 + $0x1] sm:$0x1] %vm167_vm0, %v218_v36  ;;  %s2301_s16 = sld [smem:[#allocation4 + %s451_s6]]  ;;  %p405_p0 = scmp.gt.s32.totalorder %s2282_s13, 0 }
  0xd9   : > { %232 = vst.msk [vmem:[#allocation2 + $0x1] sm:$0x1] %vm181_vm1, %v2052_v44  ;;  %p1249_p1 = scmp.lt.s32.totalorder %s2282_s13, 48  ;;  %s2310_s8 = sld [smem:[#allocation4 + %s595_s27]] }
  0xda   : > { %245 = vst.msk [vmem:[#allocation2 + $0x1] sm:$0x1] %vm195_vm2, %v2128_v62  ;;  %s547_s23 = sadd.s32 32, %s1761_s21  ;;  %s2646_s13 = smov (!%p405_p0, %s2282_s13), 0 }
  0xdb   : > { %s2648_s13 = smov (!%p1249_p1, %s2646_s13), 48  ;;  %s548_s15 = sld [smem:[#allocation4 + %s547_s23]] }
  0xdc   : > { %p357_p2 = scmp.gt.s32.totalorder %s356_s17, 0  ;;  %p1229_p3 = scmp.lt.s32.totalorder %s356_s17, 48 }
  0xdd   : > { %s409_s22 = scalar_lea.vmem %s2465_s1, %s2648_s13  ;;  %p501_p4 = scmp.gt.s32.totalorder %s2294_s10, 0 }
  0xde   : > { %s2650_s17 = smov (!%p357_p2, %s356_s17), 0  ;;  %v410_v39 = vld [vmem:[%s409_s22] sm:$0x1]  ;;  %p1289_p5 = scmp.lt.s32.totalorder %s2294_s10, 48 }
  0xdf   : > { %v2248_v28 = vpop.permute.xlu0 %757  ;;  %s2652_s17 = smov (!%p1229_p3, %s2650_s17), 48  ;;  %411 = vst.msk [vmem:[#allocation2 + $0x5] sm:$0x1] %vm167_vm0, %v410_v39  ;;  %p453_p6 = scmp.gt.s32.totalorder %s2301_s16, 0 }
  0xe0   : > { %s502_s18 = scalar_select %p501_p4, %s2294_s10, 0  ;;  %424 = vst.msk [vmem:[#allocation2 + $0x5] sm:$0x1] %vm181_vm1, %v2079_v52 }
  0xe1   : > { %v2275_v33 = vpop.permute.xlu1 %901  ;;  %s361_s25 = scalar_lea.vmem %s2465_s1, %s2652_s17  ;;  %p1269_p7 = scmp.lt.s32.totalorder %s2301_s16, 48  ;;  %437 = vst.msk [vmem:[#allocation2 + $0x5] sm:$0x1] %vm195_vm2, %v2168_v10  ;;  %v1469_v10 = vld [vmem:[%s2467_s3] ss:$0 sm:$0xff] }
  0xe2   : > { %v362_v41 = vld [vmem:[%s361_s25] sm:$0x1]  ;;  %s2654_s18 = smov (!%p1289_p5, %s502_s18), 48  ;;  %s2656_s16 = smov (!%p453_p6, %s2301_s16), 0 }
  0xe3   : > { %363 = vst.msk [vmem:[#allocation2 + $0x4] sm:$0x1] %vm167_vm0, %v362_v41  ;;  %s505_s24 = scalar_lea.vmem %s2465_s1, %s2654_s18  ;;  %p597_p8 = scmp.gt.s32.totalorder %s2310_s8, 0 }
  0xe4   : > { %376 = vst.msk [vmem:[#allocation2 + $0x4] sm:$0x1] %vm181_vm1, %v2071_v50  ;;  %v506_v43 = vld [vmem:[%s505_s24] sm:$0x1]  ;;  %s2658_s16 = smov (!%p1269_p7, %s2656_s16), 48  ;;  %p1329_p9 = scmp.lt.s32.totalorder %s2310_s8, 48 }
  0xe5   : > { %v2269_v32 = vpop.permute.xlu0 %853  ;;  %389 = vst.msk [vmem:[#allocation2 + $0x4] sm:$0x1] %vm195_vm2, %v2165_v8  ;;  %s598_s12 = scalar_select %p597_p8, %s2310_s8, 0 }
  0xe6   : > { %507 = vst.msk [vmem:[#allocation2 + $0x7] sm:$0x1] %vm167_vm0, %v506_v43  ;;  %s457_s19 = scalar_lea.vmem %s2465_s1, %s2658_s16  ;;  %s691_s28 = sadd.s32 44, %s1761_s21 }
  0xe7   : > { %520 = vst.msk [vmem:[#allocation2 + $0x7] sm:$0x1] %vm181_vm1, %v2095_v55  ;;  %v458_v45 = vld [vmem:[%s457_s19] sm:$0x1]  ;;  %s2660_s12 = smov (!%p1329_p9, %s598_s12), 48  ;;  %s692_s30 = sld [smem:[#allocation4 + %s691_s28]] }
  0xe8   : > { %v256_v37 = vpop.permute.xlu1 %255  ;;  %533 = vst.msk [vmem:[#allocation2 + $0x7] sm:$0x1] %vm195_vm2, %v2188_v14  ;;  %s643_s17 = sadd.s32 40, %s1761_s21  ;;  %s601_s16 = scalar_lea.vmem %s2465_s1, %s2660_s12 }
  0xe9   : > { %258 = vst.msk [vmem:[#allocation2 + $0x1] sm:$0x1] %vm209_vm3, %v256_v37  ;;  %s2367_s27 = sld [smem:[#allocation4 + %s643_s17]]  ;;  %v602_v47 = vld [vmem:[%s601_s16] sm:$0x1]  ;;  %s787_s8 = sadd.s32 52, %s1761_s21 }
  0xea   : > { %459 = vst.msk [vmem:[#allocation2 + $0x6] sm:$0x1] %vm167_vm0, %v458_v45  ;;  %s739_s23 = sadd.s32 48, %s1761_s21  ;;  %603 = vst.msk [vmem:[#allocation2 + $0x9] sm:$0x1] %vm167_vm0, %v602_v47  ;;  %s2373_s14 = sld [smem:[#allocation4 + %s787_s8]] }
  0xeb   : > { %v207_v35 = vpop.permute.xlu0 %206  ;;  %472 = vst.msk [vmem:[#allocation2 + $0x6] sm:$0x1] %vm181_vm1, %v2087_v54  ;;  %s2375_s9 = sld [smem:[#allocation4 + %s739_s23]]  ;;  %616 = vst.msk [vmem:[#allocation2 + $0x9] sm:$0x1] %vm181_vm1, %v2225_v23  ;;  %p549_p10 = scmp.gt.s32.totalorder %s548_s15, 0 }
  0xec   : > { %210 = vst.msk [vmem:[#allocation2] sm:$0x1] %vm209_vm3, %v207_v35  ;;  %p1309_p11 = scmp.lt.s32.totalorder %s548_s15, 48  ;;  %s883_s22 = sadd.s32 60, %s1761_s21 }
  0xed   : > { %485 = vst.msk [vmem:[#allocation2 + $0x6] sm:$0x1] %vm195_vm2, %v2180_v12  ;;  %s835_s18 = sadd.s32 56, %s1761_s21  ;;  %s2662_s15 = smov (!%p549_p10, %s548_s15), 0 }
  0xee   : > { %p693_p12 = scmp.gt.s32.totalorder %s692_s30, 0  ;;  %p1369_p13 = scmp.lt.s32.totalorder %s692_s30, 48 }
  0xef   : > { %s2664_s15 = smov (!%p1309_p11, %s2662_s15), 48  ;;  %p645_p0 = scmp.gt.s32.totalorder %s2367_s27, 0 }
  0xf0   : > { %s2666_s30 = smov (!%p693_p12, %s692_s30), 0  ;;  %s553_s25 = scalar_lea.vmem %s2465_s1, %s2664_s15 }
  0xf1   : > { %v554_v49 = vld [vmem:[%s553_s25] sm:$0x1]  ;;  %s2668_s30 = smov (!%p1369_p13, %s2666_s30), 48  ;;  %p1349_p1 = scmp.lt.s32.totalorder %s2367_s27, 48 }
  0xf2   : > { %555 = vst.msk [vmem:[#allocation2 + $0x8] sm:$0x1] %vm167_vm0, %v554_v49  ;;  %s646_s26 = scalar_select %p645_p0, %s2367_s27, 0 }
  0xf3   : > { %v352_v38 = vpop.permute.xlu1 %351  ;;  %568 = vst.msk [vmem:[#allocation2 + $0x8] sm:$0x1] %vm181_vm1, %v2212_v18  ;;  %s697_s12 = scalar_lea.vmem %s2465_s1, %s2668_s30  ;;  %p789_p2 = scmp.gt.s32.totalorder %s2373_s14, 0 }
  0xf4   : > { %354 = vst.msk [vmem:[#allocation2 + $0x3] sm:$0x1] %vm209_vm3, %v352_v38  ;;  %v698_v51 = vld [vmem:[%s697_s12] sm:$0x1]  ;;  %p1409_p3 = scmp.lt.s32.totalorder %s2373_s14, 48  ;;  %s2670_s26 = smov (!%p1349_p1, %s646_s26), 48 }
  0xf5   : > { %699 = vst.msk [vmem:[#allocation2 + $0xb] sm:$0x1] %vm167_vm0, %v698_v51  ;;  %s2672_s14 = smov (!%p789_p2, %s2373_s14), 0  ;;  %s649_s19 = scalar_lea.vmem %s2465_s1, %s2670_s26 }
  0xf6   : > { %v304_v40 = vpop.permute.xlu0 %303  ;;  %712 = vst.msk [vmem:[#allocation2 + $0xb] sm:$0x1] %vm181_vm1, %v2237_v26  ;;  %p741_p4 = scmp.gt.s32.totalorder %s2375_s9, 0  ;;  %v650_v53 = vld [vmem:[%s649_s19] sm:$0x1]  ;;  %s2674_s14 = smov (!%p1409_p3, %s2672_s14), 48 }
  0xf7   : > { %306 = vst.msk [vmem:[#allocation2 + $0x2] sm:$0x1] %vm209_vm3, %v304_v40  ;;  %s793_s17 = scalar_lea.vmem %s2465_s1, %s2674_s14  ;;  %p1389_p5 = scmp.lt.s32.totalorder %s2375_s9, 48 }
  0xf8   : > { %v448_v42 = vpop.permute.xlu1 %447  ;;  %651 = vst.msk [vmem:[#allocation2 + $0xa] sm:$0x1] %vm167_vm0, %v650_v53  ;;  %s742_s15 = scalar_select %p741_p4, %s2375_s9, 0  ;;  %v794_v56 = vld [vmem:[%s793_s17] sm:$0x1] }
  0xf9   : > { %450 = vst.msk [vmem:[#allocation2 + $0x5] sm:$0x1] %vm209_vm3, %v448_v42  ;;  %s884_s10 = sld [smem:[#allocation4 + %s883_s22]]  ;;  %s1146_s29 = sshll.u32 %s1142_s0, 1 }
  0xfa   : > { %v400_v44 = vpop.permute.xlu0 %399  ;;  %664 = vst.msk [vmem:[#allocation2 + $0xa] sm:$0x1] %vm181_vm1, %v2231_v24  ;;  %s836_s6 = sld [smem:[#allocation4 + %s835_s18]]  ;;  %s2676_s15 = smov (!%p1389_p5, %s742_s15), 48 }
  0xfb   : > { %402 = vst.msk [vmem:[#allocation2 + $0x4] sm:$0x1] %vm209_vm3, %v400_v44  ;;  %s745_s8 = scalar_lea.vmem %s2465_s1, %s2676_s15  ;;  %p154_p10 = scmp.lt.s32.totalorder %s1146_s29, 7 }
  0xfc   : > { %795 = vst.msk [vmem:[#allocation2 + $0xd] sm:$0x1] %vm167_vm0, %v794_v56  ;;  %v746_v58 = vld [vmem:[%s745_s8] sm:$0x1] }
  0xfd   : > { %808 = vst.msk [vmem:[#allocation2 + $0xd] sm:$0x1] %vm181_vm1, %v2255_v29  ;;  %s2686_s29 = smov (!%p154_p10, %s1146_s29), 7 }
  0xfe   : > { %v544_v46 = vpop.permute.xlu1 %543  ;;  %747 = vst.msk [vmem:[#allocation2 + $0xc] sm:$0x1] %vm167_vm0, %v746_v58  ;;  %s1147_s11 = sshll.u32 %s2686_s29, 3 }
  0xff   : > { %546 = vst.msk [vmem:[#allocation2 + $0x7] sm:$0x1] %vm209_vm3, %v544_v46  ;;  %p885_p6 = scmp.gt.s32.totalorder %s884_s10, 0  ;;  %p1449_p7 = scmp.lt.s32.totalorder %s884_s10, 48 }
 0x100   : > { %760 = vst.msk [vmem:[#allocation2 + $0xc] sm:$0x1] %vm181_vm1, %v2248_v28  ;;  %p837_p8 = scmp.gt.s32.totalorder %s836_s6, 0  ;;  %p1429_p9 = scmp.lt.s32.totalorder %s836_s6, 48 }
 0x101   : > { %s2678_s10 = smov (!%p885_p6, %s884_s10), 0  ;;  %s157_s12 = scalar_lea.vmem %s2468_s4, %s1147_s11 }
 0x102   : > { %s2680_s6 = smov (!%p837_p8, %s836_s6), 0  ;;  %s2682_s10 = smov (!%p1449_p7, %s2678_s10), 48 }
 0x103   : > { %s2684_s6 = smov (!%p1429_p9, %s2680_s6), 48  ;;  %s889_s14 = scalar_lea.vmem %s2465_s1, %s2682_s10 }
 0x104   : > { %v890_v60 = vld [vmem:[%s889_s14] sm:$0x1]  ;;  %s841_s18 = scalar_lea.vmem %s2465_s1, %s2684_s6 }
 0x105   : > { %891 = vst.msk [vmem:[#allocation2 + $0xf] sm:$0x1] %vm167_vm0, %v890_v60  ;;  %v842_v61 = vld [vmem:[%s841_s18] sm:$0x1] }
 0x106   : > { %v496_v48 = vpop.permute.xlu0 %495  ;;  %904 = vst.msk [vmem:[#allocation2 + $0xf] sm:$0x1] %vm181_vm1, %v2275_v33 }
 0x107   : > { %498 = vst.msk [vmem:[#allocation2 + $0x6] sm:$0x1] %vm209_vm3, %v496_v48  ;;  %v627_v50 = vpop.permute.xlu1 %626 }
 0x108   : > { %629 = vst.msk [vmem:[#allocation2 + $0x9] sm:$0x1] %vm195_vm2, %v627_v50 }
 0x109   : > { %843 = vst.msk [vmem:[#allocation2 + $0xe] sm:$0x1] %vm167_vm0, %v842_v61 }
 0x10a   : > { %856 = vst.msk [vmem:[#allocation2 + $0xe] sm:$0x1] %vm181_vm1, %v2269_v32 }
 0x10b   : > { %v579_v52 = vpop.permute.xlu0 %578 }
 0x10c   : > { %581 = vst.msk [vmem:[#allocation2 + $0x8] sm:$0x1] %vm195_vm2, %v579_v52 }
 0x10e   : > { %v931_v54 = vld [vmem:[#allocation2] sm:$0xff]  ;;  %v723_v55 = vpop.permute.xlu1 %722 }
 0x10f   : > { %1650 = vmatprep.mubr.f32.mxu0 %v931_v54  ;;  %725 = vst.msk [vmem:[#allocation2 + $0xb] sm:$0x1] %vm195_vm2, %v723_v55 }
 0x110   : > { %v675_v57 = vpop.permute.xlu0 %674 }
 0x111   : > { %677 = vst.msk [vmem:[#allocation2 + $0xa] sm:$0x1] %vm195_vm2, %v675_v57 }
 0x117   : > { %v819_v59 = vpop.permute.xlu1 %818 }
 0x118   : > { %821 = vst.msk [vmem:[#allocation2 + $0xd] sm:$0x1] %vm195_vm2, %v819_v59 }
 0x119   : > { %v771_v62 = vpop.permute.xlu0 %770 }
 0x11a   : > { %773 = vst.msk [vmem:[#allocation2 + $0xc] sm:$0x1] %vm195_vm2, %v771_v62 }
 0x11d   : > { %v915_v63 = vpop.permute.xlu1 %914 }
 0x11e   : > { %917 = vst.msk [vmem:[#allocation2 + $0xf] sm:$0x1] %vm195_vm2, %v915_v63 }
 0x120   : > { %v867_v0 = vpop.permute.xlu0 %866 }
 0x121   : > { %869 = vst.msk [vmem:[#allocation2 + $0xe] sm:$0x1] %vm195_vm2, %v867_v0 }
 0x123   : > { %v640_v1 = vpop.permute.xlu1 %639 }
 0x124   : > { %642 = vst.msk [vmem:[#allocation2 + $0x9] sm:$0x1] %vm209_vm3, %v640_v1 }
 0x12a   : > { %v592_v2 = vpop.permute.xlu0 %591 }
 0x12b   : > { %594 = vst.msk [vmem:[#allocation2 + $0x8] sm:$0x1] %vm209_vm3, %v592_v2  ;;  %v736_v3 = vpop.permute.xlu1 %735 }
 0x12c   : > { %738 = vst.msk [vmem:[#allocation2 + $0xb] sm:$0x1] %vm209_vm3, %v736_v3 }
 0x12f   : > { %v688_v4 = vpop.permute.xlu0 %687 }
 0x130   : > { %690 = vst.msk [vmem:[#allocation2 + $0xa] sm:$0x1] %vm209_vm3, %v688_v4 }
 0x132   : > { %v832_v5 = vpop.permute.xlu1 %831 }
 0x133   : > { %834 = vst.msk [vmem:[#allocation2 + $0xd] sm:$0x1] %vm209_vm3, %v832_v5 }
 0x134   : > { %v784_v6 = vpop.permute.xlu0 %783 }
 0x135   : > { %786 = vst.msk [vmem:[#allocation2 + $0xc] sm:$0x1] %vm209_vm3, %v784_v6 }
 0x13c   : > { %v928_v7 = vpop.permute.xlu1 %927 }
 0x13d   : > { %930 = vst.msk [vmem:[#allocation2 + $0xf] sm:$0x1] %vm209_vm3, %v928_v7 }
 0x13f   : > { %v880_v8 = vpop.permute.xlu0 %879 }
 0x140   : > { %882 = vst.msk [vmem:[#allocation2 + $0xe] sm:$0x1] %vm209_vm3, %v880_v8 }
 0x147   : > { %v932_v9 = vld [vmem:[#allocation2 + $0x8] sm:$0xff] }
 0x148   : > { %1651 = vmatmul.mubr.f32.vlgmr.msra.gmra.mrb[0].mxu0 %v932_v9 }
 0x21b   : > { %v1652_v11 = vpop.f32.mrb[0].mxu0 }
 0x21c   : > { %v1022_v12 = vpop.f32.mrb[1].mxu0  ;;  %v1028_v14 = vadd.f32 %v1652_v11, %v1469_v10 }
 0x21d   : > { %v1023_v13 = vadd.f32 %v1469_v10, %v1022_v12 }
 0x21e   : > { %1033 = vst.msk [vmem:[%s157_s12 + $0x8] sm:$0xff] %vm1031_vm4, %v1028_v14 }
 0x21f   : > { %1032 = vst.msk [vmem:[%s157_s12] sm:$0xff] %vm1031_vm4, %v1023_v13 }
 0x220 PF: > { %s20_s20 = sadd.s32 1, %s1717_s20  }
 0x221   : > { %p17_p11 = scmp.ge.s32.totalorder %s20_s20, 6  }
 0x223   :  { %19 = sbr.rel (!%p17_p11) target bundleno = 16 (0x10), region = 123 }

</bundles_post_ra>
